<compile_context>
chip_gen: v5e
topology: v5e:2x2
jax: 0.10.0
libtpu: 0.0.40
codegen_flags: <defaults>
</compile_context>

<pallas_src>
import jax
import jax.numpy as jnp
from jax import lax
from jax.experimental import pallas as pl
from jax.experimental.pallas import tpu as pltpu

# Fixed "resonance" pattern from the module; circulant: PATTERN[kh][kw] == _COEFFS[(kh+kw) % 3].
_COEFFS = (0.618034, 0.367879, 0.318309)
PATTERN = (
    (0.618034, 0.367879, 0.318309),
    (0.367879, 0.318309, 0.618034),
    (0.318309, 0.618034, 0.367879),
)

_LANES = 128


def _resonance_kernel(bias_ref, x_ref, out_ref):
    # bias_ref : VMEM (S, 128)        float32   per-image bias, lane-aligned
    # x_ref    : VMEM (H, W, S, 128)  input dtype
    # out_ref  : VMEM (H, W, S, 128)  input dtype
    H, W, S, L = out_ref.shape
    a, b, c = _COEFFS

    # Single load; every tap below is derived from it (no scratch, no copy pass).
    x = x_ref[...].astype(jnp.float32)

    zrow = jnp.zeros((1, W, S, L), jnp.float32)
    zcol = jnp.zeros((H, 1, S, L), jnp.float32)

    # H and W are untiled leading axes, so a +-1 shift is a static slice plus a
    # concat with a zero slab: pure slab re-indexing, never touching the (S, 128)
    # tiled dims (no sublane-offset loads / XLU work, zero padding for free).
    def at_hm1(y):  # y[h-1, w]; zero at h == 0
        return jnp.concatenate([zrow, y[:-1]], axis=0)

    def at_hp1(y):  # y[h+1, w]; zero at h == H-1
        return jnp.concatenate([y[1:], zrow], axis=0)

    def at_wm1(y):  # y[h, w-1]; zero at w == 0
        return jnp.concatenate([zcol, y[:, :-1]], axis=1)

    def at_wp1(y):  # y[h, w+1]; zero at w == W-1
        return jnp.concatenate([y[:, 1:], zcol], axis=1)

    x_l = at_wm1(x)  # x[h, w-1]
    x_r = at_wp1(x)  # x[h, w+1]

    # Group the 9 taps by coefficient ((kh + kw) % 3): 3 sums, 3 multiplies.
    #   coeff a: x[h-1,w-1], x[h,  w+1], x[h+1,w  ]
    #   coeff b: x[h-1,w  ], x[h,  w-1], x[h+1,w+1]
    #   coeff c: x[h-1,w+1], x[h,  w  ], x[h+1,w-1]
    g0 = at_hm1(x_l) + x_r + at_hp1(x)
    g1 = at_hm1(x) + x_l + at_hp1(x_r)
    g2 = at_hm1(x_r) + x + at_hp1(x_l)

    out = a * g0 + b * g1 + c * g2 + bias_ref[...]
    out_ref[...] = out.astype(out_ref.dtype)


def _vmem_capacity_bytes() -> int:
    try:
        return int(pltpu.get_tpu_info().vmem_capacity_bytes)
    except Exception:
        return 64 << 20  # conservative default (v7x-sized VMEM)


def _pick_lane_block(n: int, h: int, w: int, itemsize: int, vmem_cap: int):
    """Pick the fused (B*C) lane-block size and the padded fused-axis length."""
    n128 = -(-n // _LANES) * _LANES  # always lane-dense: pad to a multiple of 128
    if n128 < 2 * 8 * _LANES:
        # Small problem: a single lane-dense block (no point splitting below 1024 lanes).
        return n128, n128
    # Large problem: blocks are multiples of 1024 lanes (sublane dim of the (S,128)
    # tile stays a multiple of 8), sized to ~4-8 MiB depending on VMEM capacity
    # (smaller target on 64-MiB v7x), and capped at half the data so the grid has
    # >= 2 steps (DMA/compute pipelining + both v7x TensorCores).
    target_bytes = (8 << 20) if vmem_cap >= (96 << 20) else (4 << 20)
    bytes_per_lane = max(h * w * itemsize, 1)
    unit = 8 * _LANES
    blk = max(1, target_bytes // bytes_per_lane // unit) * unit
    blk = min(blk, (n128 // 2) // unit * unit)
    blk = max(blk, unit)
    n_pad = -(-n128 // blk) * blk  # at most one extra block of padding
    return blk, n_pad


@jax.jit
def resonance_forward(x: jax.Array, bias: jax.Array) -> jax.Array:
    """ResonanceLayer forward: depthwise 3x3 fixed-pattern conv + per-channel bias.

    x: (B, C, H, W), bias: (C,) -> (B, C, H, W); matches
    nn.Conv2d(dim, dim, 3, padding=1, groups=dim) with the fixed pattern weights.
    """
    B, C, H, W = x.shape
    N = B * C

    vmem_cap = _vmem_capacity_bytes()
    n_blk, n_pad = _pick_lane_block(N, H, W, x.dtype.itemsize, vmem_cap)
    s_blk = n_blk // _LANES
    s_tot = n_pad // _LANES
    grid = (n_pad // n_blk,)

    # Lane-dense layout (H, W, S, 128): the fused B*C axis lives on the tiled
    # (sublane, lane) dims; H/W are untiled so the 3x3 taps never shift a tiled
    # axis.  Kept in the wrapper only because the reference API is NCHW; in a full
    # model this relayout happens once at the model boundary.
    # TODO(synk): for very large H*W the full-plane block no longer fits VMEM; that
    # case needs an additional (haloed) grid axis over H.
    x_l = jnp.transpose(x, (2, 3, 0, 1)).reshape(H, W, N)
    if n_pad != N:
        x_l = jnp.pad(x_l, ((0, 0), (0, 0), (0, n_pad - N)))
    x_l = x_l.reshape(H, W, s_tot, _LANES)

    # Bias for fused image n = b*C + c is bias[c]; f32, lane-aligned.
    bias_n = jnp.tile(bias.astype(jnp.float32), B)
    if n_pad != N:
        bias_n = jnp.pad(bias_n, (0, n_pad - N))
    bias_n = bias_n.reshape(s_tot, _LANES)

    block_bytes = H * W * n_blk * x.dtype.itemsize
    # 2x in + 2x out double-buffered plus headroom for f32 temporaries/spills.
    vmem_limit = min(vmem_cap - (8 << 20), max(64 << 20, 10 * block_bytes))
    vmem_limit = max(vmem_limit, 32 << 20)

    grid_spec = pltpu.PrefetchScalarGridSpec(
        num_scalar_prefetch=0,
        grid=grid,
        in_specs=[
            pl.BlockSpec((s_blk, _LANES), lambda g: (g, 0)),               # bias
            pl.BlockSpec((H, W, s_blk, _LANES), lambda g: (0, 0, g, 0)),   # input
        ],
        out_specs=pl.BlockSpec((H, W, s_blk, _LANES), lambda g: (0, 0, g, 0)),
    )

    out_l = pl.pallas_call(
        _resonance_kernel,
        out_shape=jax.ShapeDtypeStruct((H, W, s_tot, _LANES), x.dtype),
        grid_spec=grid_spec,
        compiler_params=pltpu.CompilerParams(
            dimension_semantics=("parallel",),  # independent lane blocks
            vmem_limit_bytes=int(vmem_limit),
        ),
    )(bias_n, x_l)

    out_l = out_l.reshape(H, W, n_pad)[:, :, :N].reshape(H, W, B, C)
    return jnp.transpose(out_l, (2, 3, 0, 1))


def _reference_forward(x: jax.Array, bias: jax.Array) -> jax.Array:
    """Pure-JAX reference: depthwise conv via lax.conv_general_dilated."""
    C = x.shape[1]
    pattern = jnp.array(PATTERN, dtype=jnp.float32)
    w = jnp.broadcast_to(pattern[None, None, :, :], (C, 1, 3, 3))
    out = lax.conv_general_dilated(
        x.astype(jnp.float32), w,
        window_strides=(1, 1),
        padding=((1, 1), (1, 1)),
        dimension_numbers=("NCHW", "OIHW", "NCHW"),
        feature_group_count=C,
    )
    return out + bias[None, :, None, None]


if __name__ == "__main__":
    B, C, H, W = 2, 4, 16, 16  # dim = C = 4

    key = jax.random.PRNGKey(0)
    kx, kb = jax.random.split(key)
    x = jax.random.normal(kx, (B, C, H, W), dtype=jnp.float32)
    # Deterministic Conv2d-style bias init: uniform(-1/sqrt(fan_in), 1/sqrt(fan_in)), fan_in = 9.
    bound = 1.0 / jnp.sqrt(9.0)
    bias = jax.random.uniform(kb, (C,), minval=-bound, maxval=bound, dtype=jnp.float32)

    out = jax.block_until_ready(resonance_forward(x, bias))

    ref = _reference_forward(x, bias)
    assert out.shape == (B, C, H, W)
    assert out.dtype == x.dtype
    assert jnp.allclose(out, ref, atol=2e-5, rtol=1e-5), float(jnp.max(jnp.abs(out - ref)))

    print("KERNEL_OK")
</pallas_src>

<mosaic_0001>
module attributes {stable_mosaic.version = 11 : i64} {
  func.func @_resonance_kernel(%arg0: i32, %arg1: memref<1x128xf32, #tpu.memory_space<vmem>>, %arg2: memref<16x16x1x128xf32, #tpu.memory_space<vmem>>, %arg3: memref<16x16x1x128xf32, #tpu.memory_space<vmem>>) attributes {dimension_semantics = [#tpu.dimension_semantics<parallel>], iteration_bounds = array<i64: 1>, scalar_prefetch = 0 : i64, scratch_operands = 0 : i64, tpu.core_type = #tpu.core_type<tc>, window_params = [{transform_indices = @transform_0, window_bounds = array<i64: 1, 128>}, {transform_indices = @transform_1, window_bounds = array<i64: 16, 16, 1, 128>}, {transform_indices = @transform_2, window_bounds = array<i64: 16, 16, 1, 128>}]} {
    %c0 = arith.constant 0 : index
    %c0_0 = arith.constant 0 : index
    %c0_1 = arith.constant 0 : index
    %c0_2 = arith.constant 0 : index
    %0 = vector.load %arg2[%c0, %c0_0, %c0_1, %c0_2] : memref<16x16x1x128xf32, #tpu.memory_space<vmem>>, vector<16x16x1x128xf32>
    %cst = arith.constant 0.000000e+00 : f32
    %1 = vector.broadcast %cst : f32 to vector<1x16x1x128xf32>
    %cst_3 = arith.constant 0.000000e+00 : f32
    %2 = vector.broadcast %cst_3 : f32 to vector<16x1x1x128xf32>
    %3 = vector.extract_strided_slice %0 {offsets = [0, 0, 0, 0], sizes = [16, 15, 1, 128], strides = [1, 1, 1, 1]} : vector<16x16x1x128xf32> to vector<16x15x1x128xf32>
    %4 = tpu.concatenate %2, %3 in 1 : vector<16x1x1x128xf32>, vector<16x15x1x128xf32> -> vector<16x16x1x128xf32>
    %5 = vector.extract_strided_slice %0 {offsets = [0, 1, 0, 0], sizes = [16, 15, 1, 128], strides = [1, 1, 1, 1]} : vector<16x16x1x128xf32> to vector<16x15x1x128xf32>
    %6 = tpu.concatenate %5, %2 in 1 : vector<16x15x1x128xf32>, vector<16x1x1x128xf32> -> vector<16x16x1x128xf32>
    %7 = vector.extract_strided_slice %4 {offsets = [0, 0, 0, 0], sizes = [15, 16, 1, 128], strides = [1, 1, 1, 1]} : vector<16x16x1x128xf32> to vector<15x16x1x128xf32>
    %8 = tpu.concatenate %1, %7 in 0 : vector<1x16x1x128xf32>, vector<15x16x1x128xf32> -> vector<16x16x1x128xf32>
    %9 = arith.addf %8, %6 : vector<16x16x1x128xf32>
    %10 = vector.extract_strided_slice %0 {offsets = [1, 0, 0, 0], sizes = [15, 16, 1, 128], strides = [1, 1, 1, 1]} : vector<16x16x1x128xf32> to vector<15x16x1x128xf32>
    %11 = tpu.concatenate %10, %1 in 0 : vector<15x16x1x128xf32>, vector<1x16x1x128xf32> -> vector<16x16x1x128xf32>
    %12 = arith.addf %9, %11 : vector<16x16x1x128xf32>
    %13 = vector.extract_strided_slice %0 {offsets = [0, 0, 0, 0], sizes = [15, 16, 1, 128], strides = [1, 1, 1, 1]} : vector<16x16x1x128xf32> to vector<15x16x1x128xf32>
    %14 = tpu.concatenate %1, %13 in 0 : vector<1x16x1x128xf32>, vector<15x16x1x128xf32> -> vector<16x16x1x128xf32>
    %15 = arith.addf %14, %4 : vector<16x16x1x128xf32>
    %16 = vector.extract_strided_slice %6 {offsets = [1, 0, 0, 0], sizes = [15, 16, 1, 128], strides = [1, 1, 1, 1]} : vector<16x16x1x128xf32> to vector<15x16x1x128xf32>
    %17 = tpu.concatenate %16, %1 in 0 : vector<15x16x1x128xf32>, vector<1x16x1x128xf32> -> vector<16x16x1x128xf32>
    %18 = arith.addf %15, %17 : vector<16x16x1x128xf32>
    %19 = vector.extract_strided_slice %6 {offsets = [0, 0, 0, 0], sizes = [15, 16, 1, 128], strides = [1, 1, 1, 1]} : vector<16x16x1x128xf32> to vector<15x16x1x128xf32>
    %20 = tpu.concatenate %1, %19 in 0 : vector<1x16x1x128xf32>, vector<15x16x1x128xf32> -> vector<16x16x1x128xf32>
    %21 = arith.addf %20, %0 : vector<16x16x1x128xf32>
    %22 = vector.extract_strided_slice %4 {offsets = [1, 0, 0, 0], sizes = [15, 16, 1, 128], strides = [1, 1, 1, 1]} : vector<16x16x1x128xf32> to vector<15x16x1x128xf32>
    %23 = tpu.concatenate %22, %1 in 0 : vector<15x16x1x128xf32>, vector<1x16x1x128xf32> -> vector<16x16x1x128xf32>
    %24 = arith.addf %21, %23 : vector<16x16x1x128xf32>
    %cst_4 = arith.constant 6.180340e-01 : f32
    %25 = vector.broadcast %cst_4 : f32 to vector<16x16x1x128xf32>
    %26 = arith.mulf %25, %12 : vector<16x16x1x128xf32>
    %cst_5 = arith.constant 3.678790e-01 : f32
    %27 = vector.broadcast %cst_5 : f32 to vector<16x16x1x128xf32>
    %28 = arith.mulf %27, %18 : vector<16x16x1x128xf32>
    %29 = arith.addf %26, %28 : vector<16x16x1x128xf32>
    %cst_6 = arith.constant 3.183090e-01 : f32
    %30 = vector.broadcast %cst_6 : f32 to vector<16x16x1x128xf32>
    %31 = arith.mulf %30, %24 : vector<16x16x1x128xf32>
    %32 = arith.addf %29, %31 : vector<16x16x1x128xf32>
    %c0_7 = arith.constant 0 : index
    %c0_8 = arith.constant 0 : index
    %33 = vector.load %arg1[%c0_7, %c0_8] : memref<1x128xf32, #tpu.memory_space<vmem>>, vector<1x128xf32>
    %34 = vector.shape_cast %33 : vector<1x128xf32> to vector<1x1x1x128xf32>
    %35 = vector.broadcast %34 : vector<1x1x1x128xf32> to vector<16x16x1x128xf32>
    %36 = arith.addf %32, %35 : vector<16x16x1x128xf32>
    %c0_9 = arith.constant 0 : index
    %c0_10 = arith.constant 0 : index
    %c0_11 = arith.constant 0 : index
    %c0_12 = arith.constant 0 : index
    %37 = vector.load %arg3[%c0_9, %c0_10, %c0_11, %c0_12] : memref<16x16x1x128xf32, #tpu.memory_space<vmem>>, vector<16x16x1x128xf32>
    tpu.vector_store %arg3[%c0_9, %c0_10, %c0_11, %c0_12], %36 {strides = array<i32>} : memref<16x16x1x128xf32, #tpu.memory_space<vmem>>, vector<16x16x1x128xf32>,
    return
  }
  func.func @transform_0(%arg0: i32) -> (i32, i32) {
    %c0_i32 = arith.constant 0 : i32
    %c0_i32_0 = arith.constant 0 : i32
    return %arg0, %c0_i32 : i32, i32
  }
  func.func @transform_1(%arg0: i32) -> (i32, i32, i32, i32) {
    %c0_i32 = arith.constant 0 : i32
    %c0_i32_0 = arith.constant 0 : i32
    %c0_i32_1 = arith.constant 0 : i32
    %c0_i32_2 = arith.constant 0 : i32
    return %c0_i32, %c0_i32_0, %arg0, %c0_i32_1 : i32, i32, i32, i32
  }
  func.func @transform_2(%arg0: i32) -> (i32, i32, i32, i32) {
    %c0_i32 = arith.constant 0 : i32
    %c0_i32_0 = arith.constant 0 : i32
    %c0_i32_1 = arith.constant 0 : i32
    %c0_i32_2 = arith.constant 0 : i32
    return %c0_i32, %c0_i32_0, %arg0, %c0_i32_1 : i32, i32, i32, i32
  }
}

</mosaic_0001>

<bundles_post_ra>
// kernel: tile.8
= control target key start
LH: loop header
LB: loop body
LE: loop exit
PB: predicated region body
PF: predicated region fallthrough
CT: control target
= control target key end

     0   :  { %s22_s0 = inlined_call_operand.vmem [shape: f32[4], index: 0, kind: input, shape index: {}]   ;;  %s23_s1 = inlined_call_operand.vmem [shape: f32[2,4], index: 1, kind: output, shape index: {}]  }
   0x1   :  { %v4_v0 = vld [vmem:[%s22_s0] ss:$0 sm:$0xff] }
   0x2   :  { %5 = vst [vmem:[%s23_s1] sm:$0x3] %v4_v0 }

// kernel: tile.9
= control target key start
LH: loop header
LB: loop body
LE: loop exit
PB: predicated region body
PF: predicated region fallthrough
CT: control target
= control target key end

     0   :  { %vm7_vm0 = vcmask 31744   ;;  %vm13_vm1 = vcmask 64544   ;;  %s39_s0 = inlined_call_operand.vmem [shape: f32[2,4], index: 0, kind: input, shape index: {}]   ;;  %s40_s1 = inlined_call_operand.vmem [shape: f32[8], index: 1, kind: output, shape index: {}]  }
   0x1   :  { %v4_v0 = vld [vmem:[%s39_s0] sm:$0x3]  ;;  %s22_s0 = smov 4  }
   0x2   :  { %5 = vst [vmem:[#allocation1] sm:$0x3] %v4_v0 }
   0x9   :  { %v10_v1 = vld [vmem:[#allocation1 + $0x1] sm:$0x1]   ;;  %v6_v2 = vld [vmem:[#allocation1] sm:$0x1]  }
   0xa   :  { %11 = vrot.lane.b32.xlu0 %v10_v1, %s22_s0  ;;  %8 = vst.msk [vmem:[#allocation0] sm:$0x1] %vm7_vm0, %v6_v2  }
  0x7c   :  { %v12_v3 = vpop.permute.xlu0 %11  }
  0x7d   :  { %14 = vst.msk [vmem:[#allocation0] sm:$0x1] %vm13_vm1, %v12_v3  }
  0x84   :  { %v17_v4 = vld [vmem:[#allocation0] sm:$0x1] }
  0x85   :  { %20 = vst [vmem:[%s40_s1] sm:$0x1] %v17_v4 }

// kernel: resonance_forward.1
= control target key start
LH: loop header
LB: loop body
LE: loop exit
PB: predicated region body
PF: predicated region fallthrough
CT: control target
= control target key end

     0   :  { %s7418_s1 = inlined_call_operand.vmem [shape: f32[16,16,1,128], index: 1, kind: input, shape index: {}]   ;;  %s7419_s0 = inlined_call_operand.vmem [shape: f32[1,128], index: 0, kind: input, shape index: {}]   ;;  %s7420_s2 = inlined_call_operand.vmem [shape: f32[16,16,1,128], index: 2, kind: output, shape index: {}]  }
   0x1   :  { %v3332_v0 = vld [vmem:[%s7418_s1] sm:$0x1]  ;;  %v12_v1 = vld [vmem:[%s7418_s1 + $0x1] sm:$0x1]  ;;  %v3340_v2 = vld [vmem:[%s7418_s1 + $0x10] sm:$0x1] }
   0x2   :  { %v3345_v3 = vld [vmem:[%s7418_s1 + $0x11] sm:$0x1]  ;;  %v3348_v4 = vadd.f32 %v3340_v2, %v12_v1  ;;  %v2280_v5 = vmul.f32 0.318309, %v3332_v0  ;;  %v13_v7 = vld [vmem:[%s7418_s1 + $0x2] sm:$0x1] }
   0x3   :  { %v1768_v6 = vmul.f32 0.367879, %v3345_v3  ;;  %v3358_v8 = vld [vmem:[%s7418_s1 + $0x12] sm:$0x1]  ;;  %v3366_v11 = vadd.f32 %v3345_v3, %v13_v7  ;;  %v14_v13 = vld [vmem:[%s7418_s1 + $0x3] sm:$0x1] }
   0x4   :  { %v1512_v9 = vmul.f32 0.618034, %v3348_v4  ;;  %v3363_v10 = vadd.f32 %v3358_v8, %v3332_v0  ;;  %v3369_v12 = vmul.f32 0.318309, %v3348_v4  ;;  %v3377_v14 = vld [vmem:[%s7419_s0] sm:$0x1]  ;;  %v3385_v16 = vadd.f32 %v3358_v8, %v14_v13 }
   0x5   :  { %v3382_v15 = vld [vmem:[%s7418_s1 + $0x13] sm:$0x1]  ;;  %v15_v17 = vld [vmem:[%s7418_s1 + $0x4] sm:$0x1]  ;;  %v3393_v18 = vld [vmem:[%s7418_s1 + $0x14] sm:$0x1] }
   0x6   :  { %v2024_v19 = vadd.f32 %v1768_v6, %v1512_v9  ;;  %v1513_v20 = vmul.f32 0.618034, %v3366_v11  ;;  %v1769_v21 = vmul.f32 0.367879, %v3363_v10  ;;  %v3398_v22 = vadd.f32 %v3382_v15, %v12_v1  ;;  %v16_v23 = vld [vmem:[%s7418_s1 + $0x5] sm:$0x1] }
   0x7   :  { %v1514_v24 = vmul.f32 0.618034, %v3385_v16  ;;  %v2282_v25 = vmul.f32 0.318309, %v3366_v11  ;;  %v3406_v26 = vadd.f32 %v3393_v18, %v13_v7  ;;  %v3409_v27 = vadd.f32 %v3382_v15, %v15_v17  ;;  %v3414_v28 = vld [vmem:[%s7418_s1 + $0x15] sm:$0x1] }
   0x8   :  { %v2536_v29 = vadd.f32 %v2280_v5, %v2024_v19  ;;  %v2025_v30 = vadd.f32 %v1769_v21, %v1513_v20  ;;  %v1770_v31 = vmul.f32 0.367879, %v3398_v22  ;;  %v2283_v32 = vmul.f32 0.318309, %v3385_v16  ;;  %v17_v33 = vld [vmem:[%s7418_s1 + $0x6] sm:$0x1] }
   0x9   :  { %v1515_v34 = vmul.f32 0.618034, %v3409_v27  ;;  %v1771_v35 = vmul.f32 0.367879, %v3406_v26  ;;  %v3424_v36 = vadd.f32 %v3414_v28, %v14_v13  ;;  %v3427_v37 = vadd.f32 %v3393_v18, %v16_v23  ;;  %v3432_v38 = vld [vmem:[%s7418_s1 + $0x16] sm:$0x1] }
   0xa   :  { %v2793_v39 = vadd.f32 %v3377_v14, %v2536_v29  ;;  %v2537_v40 = vadd.f32 %v3369_v12, %v2025_v30  ;;  %v2026_v41 = vadd.f32 %v1770_v31, %v1514_v24  ;;  %v2284_v42 = vmul.f32 0.318309, %v3409_v27  ;;  %v18_v43 = vld [vmem:[%s7418_s1 + $0x7] sm:$0x1]  ;;  %v3443_v44 = vld [vmem:[%s7418_s1 + $0x17] sm:$0x1] }
   0xb   :  { %v2027_v45 = vadd.f32 %v1771_v35, %v1515_v34  ;;  %v1516_v46 = vmul.f32 0.618034, %v3427_v37  ;;  %v1772_v47 = vmul.f32 0.367879, %v3424_v36  ;;  %v3448_v48 = vadd.f32 %v3432_v38, %v15_v17  ;;  %v19_v49 = vld [vmem:[%s7418_s1 + $0x8] sm:$0x1] }
   0xc   :  { %3049 = vst [vmem:[%s7420_s2] sm:$0x1] %v2793_v39  ;;  %v2794_v50 = vadd.f32 %v3377_v14, %v2537_v40  ;;  %v2538_v51 = vadd.f32 %v2282_v25, %v2026_v41  ;;  %v3458_v52 = vadd.f32 %v3414_v28, %v17_v33  ;;  %v2285_v53 = vmul.f32 0.318309, %v3427_v37  ;;  %v3464_v54 = vld [vmem:[%s7418_s1 + $0x18] sm:$0x1] }
   0xd   :  { %v2539_v55 = vadd.f32 %v2283_v32, %v2027_v45  ;;  %v2028_v56 = vadd.f32 %v1772_v47, %v1516_v46  ;;  %v1773_v57 = vmul.f32 0.367879, %v3448_v48  ;;  %v3468_v58 = vadd.f32 %v3443_v44, %v16_v23  ;;  %v20_v59 = vld [vmem:[%s7418_s1 + $0x9] sm:$0x1]  ;;  %v3476_v60 = vld [vmem:[%s7418_s1 + $0x19] sm:$0x1] }
   0xe   :  { %7433 = vst [vmem:[#allocation2_spill] sm:$0xff] %v3476_v60  ;;  %v2795_v61 = vadd.f32 %v3377_v14, %v2538_v51  ;;  %v1517_v62 = vmul.f32 0.618034, %v3458_v52  ;;  %v3484_v63 = vadd.f32 %v3432_v38, %v18_v43  ;;  %v2286_v1 = vmul.f32 0.318309, %v3458_v52 }
   0xf   :  { %3050 = vst [vmem:[%s7420_s2 + $0x1] sm:$0x1] %v2794_v50  ;;  %v2796_v5 = vadd.f32 %v3377_v14, %v2539_v55  ;;  %v2540_v6 = vadd.f32 %v2284_v42, %v2028_v56  ;;  %v1774_v7 = vmul.f32 0.367879, %v3468_v58  ;;  %v3490_v9 = vadd.f32 %v3464_v54, %v17_v33  ;;  %v21_v13 = vld [vmem:[%s7418_s1 + $0xa] sm:$0x1] }
  0x10   :  { %v3498_v17 = vld [vmem:[%s7418_s1 + $0x1a] sm:$0x1]  ;;  %3051 = vst [vmem:[%s7420_s2 + $0x2] sm:$0x1] %v2795_v61  ;;  %v2029_v19 = vadd.f32 %v1773_v57, %v1517_v62  ;;  %v1518_v20 = vmul.f32 0.618034, %v3484_v63  ;;  %v3505_v21 = vadd.f32 %v3443_v44, %v19_v49  ;;  %v3514_v29 = vadd.f32 %v3476_v60, %v18_v43 }
  0x11   :  { %7434 = vst [vmem:[#allocation3_spill] sm:$0xff] %v3498_v17  ;;  %v2287_v23 = vmul.f32 0.318309, %v3484_v63  ;;  %v2797_v24 = vadd.f32 %v3377_v14, %v2540_v6  ;;  %v1775_v25 = vmul.f32 0.367879, %v3490_v9  ;;  %v3517_v30 = vadd.f32 %v3464_v54, %v20_v59 }
  0x12   :  { %3052 = vst [vmem:[%s7420_s2 + $0x3] sm:$0x1] %v2796_v5  ;;  %v22_v31 = vld [vmem:[%s7418_s1 + $0xb] sm:$0x1]  ;;  %v2541_v32 = vadd.f32 %v2285_v53, %v2029_v19  ;;  %v2030_v33 = vadd.f32 %v1774_v7, %v1518_v20  ;;  %v1519_v34 = vmul.f32 0.618034, %v3505_v21  ;;  %v3535_v42 = vadd.f32 %v3498_v17, %v19_v49 }
  0x13   :  { %v2288_v35 = vmul.f32 0.318309, %v3505_v21  ;;  %v3527_v39 = vld [vmem:[%s7418_s1 + $0x1b] sm:$0x1]  ;;  %3053 = vst [vmem:[%s7420_s2 + $0x4] sm:$0x1] %v2797_v24  ;;  %v3538_v43 = vadd.f32 %v3476_v60, %v21_v13  ;;  %v3563_v5 = vadd.f32 %v3498_v17, %v22_v31 }
  0x14   :  { %7435 = vst [vmem:[#allocation4_spill] sm:$0xff] %v3527_v39  ;;  %v1520_v40 = vmul.f32 0.618034, %v3517_v30  ;;  %v1776_v41 = vmul.f32 0.367879, %v3514_v29  ;;  %v2798_v45 = vadd.f32 %v3377_v14, %v2541_v32  ;;  %v2542_v46 = vadd.f32 %v2286_v1, %v2030_v33 }
  0x15   :  { %v2031_v47 = vadd.f32 %v1775_v25, %v1519_v34  ;;  %v2289_v50 = vmul.f32 0.318309, %v3517_v30  ;;  %v23_v51 = vld [vmem:[%s7418_s1 + $0xc] sm:$0x1]  ;;  %v3548_v53 = vld [vmem:[%s7418_s1 + $0x1c] sm:$0x1]  ;;  %v3553_v57 = vadd.f32 %v3527_v39, %v20_v59 }
  0x16   :  { %7436 = vst [vmem:[#allocation5_spill] sm:$0xff] %v3548_v53  ;;  %v2032_v49 = vadd.f32 %v1776_v41, %v1520_v40  ;;  %v1521_v55 = vmul.f32 0.618034, %v3538_v43  ;;  %v1777_v56 = vmul.f32 0.367879, %v3535_v42  ;;  %v2799_v62 = vadd.f32 %v3377_v14, %v2542_v46 }
  0x17   :  { %v24_v61 = vld [vmem:[%s7418_s1 + $0xd] sm:$0x1]  ;;  %3054 = vst [vmem:[%s7420_s2 + $0x5] sm:$0x1] %v2798_v45  ;;  %v2543_v1 = vadd.f32 %v2287_v23, %v2031_v47  ;;  %v2290_v6 = vmul.f32 0.318309, %v3538_v43  ;;  %v3573_v24 = vadd.f32 %v3548_v53, %v21_v13  ;;  %v3591_v13 = vadd.f32 %v3527_v39, %v23_v51 }
  0x18   :  { %v3569_v59 = vld [vmem:[%s7418_s1 + $0x1d] sm:$0x1]  ;;  %v2544_v7 = vadd.f32 %v2288_v35, %v2032_v49  ;;  %v2033_v19 = vadd.f32 %v1777_v56, %v1521_v55  ;;  %v1778_v20 = vmul.f32 0.367879, %v3553_v57  ;;  %v3578_v23 = vld [vmem:[%s7418_s1 + $0xe] sm:$0x1]  ;;  %v3612_v55 = vadd.f32 %v3548_v53, %v24_v61 }
  0x19   :  { %7437 = vst [vmem:[#allocation6_spill] sm:$0xff] %v3569_v59  ;;  %v3583_v25 = vld [vmem:[%s7418_s1 + $0x1e] sm:$0x1]  ;;  %v2800_v32 = vadd.f32 %v3377_v14, %v2543_v1  ;;  %v1522_v33 = vmul.f32 0.618034, %v3563_v5  ;;  %v3597_v45 = vadd.f32 %v3569_v59, %v22_v31 }
  0x1a   :  { %7438 = vst [vmem:[#allocation7_spill] sm:$0xff] %v3583_v25  ;;  %v2291_v34 = vmul.f32 0.318309, %v3563_v5  ;;  %v2801_v35 = vadd.f32 %v3377_v14, %v2544_v7  ;;  %v2545_v40 = vadd.f32 %v2289_v50, %v2033_v19  ;;  %v1779_v41 = vmul.f32 0.367879, %v3573_v24 }
  0x1b   :  { %3055 = vst [vmem:[%s7420_s2 + $0x6] sm:$0x1] %v2799_v62  ;;  %v26_v46 = vld [vmem:[%s7418_s1 + $0xf] sm:$0x1]  ;;  %v3605_v47 = vld [vmem:[%s7418_s1 + $0x1f] sm:$0x1]  ;;  %v2034_v49 = vadd.f32 %v1778_v20, %v1522_v33  ;;  %v3621_v1 = vadd.f32 %v3583_v25, %v23_v51  ;;  %v3625_v7 = vadd.f32 %v3569_v59, %v3578_v23 }
  0x1c   :  { %3056 = vst [vmem:[%s7420_s2 + $0x7] sm:$0x1] %v2800_v32  ;;  %v1523_v50 = vmul.f32 0.618034, %v3591_v13  ;;  %v2292_v31 = vmul.f32 0.318309, %v3591_v13  ;;  %v2802_v56 = vadd.f32 %v3377_v14, %v2545_v40  ;;  %v3635_v51 = vadd.f32 %v3605_v47, %v24_v61 }
  0x1d   :  { %3057 = vst [vmem:[%s7420_s2 + $0x8] sm:$0x1] %v2801_v35  ;;  %v1780_v62 = vmul.f32 0.367879, %v3597_v45  ;;  %v2546_v19 = vadd.f32 %v2290_v6, %v2034_v49  ;;  %v1524_v32 = vmul.f32 0.618034, %v3612_v55  ;;  %v3638_v59 = vadd.f32 %v3583_v25, %v26_v46 }
  0x1e   :  { %v2035_v20 = vadd.f32 %v1779_v41, %v1523_v50  ;;  %v2293_v33 = vmul.f32 0.318309, %v3612_v55  ;;  %3058 = vst [vmem:[%s7420_s2 + $0x9] sm:$0x1] %v2802_v56  ;;  %v1525_v35 = vmul.f32 0.618034, %v3625_v7 }
  0x1f   :  { %v1781_v40 = vmul.f32 0.367879, %v3621_v1  ;;  %v2803_v6 = vadd.f32 %v3377_v14, %v2546_v19  ;;  %v2036_v49 = vadd.f32 %v1780_v62, %v1524_v32  ;;  %v2294_v50 = vmul.f32 0.318309, %v3625_v7  ;;  %v3645_v56 = vld [vmem:[%s7418_s1 + $0x20] sm:$0x1] }
  0x20   :  { %v2547_v41 = vadd.f32 %v2291_v34, %v2035_v20  ;;  %v3650_v53 = vld [vmem:[%s7418_s1 + $0x21] sm:$0x1]  ;;  %v1526_v46 = vmul.f32 0.618034, %v3638_v59  ;;  %v1782_v25 = vmul.f32 0.367879, %v3635_v51 }
  0x21   :  { %v2037_v61 = vadd.f32 %v1781_v40, %v1525_v35  ;;  %v1527_v34 = vmul.f32 0.618034, %v3605_v47  ;;  %3059 = vst [vmem:[%s7420_s2 + $0xa] sm:$0x1] %v2803_v6  ;;  %v2548_v19 = vadd.f32 %v2292_v31, %v2036_v49  ;;  %v1783_v20 = vmul.f32 0.367879, %v3578_v23 }
  0x22   :  { %v2804_v62 = vadd.f32 %v3377_v14, %v2547_v41  ;;  %v2295_v32 = vmul.f32 0.318309, %v3638_v59  ;;  %v2038_v17 = vadd.f32 %v1782_v25, %v1526_v46  ;;  %v3663_v35 = vadd.f32 %v3645_v56, %v3345_v3  ;;  %v3670_v6 = vld [vmem:[%s7418_s1 + $0x22] sm:$0x1]  ;;  %v3685_v60 = vld [vmem:[%s7418_s1 + $0x23] sm:$0x1] }
  0x23   :  { %v2549_v39 = vadd.f32 %v2293_v33, %v2037_v61  ;;  %v1032_v40 = vadd.f32 %v3650_v53, %v3332_v0  ;;  %v2805_v31 = vadd.f32 %v3377_v14, %v2548_v19  ;;  %v2039_v33 = vadd.f32 %v1783_v20, %v1527_v34 }
  0x24   :  { %3060 = vst [vmem:[%s7420_s2 + $0xb] sm:$0x1] %v2804_v62  ;;  %v538_v25 = vadd.f32 %v3363_v10, %v3650_v53  ;;  %v1033_v41 = vadd.f32 %v3348_v4, %v3670_v6  ;;  %v2550_v49 = vadd.f32 %v2294_v50, %v2038_v17  ;;  %v1528_v61 = vmul.f32 0.618034, %v3663_v35 }
  0x25   :  { %v2806_v0 = vadd.f32 %v3377_v14, %v2549_v39  ;;  %v1784_v46 = vmul.f32 0.367879, %v1032_v40  ;;  %3061 = vst [vmem:[%s7420_s2 + $0xc] sm:$0x1] %v2805_v31  ;;  %v2551_v34 = vadd.f32 %v2295_v32, %v2039_v33  ;;  %v1288_v10 = vadd.f32 %v3366_v11, %v3645_v56  ;;  %v3706_v33 = vld [vmem:[%s7418_s1 + $0x24] sm:$0x1] }
  0x26   :  { %v1529_v4 = vmul.f32 0.618034, %v538_v25  ;;  %v1785_v62 = vmul.f32 0.367879, %v1033_v41  ;;  %v2807_v17 = vadd.f32 %v3377_v14, %v2550_v49  ;;  %v539_v50 = vadd.f32 %v3398_v22, %v3670_v6 }
  0x27   :  { %3062 = vst [vmem:[%s7420_s2 + $0xd] sm:$0x1] %v2806_v0  ;;  %v2040_v39 = vadd.f32 %v1784_v46, %v1528_v61  ;;  %v1034_v19 = vadd.f32 %v3366_v11, %v3685_v60  ;;  %v2808_v20 = vadd.f32 %v3377_v14, %v2551_v34  ;;  %v2297_v40 = vmul.f32 0.318309, %v1288_v10 }
  0x28   :  { %v2041_v32 = vadd.f32 %v1785_v62, %v1529_v4  ;;  %v1289_v31 = vadd.f32 %v3385_v16, %v3650_v53  ;;  %3063 = vst [vmem:[%s7420_s2 + $0xe] sm:$0x1] %v2807_v17  ;;  %v1530_v25 = vmul.f32 0.618034, %v539_v50  ;;  %v540_v41 = vadd.f32 %v3406_v26, %v3685_v60  ;;  %v3725_v26 = vld [vmem:[%s7418_s1 + $0x25] sm:$0x1] }
  0x29   :  { %v2552_v22 = vadd.f32 %v3369_v12, %v2040_v39  ;;  %v1786_v11 = vmul.f32 0.367879, %v1034_v19  ;;  %3064 = vst [vmem:[%s7420_s2 + $0xf] sm:$0x1] %v2808_v20  ;;  %v1035_v61 = vadd.f32 %v3385_v16, %v3706_v33  ;;  %v1290_v46 = vadd.f32 %v3409_v27, %v3670_v6 }
  0x2a   :  { %v2553_v0 = vadd.f32 %v2297_v40, %v2041_v32  ;;  %v2298_v49 = vmul.f32 0.318309, %v1289_v31  ;;  %v1531_v10 = vmul.f32 0.618034, %v540_v41  ;;  %v541_v4 = vadd.f32 %v3424_v36, %v3706_v33  ;;  %v3740_v36 = vld [vmem:[%s7418_s1 + $0x26] sm:$0x1] }
  0x2b   :  { %v2809_v34 = vadd.f32 %v3377_v14, %v2552_v22  ;;  %v2042_v12 = vadd.f32 %v1786_v11, %v1530_v25  ;;  %v1787_v17 = vmul.f32 0.367879, %v1035_v61  ;;  %v2299_v39 = vmul.f32 0.318309, %v1290_v46 }
  0x2c   :  { %v2810_v62 = vadd.f32 %v3377_v14, %v2553_v0  ;;  %v1036_v16 = vadd.f32 %v3409_v27, %v3725_v26  ;;  %v1291_v19 = vadd.f32 %v3427_v37, %v3685_v60  ;;  %v1532_v20 = vmul.f32 0.618034, %v541_v4 }
  0x2d   :  { %3065 = vst [vmem:[%s7420_s2 + $0x10] sm:$0x1] %v2809_v34  ;;  %v2554_v50 = vadd.f32 %v2298_v49, %v2042_v12  ;;  %v542_v32 = vadd.f32 %v3448_v48, %v3725_v26  ;;  %v2043_v27 = vadd.f32 %v1787_v17, %v1531_v10  ;;  %v1037_v31 = vadd.f32 %v3427_v37, %v3740_v36  ;;  %v3757_v34 = vld [vmem:[%s7418_s1 + $0x27] sm:$0x1]  ;;  %v3769_v10 = vld [vmem:[%s7418_s1 + $0x28] sm:$0x1] }
  0x2e   :  { %3066 = vst [vmem:[%s7420_s2 + $0x11] sm:$0x1] %v2810_v62  ;;  %v1788_v40 = vmul.f32 0.367879, %v1036_v16  ;;  %v1292_v22 = vadd.f32 %v3458_v52, %v3706_v33  ;;  %v2300_v11 = vmul.f32 0.318309, %v1291_v19  ;;  %v543_v0 = vadd.f32 %v3468_v58, %v3740_v36 }
  0x2f   :  { %v2811_v25 = vadd.f32 %v3377_v14, %v2554_v50  ;;  %v1533_v41 = vmul.f32 0.618034, %v542_v32  ;;  %v2555_v48 = vadd.f32 %v2299_v39, %v2043_v27  ;;  %v1789_v61 = vmul.f32 0.367879, %v1037_v31 }
  0x30   :  { %v2044_v49 = vadd.f32 %v1788_v40, %v1532_v20  ;;  %v2301_v46 = vmul.f32 0.318309, %v1292_v22  ;;  %v1038_v37 = vadd.f32 %v3458_v52, %v3757_v34  ;;  %v1293_v12 = vadd.f32 %v3484_v63, %v3725_v26  ;;  %v3785_v40 = vld [vmem:[%s7418_s1 + $0x29] sm:$0x1] }
  0x31   :  { %3067 = vst [vmem:[%s7420_s2 + $0x12] sm:$0x1] %v2811_v25  ;;  %v1534_v58 = vmul.f32 0.618034, %v543_v0  ;;  %v544_v4 = vadd.f32 %v3490_v9, %v3757_v34  ;;  %v2812_v62 = vadd.f32 %v3377_v14, %v2555_v48  ;;  %v2045_v39 = vadd.f32 %v1789_v61, %v1533_v41 }
  0x32   :  { %v2556_v17 = vadd.f32 %v2300_v11, %v2044_v49  ;;  %v1039_v16 = vadd.f32 %v3484_v63, %v3769_v10  ;;  %v1790_v52 = vmul.f32 0.367879, %v1038_v37  ;;  %v2302_v50 = vmul.f32 0.318309, %v1293_v12 }
  0x33   :  { %v1294_v19 = vadd.f32 %v3505_v21, %v3740_v36  ;;  %v1535_v20 = vmul.f32 0.618034, %v544_v4  ;;  %3068 = vst [vmem:[%s7420_s2 + $0x13] sm:$0x1] %v2812_v62  ;;  %v2557_v9 = vadd.f32 %v2301_v46, %v2045_v39  ;;  %v545_v63 = vadd.f32 %v3514_v29, %v3769_v10  ;;  %v3800_v29 = vld [vmem:[%s7418_s1 + $0x2a] sm:$0x1] }
  0x34   :  { %v2813_v32 = vadd.f32 %v3377_v14, %v2556_v17  ;;  %v1791_v27 = vmul.f32 0.367879, %v1039_v16  ;;  %v2046_v31 = vadd.f32 %v1790_v52, %v1534_v58  ;;  %v1040_v25 = vadd.f32 %v3505_v21, %v3785_v40  ;;  %v3814_v62 = vld [vmem:[%s7418_s1 + $0x2b] sm:$0x1] }
  0x35   :  { %v2303_v22 = vmul.f32 0.318309, %v1294_v19  ;;  %v1295_v11 = vadd.f32 %v3517_v30, %v3757_v34  ;;  %v2814_v41 = vadd.f32 %v3377_v14, %v2557_v9  ;;  %v1536_v48 = vmul.f32 0.618034, %v545_v63 }
  0x36   :  { %3069 = vst [vmem:[%s7420_s2 + $0x14] sm:$0x1] %v2813_v32  ;;  %v2047_v0 = vadd.f32 %v1791_v27, %v1535_v20  ;;  %v546_v49 = vadd.f32 %v3535_v42, %v3785_v40  ;;  %v2558_v21 = vadd.f32 %v2302_v50, %v2046_v31  ;;  %v1792_v61 = vmul.f32 0.367879, %v1040_v25  ;;  %v3830_v27 = vld [vmem:[%s7418_s1 + $0x2c] sm:$0x1] }
  0x37   :  { %v2304_v46 = vmul.f32 0.318309, %v1295_v11  ;;  %v1041_v37 = vadd.f32 %v3517_v30, %v3800_v29  ;;  %3070 = vst [vmem:[%s7420_s2 + $0x15] sm:$0x1] %v2814_v41  ;;  %v1296_v58 = vadd.f32 %v3538_v43, %v3769_v10  ;;  %v547_v42 = vadd.f32 %v3553_v57, %v3800_v29 }
  0x38   :  { %v2559_v12 = vadd.f32 %v2303_v22, %v2047_v0  ;;  %v1537_v4 = vmul.f32 0.618034, %v546_v49  ;;  %v2815_v17 = vadd.f32 %v3377_v14, %v2558_v21  ;;  %v2048_v30 = vadd.f32 %v1792_v61, %v1536_v48 }
  0x39   :  { %v1793_v39 = vmul.f32 0.367879, %v1041_v37  ;;  %v1042_v16 = vadd.f32 %v3538_v43, %v3814_v62  ;;  %v2305_v50 = vmul.f32 0.318309, %v1296_v58  ;;  %v1297_v19 = vadd.f32 %v3563_v5, %v3785_v40 }
  0x3a   :  { %v2816_v52 = vadd.f32 %v3377_v14, %v2559_v12  ;;  %v1538_v20 = vmul.f32 0.618034, %v547_v42  ;;  %3071 = vst [vmem:[%s7420_s2 + $0x16] sm:$0x1] %v2815_v17  ;;  %v2560_v32 = vadd.f32 %v2304_v46, %v2048_v30  ;;  %v548_v43 = vadd.f32 %v3573_v24, %v3814_v62  ;;  %v3847_v24 = vld [vmem:[%s7418_s1 + $0x2d] sm:$0x1] }
  0x3b   :  { %v2049_v57 = vadd.f32 %v1793_v39, %v1537_v4  ;;  %v1794_v9 = vmul.f32 0.367879, %v1042_v16  ;;  %v2306_v63 = vmul.f32 0.318309, %v1297_v19  ;;  %v1043_v31 = vadd.f32 %v3563_v5, %v3830_v27  ;;  %v3860_v12 = vld [vmem:[%s7418_s1 + $0x2e] sm:$0x1] }
  0x3c   :  { %3072 = vst [vmem:[%s7420_s2 + $0x17] sm:$0x1] %v2816_v52  ;;  %v1298_v22 = vadd.f32 %v3591_v13, %v3800_v29  ;;  %v549_v25 = vadd.f32 %v3597_v45, %v3830_v27  ;;  %v2817_v11 = vadd.f32 %v3377_v14, %v2560_v32  ;;  %v1539_v48 = vmul.f32 0.618034, %v548_v43  ;;  %v3884_v32 = vld [vmem:[%s7418_s1 + $0x30] sm:$0x1] }
  0x3d   :  { %v2561_v41 = vadd.f32 %v2305_v50, %v2049_v57  ;;  %v2050_v0 = vadd.f32 %v1794_v9, %v1538_v20  ;;  %v1795_v49 = vmul.f32 0.367879, %v1043_v31  ;;  %v1044_v5 = vadd.f32 %v3591_v13, %v3847_v24 }
  0x3e   :  { %v2307_v21 = vmul.f32 0.318309, %v1298_v22  ;;  %v1299_v61 = vadd.f32 %v3612_v55, %v3814_v62  ;;  %3073 = vst [vmem:[%s7420_s2 + $0x18] sm:$0x1] %v2817_v11  ;;  %v1540_v37 = vmul.f32 0.618034, %v549_v25  ;;  %v550_v58 = vadd.f32 %v3621_v1, %v3847_v24 }
  0x3f   :  { %v2818_v45 = vadd.f32 %v3377_v14, %v2561_v41  ;;  %v2562_v46 = vadd.f32 %v2306_v63, %v2050_v0  ;;  %v2051_v13 = vadd.f32 %v1795_v49, %v1539_v48  ;;  %v1796_v4 = vmul.f32 0.367879, %v1044_v5  ;;  %v3875_v1 = vld [vmem:[%s7418_s1 + $0x2f] sm:$0x1] }
  0x40   :  { %v2308_v42 = vmul.f32 0.318309, %v1299_v61  ;;  %v1045_v17 = vadd.f32 %v3612_v55, %v3860_v12  ;;  %v1300_v39 = vadd.f32 %v3625_v7, %v3830_v27  ;;  %v1541_v16 = vmul.f32 0.618034, %v550_v58 }
  0x41   :  { %3074 = vst [vmem:[%s7420_s2 + $0x19] sm:$0x1] %v2818_v45  ;;  %v2819_v30 = vadd.f32 %v3377_v14, %v2562_v46  ;;  %v551_v52 = vadd.f32 %v3635_v51, %v3860_v12  ;;  %v2563_v50 = vadd.f32 %v2307_v21, %v2051_v13  ;;  %v2052_v55 = vadd.f32 %v1796_v4, %v1540_v37  ;;  %v3906_v21 = vld [vmem:[%s7418_s1 + $0x31] sm:$0x1]  ;;  %v3924_v13 = vld [vmem:[%s7418_s1 + $0x32] sm:$0x1] }
  0x42   :  { %v1797_v19 = vmul.f32 0.367879, %v1045_v17  ;;  %v1046_v20 = vadd.f32 %v3625_v7, %v3875_v1  ;;  %v2309_v57 = vmul.f32 0.318309, %v1300_v39  ;;  %v1301_v9 = vadd.f32 %v3638_v59, %v3847_v24 }
  0x43   :  { %3075 = vst [vmem:[%s7420_s2 + $0x1a] sm:$0x1] %v2819_v30  ;;  %v1542_v51 = vmul.f32 0.618034, %v551_v52  ;;  %v552_v43 = vadd.f32 %v3875_v1, %v3578_v23  ;;  %v2820_v63 = vadd.f32 %v3377_v14, %v2563_v50  ;;  %v2564_v7 = vadd.f32 %v2308_v42, %v2052_v55 }
  0x44   :  { %v2053_v31 = vadd.f32 %v1797_v19, %v1541_v16  ;;  %v1798_v22 = vmul.f32 0.367879, %v1046_v20  ;;  %v2310_v25 = vmul.f32 0.318309, %v1301_v9  ;;  %v3896_v11 = vadd.f32 %v3860_v12, %v3605_v47 }
  0x45   :  { %v1543_v41 = vmul.f32 0.618034, %v552_v43  ;;  %v1799_v0 = vmul.f32 0.367879, %v3638_v59  ;;  %3076 = vst [vmem:[%s7420_s2 + $0x1b] sm:$0x1] %v2820_v63  ;;  %v2821_v48 = vadd.f32 %v3377_v14, %v2564_v7  ;;  %v3910_v47 = vadd.f32 %v3884_v32, %v3650_v53 }
  0x46   :  { %v2565_v23 = vadd.f32 %v2309_v57, %v2053_v31  ;;  %v2054_v49 = vadd.f32 %v1798_v22, %v1542_v51  ;;  %v2311_v59 = vmul.f32 0.318309, %v3896_v11  ;;  %v1048_v61 = vadd.f32 %v3906_v21, %v3340_v2  ;;  %v3946_v57 = vld [vmem:[%s7418_s1 + $0x33] sm:$0x1]  ;;  %v3960_v31 = vld [vmem:[%s7418_s1 + $0x34] sm:$0x1] }
  0x47   :  { %v2055_v5 = vadd.f32 %v1799_v0, %v1543_v41  ;;  %v2312_v45 = vmul.f32 0.318309, %v3663_v35  ;;  %3077 = vst [vmem:[%s7420_s2 + $0x1c] sm:$0x1] %v2821_v48  ;;  %v1544_v58 = vmul.f32 0.618034, %v3910_v47  ;;  %v298_v4 = vadd.f32 %v3670_v6, %v3340_v2 }
  0x48   :  { %v2822_v46 = vadd.f32 %v3377_v14, %v2565_v23  ;;  %v2566_v37 = vadd.f32 %v2310_v25, %v2054_v49  ;;  %v1800_v17 = vmul.f32 0.367879, %v1048_v61  ;;  %v795_v30 = vadd.f32 %v3650_v53, %v3358_v8 }
  0x49   :  { %v2567_v42 = vadd.f32 %v2311_v59, %v2055_v5  ;;  %v1049_v39 = vadd.f32 %v3663_v35, %v3924_v13  ;;  %v554_v52 = vadd.f32 %v298_v4, %v3906_v21  ;;  %v299_v50 = vadd.f32 %v3685_v60, %v3345_v3 }
  0x4a   :  { %3078 = vst [vmem:[%s7420_s2 + $0x1d] sm:$0x1] %v2822_v46  ;;  %v2823_v16 = vadd.f32 %v3377_v14, %v2566_v37  ;;  %v796_v2 = vadd.f32 %v3670_v6, %v3382_v15  ;;  %v2056_v19 = vadd.f32 %v1800_v17, %v1544_v58  ;;  %v1304_v20 = vadd.f32 %v795_v30, %v3884_v32 }
  0x4b   :  { %v2824_v55 = vadd.f32 %v3377_v14, %v2567_v42  ;;  %v1801_v35 = vmul.f32 0.367879, %v1049_v39  ;;  %v1545_v9 = vmul.f32 0.618034, %v554_v52  ;;  %v555_v3 = vadd.f32 %v299_v50, %v3924_v13 }
  0x4c   :  { %3079 = vst [vmem:[%s7420_s2 + $0x1e] sm:$0x1] %v2823_v16  ;;  %v1050_v51 = vadd.f32 %v795_v30, %v3946_v57  ;;  %v1305_v43 = vadd.f32 %v796_v2, %v3906_v21  ;;  %v2568_v63 = vadd.f32 %v2312_v45, %v2056_v19  ;;  %v2313_v7 = vmul.f32 0.318309, %v1304_v20  ;;  %v3991_v19 = vld [vmem:[%s7418_s1 + $0x36] sm:$0x1] }
  0x4d   :  { %3080 = vst [vmem:[%s7420_s2 + $0x1f] sm:$0x1] %v2824_v55  ;;  %v300_v22 = vadd.f32 %v3706_v33, %v3358_v8  ;;  %v797_v25 = vadd.f32 %v3685_v60, %v3393_v18  ;;  %v2057_v41 = vadd.f32 %v1801_v35, %v1545_v9  ;;  %v1546_v0 = vmul.f32 0.618034, %v555_v3  ;;  %v3973_v8 = vld [vmem:[%s7418_s1 + $0x35] sm:$0x1] }
  0x4e   :  { %v1802_v48 = vmul.f32 0.367879, %v1050_v51  ;;  %v2314_v23 = vmul.f32 0.318309, %v1305_v43  ;;  %v2825_v49 = vadd.f32 %v3377_v14, %v2568_v63  ;;  %v1051_v59 = vadd.f32 %v796_v2, %v3960_v31 }
  0x4f   :  { %v556_v5 = vadd.f32 %v300_v22, %v3946_v57  ;;  %v1306_v61 = vadd.f32 %v797_v25, %v3924_v13  ;;  %v2569_v45 = vadd.f32 %v2313_v7, %v2057_v41  ;;  %v301_v37 = vadd.f32 %v3725_v26, %v3382_v15 }
  0x50   :  { %v2058_v46 = vadd.f32 %v1802_v48, %v1546_v0  ;;  %v798_v58 = vadd.f32 %v3706_v33, %v3414_v28  ;;  %3081 = vst [vmem:[%s7420_s2 + $0x20] sm:$0x1] %v2825_v49  ;;  %v1803_v42 = vmul.f32 0.367879, %v1051_v59  ;;  %v1052_v17 = vadd.f32 %v797_v25, %v3973_v8  ;;  %v4010_v0 = vld [vmem:[%s7418_s1 + $0x37] sm:$0x1] }
  0x51   :  { %v1547_v4 = vmul.f32 0.618034, %v556_v5  ;;  %v302_v30 = vadd.f32 %v3740_v36, %v3393_v18  ;;  %v2826_v39 = vadd.f32 %v3377_v14, %v2569_v45  ;;  %v2315_v52 = vmul.f32 0.318309, %v1306_v61 }
  0x52   :  { %v2570_v16 = vadd.f32 %v2314_v23, %v2058_v46  ;;  %v557_v15 = vadd.f32 %v301_v37, %v3960_v31  ;;  %v1307_v2 = vadd.f32 %v798_v58, %v3946_v57  ;;  %v1804_v55 = vmul.f32 0.367879, %v1052_v17  ;;  %v4023_v37 = vld [vmem:[%s7418_s1 + $0x38] sm:$0x1] }
  0x53   :  { %v2059_v50 = vadd.f32 %v1803_v42, %v1547_v4  ;;  %v558_v20 = vadd.f32 %v302_v30, %v3973_v8  ;;  %3082 = vst [vmem:[%s7420_s2 + $0x21] sm:$0x1] %v2826_v39  ;;  %v799_v9 = vadd.f32 %v3725_v26, %v3432_v38  ;;  %v1053_v3 = vadd.f32 %v798_v58, %v3991_v19 }
  0x54   :  { %v2827_v18 = vadd.f32 %v3377_v14, %v2570_v16  ;;  %v1548_v35 = vmul.f32 0.618034, %v557_v15  ;;  %v2316_v43 = vmul.f32 0.318309, %v1307_v2  ;;  %v303_v7 = vadd.f32 %v3757_v34, %v3414_v28  ;;  %v4037_v2 = vld [vmem:[%s7418_s1 + $0x39] sm:$0x1] }
  0x55   :  { %v2571_v51 = vadd.f32 %v2315_v52, %v2059_v50  ;;  %v1549_v63 = vmul.f32 0.618034, %v558_v20  ;;  %v1308_v25 = vadd.f32 %v799_v9, %v3960_v31  ;;  %v1805_v41 = vmul.f32 0.367879, %v1053_v3 }
  0x56   :  { %3083 = vst [vmem:[%s7420_s2 + $0x22] sm:$0x1] %v2827_v18  ;;  %v2060_v22 = vadd.f32 %v1804_v55, %v1548_v35  ;;  %v800_v48 = vadd.f32 %v3740_v36, %v3443_v44  ;;  %v559_v28 = vadd.f32 %v303_v7, %v3991_v19  ;;  %v1054_v49 = vadd.f32 %v799_v9, %v4010_v0  ;;  %v7439_v35 = vld [vmem:[#allocation2_spill] sm:$0xff] }
  0x57   :  { %v2828_v23 = vadd.f32 %v3377_v14, %v2571_v51  ;;  %v304_v5 = vadd.f32 %v3769_v10, %v3432_v38  ;;  %v2061_v61 = vadd.f32 %v1805_v41, %v1549_v63  ;;  %v2317_v45 = vmul.f32 0.318309, %v1308_v25  ;;  %v4058_v41 = vld [vmem:[%s7418_s1 + $0x3a] sm:$0x1] }
  0x58   :  { %v2572_v59 = vadd.f32 %v2316_v43, %v2060_v22  ;;  %v1309_v46 = vadd.f32 %v800_v48, %v3973_v8  ;;  %v1550_v58 = vmul.f32 0.618034, %v559_v28  ;;  %v1806_v4 = vmul.f32 0.367879, %v1054_v49 }
  0x59   :  { %3084 = vst [vmem:[%s7420_s2 + $0x23] sm:$0x1] %v2828_v23  ;;  %v560_v42 = vadd.f32 %v304_v5, %v4010_v0  ;;  %v801_v38 = vadd.f32 %v3757_v34, %v3464_v54  ;;  %v2573_v30 = vadd.f32 %v2317_v45, %v2061_v61  ;;  %v1055_v16 = vadd.f32 %v800_v48, %v4023_v37  ;;  %v7440_v48 = vld [vmem:[#allocation3_spill] sm:$0xff] }
  0x5a   :  { %v2829_v17 = vadd.f32 %v3377_v14, %v2572_v59  ;;  %v2318_v39 = vmul.f32 0.318309, %v1309_v46  ;;  %v2062_v52 = vadd.f32 %v1806_v4, %v1550_v58  ;;  %v305_v55 = vadd.f32 %v3785_v40, %v3443_v44  ;;  %v4069_v46 = vld [vmem:[%s7418_s1 + $0x3b] sm:$0x1] }
  0x5b   :  { %v1310_v15 = vadd.f32 %v801_v38, %v3991_v19  ;;  %v1551_v50 = vmul.f32 0.618034, %v560_v42  ;;  %v2830_v20 = vadd.f32 %v3377_v14, %v2573_v30  ;;  %v1807_v18 = vmul.f32 0.367879, %v1055_v16 }
  0x5c   :  { %3085 = vst [vmem:[%s7420_s2 + $0x24] sm:$0x1] %v2829_v17  ;;  %v802_v9 = vadd.f32 %v3769_v10, %v7439_v35  ;;  %v1056_v3 = vadd.f32 %v801_v38, %v4037_v2  ;;  %v2574_v51 = vadd.f32 %v2318_v39, %v2062_v52  ;;  %v561_v63 = vadd.f32 %v305_v55, %v4023_v37  ;;  %v7441_v17 = vld [vmem:[#allocation4_spill] sm:$0xff] }
  0x5d   :  { %v2319_v43 = vmul.f32 0.318309, %v1310_v15  ;;  %v306_v7 = vadd.f32 %v3800_v29, %v3464_v54  ;;  %3086 = vst [vmem:[%s7420_s2 + $0x25] sm:$0x1] %v2830_v20  ;;  %v2063_v44 = vadd.f32 %v1807_v18, %v1551_v50  ;;  %v803_v23 = vadd.f32 %v3785_v40, %v7440_v48  ;;  %v4085_v18 = vld [vmem:[%s7418_s1 + $0x3c] sm:$0x1] }
  0x5e   :  { %v1311_v22 = vadd.f32 %v802_v9, %v4010_v0  ;;  %v1808_v25 = vmul.f32 0.367879, %v1056_v3  ;;  %v2831_v28 = vadd.f32 %v3377_v14, %v2574_v51  ;;  %v1552_v49 = vmul.f32 0.618034, %v561_v63  ;;  %v7442_v51 = vld [vmem:[#allocation5_spill] sm:$0xff] }
  0x5f   :  { %v562_v54 = vadd.f32 %v306_v7, %v4037_v2  ;;  %v1057_v5 = vadd.f32 %v802_v9, %v4058_v41  ;;  %v2575_v59 = vadd.f32 %v2319_v43, %v2063_v44  ;;  %v1312_v45 = vadd.f32 %v803_v23, %v4023_v37 }
  0x60   :  { %v2320_v61 = vmul.f32 0.318309, %v1311_v22  ;;  %v307_v58 = vadd.f32 %v3814_v62, %v7439_v35  ;;  %3087 = vst [vmem:[%s7420_s2 + $0x26] sm:$0x1] %v2831_v28  ;;  %v2064_v4 = vadd.f32 %v1808_v25, %v1552_v49  ;;  %v804_v30 = vadd.f32 %v3800_v29, %v7441_v17  ;;  %v4101_v49 = vld [vmem:[%s7418_s1 + $0x3d] sm:$0x1] }
  0x61   :  { %v1553_v42 = vmul.f32 0.618034, %v562_v54  ;;  %v1809_v38 = vmul.f32 0.367879, %v1057_v5  ;;  %v2832_v39 = vadd.f32 %v3377_v14, %v2575_v59  ;;  %v2321_v16 = vmul.f32 0.318309, %v1312_v45 }
  0x62   :  { %v563_v52 = vadd.f32 %v307_v58, %v4058_v41  ;;  %v1058_v15 = vadd.f32 %v803_v23, %v4069_v46  ;;  %v2576_v50 = vadd.f32 %v2320_v61, %v2064_v4  ;;  %v1313_v20 = vadd.f32 %v804_v30, %v4037_v2  ;;  %v7443_v61 = vld [vmem:[#allocation6_spill] sm:$0xff] }
  0x63   :  { %v2065_v55 = vadd.f32 %v1809_v38, %v1553_v42  ;;  %v308_v35 = vadd.f32 %v3830_v27, %v7440_v48  ;;  %3088 = vst [vmem:[%s7420_s2 + $0x27] sm:$0x1] %v2832_v39  ;;  %v805_v43 = vadd.f32 %v3814_v62, %v7442_v51  ;;  %v1059_v63 = vadd.f32 %v804_v30, %v4085_v18 }
  0x64   :  { %v1554_v9 = vmul.f32 0.618034, %v563_v52  ;;  %v1810_v3 = vmul.f32 0.367879, %v1058_v15  ;;  %v2833_v7 = vadd.f32 %v3377_v14, %v2576_v50  ;;  %v2322_v22 = vmul.f32 0.318309, %v1313_v20 }
  0x65   :  { %v2577_v44 = vadd.f32 %v2321_v16, %v2065_v55  ;;  %v564_v25 = vadd.f32 %v308_v35, %v4069_v46  ;;  %v1314_v48 = vadd.f32 %v805_v43, %v4058_v41  ;;  %v1811_v28 = vmul.f32 0.367879, %v1059_v63  ;;  %v4122_v52 = vld [vmem:[%s7418_s1 + $0x3e] sm:$0x1]  ;;  %v7444_v15 = vld [vmem:[#allocation7_spill] sm:$0xff] }
  0x66   :  { %v2066_v23 = vadd.f32 %v1810_v3, %v1554_v9  ;;  %v309_v54 = vadd.f32 %v3847_v24, %v7441_v17  ;;  %3089 = vst [vmem:[%s7420_s2 + $0x28] sm:$0x1] %v2833_v7  ;;  %v806_v45 = vadd.f32 %v3830_v27, %v7443_v61  ;;  %v1060_v58 = vadd.f32 %v805_v43, %v4101_v49  ;;  %v4133_v63 = vld [vmem:[%s7418_s1 + $0x3f] sm:$0x1] }
  0x67   :  { %v2834_v5 = vadd.f32 %v3377_v14, %v2577_v44  ;;  %v1555_v59 = vmul.f32 0.618034, %v564_v25  ;;  %v2323_v42 = vmul.f32 0.318309, %v1314_v48  ;;  %v310_v30 = vadd.f32 %v3860_v12, %v7442_v51  ;;  %v4140_v44 = vld [vmem:[%s7418_s1 + $0x40] sm:$0x1] }
  0x68   :  { %v2578_v4 = vadd.f32 %v2322_v22, %v2066_v23  ;;  %v565_v38 = vadd.f32 %v309_v54, %v4085_v18  ;;  %v1315_v39 = vadd.f32 %v806_v45, %v4069_v46  ;;  %v1812_v16 = vmul.f32 0.367879, %v1060_v58 }
  0x69   :  { %3090 = vst [vmem:[%s7420_s2 + $0x29] sm:$0x1] %v2834_v5  ;;  %v2067_v17 = vadd.f32 %v1811_v28, %v1555_v59  ;;  %v807_v50 = vadd.f32 %v3847_v24, %v7444_v15  ;;  %v566_v35 = vadd.f32 %v310_v30, %v4101_v49  ;;  %v1061_v9 = vadd.f32 %v806_v45, %v4122_v52 }
  0x6a   :  { %v2835_v55 = vadd.f32 %v3377_v14, %v2578_v4  ;;  %v1556_v20 = vmul.f32 0.618034, %v565_v38  ;;  %v2324_v51 = vmul.f32 0.318309, %v1315_v39  ;;  %v311_v7 = vadd.f32 %v3875_v1, %v7443_v61 }
  0x6b   :  { %v2579_v3 = vadd.f32 %v2323_v42, %v2067_v17  ;;  %v1316_v43 = vadd.f32 %v807_v50, %v4085_v18  ;;  %v1557_v25 = vmul.f32 0.618034, %v566_v35  ;;  %v1813_v23 = vmul.f32 0.367879, %v1061_v9  ;;  %v4166_v17 = vld [vmem:[%s7419_s0] sm:$0x1] }
  0x6c   :  { %3091 = vst [vmem:[%s7420_s2 + $0x2a] sm:$0x1] %v2835_v55  ;;  %v2068_v22 = vadd.f32 %v1812_v16, %v1556_v20  ;;  %v1062_v48 = vadd.f32 %v807_v50, %v4133_v63  ;;  %v567_v5 = vadd.f32 %v311_v7, %v4122_v52  ;;  %v1317_v59 = vadd.f32 %v3896_v11, %v4101_v49 }
  0x6d   :  { %v2836_v28 = vadd.f32 %v3377_v14, %v2579_v3  ;;  %v2325_v54 = vmul.f32 0.318309, %v1316_v43  ;;  %v2069_v45 = vadd.f32 %v1813_v23, %v1557_v25  ;;  %v568_v4 = vadd.f32 %v4133_v63, %v7444_v15  ;;  %v4187_v43 = vld [vmem:[%s7418_s1 + $0x42] sm:$0x1] }
  0x6e   :  { %v2580_v61 = vadd.f32 %v2324_v51, %v2068_v22  ;;  %v1814_v58 = vmul.f32 0.367879, %v1062_v48  ;;  %v1558_v42 = vmul.f32 0.618034, %v567_v5  ;;  %v2326_v38 = vmul.f32 0.318309, %v1317_v59 }
  0x6f   :  { %3092 = vst [vmem:[%s7420_s2 + $0x2b] sm:$0x1] %v2836_v28  ;;  %v4157_v14 = vadd.f32 %v4122_v52, %v3875_v1  ;;  %v4161_v30 = vadd.f32 %v4140_v44, %v3906_v21  ;;  %v2581_v16 = vadd.f32 %v2325_v54, %v2069_v45  ;;  %v1559_v15 = vmul.f32 0.618034, %v568_v4  ;;  %v4173_v1 = vld [vmem:[%s7418_s1 + $0x41] sm:$0x1] }
  0x70   :  { %v2837_v39 = vadd.f32 %v4166_v17, %v2580_v61  ;;  %v1815_v50 = vmul.f32 0.367879, %v3896_v11  ;;  %v2070_v55 = vadd.f32 %v1814_v58, %v1558_v42  ;;  %v1064_v35 = vadd.f32 %v4173_v1, %v3645_v56 }
  0x71   :  { %v2327_v20 = vmul.f32 0.318309, %v4157_v14  ;;  %v1560_v9 = vmul.f32 0.618034, %v4161_v30  ;;  %v2838_v3 = vadd.f32 %v4166_v17, %v2581_v16  ;;  %v2328_v51 = vmul.f32 0.318309, %v3910_v47 }
  0x72   :  { %3093 = vst [vmem:[%s7420_s2 + $0x2c] sm:$0x1] %v2837_v39  ;;  %v2071_v11 = vadd.f32 %v1815_v50, %v1559_v15  ;;  %v314_v7 = vadd.f32 %v3924_v13, %v3645_v56  ;;  %v2582_v22 = vadd.f32 %v2326_v38, %v2070_v55  ;;  %v1816_v25 = vmul.f32 0.367879, %v1064_v35  ;;  %v4220_v50 = vld [vmem:[%s7418_s1 + $0x44] sm:$0x1] }
  0x73   :  { %v811_v23 = vadd.f32 %v3906_v21, %v3670_v6  ;;  %v1065_v48 = vadd.f32 %v3910_v47, %v4187_v43  ;;  %3094 = vst [vmem:[%s7420_s2 + $0x2d] sm:$0x1] %v2838_v3  ;;  %v315_v5 = vadd.f32 %v3946_v57, %v3650_v53  ;;  %v812_v56 = vadd.f32 %v3924_v13, %v3685_v60  ;;  %v4208_v47 = vld [vmem:[%s7418_s1 + $0x43] sm:$0x1] }
  0x74   :  { %v2583_v28 = vadd.f32 %v2327_v20, %v2071_v11  ;;  %v570_v54 = vadd.f32 %v314_v7, %v4173_v1  ;;  %v2839_v59 = vadd.f32 %v4166_v17, %v2582_v22  ;;  %v2072_v61 = vadd.f32 %v1816_v25, %v1560_v9 }
  0x75   :  { %v1320_v45 = vadd.f32 %v811_v23, %v4140_v44  ;;  %v1817_v58 = vmul.f32 0.367879, %v1065_v48  ;;  %v571_v38 = vadd.f32 %v315_v5, %v4187_v43  ;;  %v1066_v53 = vadd.f32 %v811_v23, %v4208_v47  ;;  %v4236_v48 = vld [vmem:[%s7418_s1 + $0x45] sm:$0x1] }
  0x76   :  { %v2840_v4 = vadd.f32 %v4166_v17, %v2583_v28  ;;  %v1561_v42 = vmul.f32 0.618034, %v570_v54  ;;  %3095 = vst [vmem:[%s7420_s2 + $0x2e] sm:$0x1] %v2839_v59  ;;  %v2584_v39 = vadd.f32 %v2328_v51, %v2072_v61  ;;  %v1321_v15 = vadd.f32 %v812_v56, %v4173_v1 }
  0x77   :  { %v2329_v16 = vmul.f32 0.318309, %v1320_v45  ;;  %v316_v55 = vadd.f32 %v3960_v31, %v3670_v6  ;;  %v1562_v35 = vmul.f32 0.618034, %v571_v38  ;;  %v1818_v9 = vmul.f32 0.367879, %v1066_v53 }
  0x78   :  { %3096 = vst [vmem:[%s7420_s2 + $0x2f] sm:$0x1] %v2840_v4  ;;  %v2073_v20 = vadd.f32 %v1817_v58, %v1561_v42  ;;  %v813_v3 = vadd.f32 %v3946_v57, %v3706_v33  ;;  %v2841_v11 = vadd.f32 %v4166_v17, %v2584_v39  ;;  %v2330_v51 = vmul.f32 0.318309, %v1321_v15  ;;  %v4252_v53 = vld [vmem:[%s7418_s1 + $0x46] sm:$0x1] }
  0x79   :  { %v572_v7 = vadd.f32 %v316_v55, %v4208_v47  ;;  %v1067_v22 = vadd.f32 %v812_v56, %v4220_v50  ;;  %v2074_v23 = vadd.f32 %v1818_v9, %v1562_v35  ;;  %v317_v28 = vadd.f32 %v3973_v8, %v3685_v60 }
  0x7a   :  { %v2585_v25 = vadd.f32 %v2329_v16, %v2073_v20  ;;  %v1322_v6 = vadd.f32 %v813_v3, %v4187_v43  ;;  %3097 = vst [vmem:[%s7420_s2 + $0x30] sm:$0x1] %v2841_v11  ;;  %v814_v56 = vadd.f32 %v3960_v31, %v3725_v26  ;;  %v1068_v59 = vadd.f32 %v813_v3, %v4236_v48 }
  0x7b   :  { %v1563_v54 = vmul.f32 0.618034, %v572_v7  ;;  %v1819_v5 = vmul.f32 0.367879, %v1067_v22  ;;  %v2586_v45 = vadd.f32 %v2330_v51, %v2074_v23  ;;  %v573_v4 = vadd.f32 %v317_v28, %v4220_v50  ;;  %v4273_v22 = vld [vmem:[%s7418_s1 + $0x47] sm:$0x1] }
  0x7c   :  { %v2842_v61 = vadd.f32 %v4166_v17, %v2585_v25  ;;  %v2331_v58 = vmul.f32 0.318309, %v1322_v6  ;;  %v1323_v60 = vadd.f32 %v814_v56, %v4208_v47  ;;  %v1820_v38 = vmul.f32 0.367879, %v1068_v59  ;;  %v4284_v59 = vld [vmem:[%s7418_s1 + $0x48] sm:$0x1] }
  0x7d   :  { %v2075_v42 = vadd.f32 %v1819_v5, %v1563_v54  ;;  %v318_v39 = vadd.f32 %v3991_v19, %v3706_v33  ;;  %v2843_v16 = vadd.f32 %v4166_v17, %v2586_v45  ;;  %v1564_v15 = vmul.f32 0.618034, %v573_v4 }
  0x7e   :  { %3098 = vst [vmem:[%s7420_s2 + $0x31] sm:$0x1] %v2842_v61  ;;  %v815_v55 = vadd.f32 %v3973_v8, %v3740_v36  ;;  %v1069_v20 = vadd.f32 %v814_v56, %v4252_v53  ;;  %v2332_v9 = vmul.f32 0.318309, %v1323_v60  ;;  %v319_v11 = vadd.f32 %v4010_v0, %v3725_v26 }
  0x7f   :  { %v2587_v35 = vadd.f32 %v2331_v58, %v2075_v42  ;;  %v574_v3 = vadd.f32 %v318_v39, %v4236_v48  ;;  %3099 = vst [vmem:[%s7420_s2 + $0x32] sm:$0x1] %v2843_v16  ;;  %v2076_v33 = vadd.f32 %v1820_v38, %v1564_v15  ;;  %v816_v25 = vadd.f32 %v3991_v19, %v3757_v34 }
  0x80   :  { %v1324_v51 = vadd.f32 %v815_v55, %v4220_v50  ;;  %v1821_v7 = vmul.f32 0.367879, %v1069_v20  ;;  %v575_v26 = vadd.f32 %v319_v11, %v4252_v53  ;;  %v1070_v28 = vadd.f32 %v815_v55, %v4273_v22  ;;  %v4300_v20 = vld [vmem:[%s7418_s1 + $0x49] sm:$0x1] }
  0x81   :  { %v2844_v23 = vadd.f32 %v4166_v17, %v2587_v35  ;;  %v1565_v6 = vmul.f32 0.618034, %v574_v3  ;;  %v2588_v54 = vadd.f32 %v2332_v9, %v2076_v33  ;;  %v1325_v56 = vadd.f32 %v816_v25, %v4236_v48 }
  0x82   :  { %v2333_v5 = vmul.f32 0.318309, %v1324_v51  ;;  %v320_v61 = vadd.f32 %v4023_v37, %v3740_v36  ;;  %v1566_v58 = vmul.f32 0.618034, %v575_v26  ;;  %v1822_v4 = vmul.f32 0.367879, %v1070_v28 }
  0x83   :  { %3100 = vst [vmem:[%s7420_s2 + $0x33] sm:$0x1] %v2844_v23  ;;  %v2077_v45 = vadd.f32 %v1821_v7, %v1565_v6  ;;  %v817_v42 = vadd.f32 %v4010_v0, %v3769_v10  ;;  %v2845_v60 = vadd.f32 %v4166_v17, %v2588_v54  ;;  %v2334_v38 = vmul.f32 0.318309, %v1325_v56  ;;  %v4316_v28 = vld [vmem:[%s7418_s1 + $0x4a] sm:$0x1] }
  0x84   :  { %v576_v39 = vadd.f32 %v320_v61, %v4273_v22  ;;  %v1071_v16 = vadd.f32 %v816_v25, %v4284_v59  ;;  %v2078_v55 = vadd.f32 %v1822_v4, %v1566_v58  ;;  %v321_v35 = vadd.f32 %v4037_v2, %v3757_v34 }
  0x85   :  { %v2589_v15 = vadd.f32 %v2333_v5, %v2077_v45  ;;  %v1326_v36 = vadd.f32 %v817_v42, %v4252_v53  ;;  %3101 = vst [vmem:[%s7420_s2 + $0x34] sm:$0x1] %v2845_v60  ;;  %v818_v11 = vadd.f32 %v4023_v37, %v3785_v40  ;;  %v1072_v33 = vadd.f32 %v817_v42, %v4300_v20 }
  0x86   :  { %v1567_v9 = vmul.f32 0.618034, %v576_v39  ;;  %v1823_v3 = vmul.f32 0.367879, %v1071_v16  ;;  %v2590_v7 = vadd.f32 %v2334_v38, %v2078_v55  ;;  %v577_v23 = vadd.f32 %v321_v35, %v4284_v59  ;;  %v4337_v16 = vld [vmem:[%s7418_s1 + $0x4b] sm:$0x1] }
  0x87   :  { %v2846_v51 = vadd.f32 %v4166_v17, %v2589_v15  ;;  %v2335_v25 = vmul.f32 0.318309, %v1326_v36  ;;  %v1327_v34 = vadd.f32 %v818_v11, %v4273_v22  ;;  %v1824_v26 = vmul.f32 0.367879, %v1072_v33  ;;  %v4348_v33 = vld [vmem:[%s7418_s1 + $0x4c] sm:$0x1] }
  0x88   :  { %v2079_v6 = vadd.f32 %v1823_v3, %v1567_v9  ;;  %v322_v54 = vadd.f32 %v4058_v41, %v3769_v10  ;;  %v2847_v5 = vadd.f32 %v4166_v17, %v2590_v7  ;;  %v1568_v56 = vmul.f32 0.618034, %v577_v23 }
  0x89   :  { %3102 = vst [vmem:[%s7420_s2 + $0x35] sm:$0x1] %v2846_v51  ;;  %v819_v61 = vadd.f32 %v4037_v2, %v3800_v29  ;;  %v1073_v45 = vadd.f32 %v818_v11, %v4316_v28  ;;  %v2336_v4 = vmul.f32 0.318309, %v1327_v34  ;;  %v323_v60 = vadd.f32 %v4069_v46, %v3785_v40 }
  0x8a   :  { %v2591_v58 = vadd.f32 %v2335_v25, %v2079_v6  ;;  %v578_v42 = vadd.f32 %v322_v54, %v4300_v20  ;;  %3103 = vst [vmem:[%s7420_s2 + $0x36] sm:$0x1] %v2847_v5  ;;  %v2080_v10 = vadd.f32 %v1824_v26, %v1568_v56  ;;  %v820_v15 = vadd.f32 %v4058_v41, %v3814_v62 }
  0x8b   :  { %v1328_v38 = vadd.f32 %v819_v61, %v4284_v59  ;;  %v1825_v39 = vmul.f32 0.367879, %v1073_v45  ;;  %v579_v40 = vadd.f32 %v323_v60, %v4316_v28  ;;  %v1074_v35 = vadd.f32 %v819_v61, %v4337_v16  ;;  %v4364_v45 = vld [vmem:[%s7418_s1 + $0x4d] sm:$0x1] }
  0x8c   :  { %v2848_v55 = vadd.f32 %v4166_v17, %v2591_v58  ;;  %v1569_v36 = vmul.f32 0.618034, %v578_v42  ;;  %v2592_v9 = vadd.f32 %v2336_v4, %v2080_v10  ;;  %v1329_v11 = vadd.f32 %v820_v15, %v4300_v20 }
  0x8d   :  { %v2337_v3 = vmul.f32 0.318309, %v1328_v38  ;;  %v324_v51 = vadd.f32 %v4085_v18, %v3800_v29  ;;  %v1570_v25 = vmul.f32 0.618034, %v579_v40  ;;  %v1826_v23 = vmul.f32 0.367879, %v1074_v35 }
  0x8e   :  { %3104 = vst [vmem:[%s7420_s2 + $0x37] sm:$0x1] %v2848_v55  ;;  %v2081_v7 = vadd.f32 %v1825_v39, %v1569_v36  ;;  %v821_v6 = vadd.f32 %v4069_v46, %v3830_v27  ;;  %v2849_v34 = vadd.f32 %v4166_v17, %v2592_v9  ;;  %v2338_v26 = vmul.f32 0.318309, %v1329_v11  ;;  %v4380_v35 = vld [vmem:[%s7418_s1 + $0x4e] sm:$0x1] }
  0x8f   :  { %v580_v54 = vadd.f32 %v324_v51, %v4337_v16  ;;  %v1075_v5 = vadd.f32 %v820_v15, %v4348_v33  ;;  %v2082_v61 = vadd.f32 %v1826_v23, %v1570_v25  ;;  %v325_v58 = vadd.f32 %v4101_v49, %v3814_v62 }
  0x90   :  { %v2593_v56 = vadd.f32 %v2337_v3, %v2081_v7  ;;  %v1330_v29 = vadd.f32 %v821_v6, %v4316_v28  ;;  %3105 = vst [vmem:[%s7420_s2 + $0x38] sm:$0x1] %v2849_v34  ;;  %v822_v60 = vadd.f32 %v4085_v18, %v3847_v24  ;;  %v1076_v10 = vadd.f32 %v821_v6, %v4364_v45 }
  0x91   :  { %v1571_v4 = vmul.f32 0.618034, %v580_v54  ;;  %v1827_v42 = vmul.f32 0.367879, %v1075_v5  ;;  %v2594_v39 = vadd.f32 %v2338_v26, %v2082_v61  ;;  %v581_v55 = vadd.f32 %v325_v58, %v4348_v33 }
  0x92   :  { %v2850_v38 = vadd.f32 %v4166_v17, %v2593_v56  ;;  %v2339_v15 = vmul.f32 0.318309, %v1330_v29  ;;  %v1331_v62 = vadd.f32 %v822_v60, %v4337_v16  ;;  %v1828_v40 = vmul.f32 0.367879, %v1076_v10 }
  0x93   :  { %v2083_v36 = vadd.f32 %v1827_v42, %v1571_v4  ;;  %v326_v9 = vadd.f32 %v4122_v52, %v3830_v27  ;;  %v2851_v3 = vadd.f32 %v4166_v17, %v2594_v39  ;;  %v1572_v11 = vmul.f32 0.618034, %v581_v55  ;;  %v4395_v27 = vld [vmem:[%s7418_s1 + $0x4f] sm:$0x1] }
  0x94   :  { %3106 = vst [vmem:[%s7420_s2 + $0x39] sm:$0x1] %v2850_v38  ;;  %v823_v51 = vadd.f32 %v4101_v49, %v3860_v12  ;;  %v1077_v7 = vadd.f32 %v822_v60, %v4380_v35  ;;  %v2340_v23 = vmul.f32 0.318309, %v1331_v62  ;;  %v327_v34 = vadd.f32 %v4133_v63, %v3847_v24  ;;  %v4411_v24 = vld [vmem:[%s7418_s1 + $0x50] sm:$0x1] }
  0x95   :  { %v2595_v25 = vadd.f32 %v2339_v15, %v2083_v36  ;;  %v582_v6 = vadd.f32 %v326_v9, %v4364_v45  ;;  %3107 = vst [vmem:[%s7420_s2 + $0x3a] sm:$0x1] %v2851_v3  ;;  %v2084_v26 = vadd.f32 %v1828_v40, %v1572_v11  ;;  %v1333_v4 = vadd.f32 %v4157_v14, %v4364_v45 }
  0x96   :  { %v1332_v54 = vadd.f32 %v823_v51, %v4348_v33  ;;  %v1829_v5 = vmul.f32 0.367879, %v1077_v7  ;;  %v1078_v56 = vadd.f32 %v823_v51, %v4395_v27  ;;  %v583_v58 = vadd.f32 %v327_v34, %v4380_v35 }
  0x97   :  { %v2852_v61 = vadd.f32 %v4166_v17, %v2595_v25  ;;  %v1573_v29 = vmul.f32 0.618034, %v582_v6  ;;  %v2596_v42 = vadd.f32 %v2340_v23, %v2084_v26  ;;  %v584_v38 = vadd.f32 %v4395_v27, %v3860_v12  ;;  %v4427_v12 = vld [vmem:[%s7418_s1 + $0x51] sm:$0x1] }
  0x98   :  { %v2341_v60 = vmul.f32 0.318309, %v1332_v54  ;;  %v1830_v10 = vmul.f32 0.367879, %v1078_v56  ;;  %v1574_v15 = vmul.f32 0.618034, %v583_v58  ;;  %v4420_v36 = vadd.f32 %v4380_v35, %v4133_v63 }
  0x99   :  { %3108 = vst [vmem:[%s7420_s2 + $0x3b] sm:$0x1] %v2852_v61  ;;  %v2085_v39 = vadd.f32 %v1829_v5, %v1573_v29  ;;  %v2342_v55 = vmul.f32 0.318309, %v1333_v4  ;;  %v2853_v62 = vadd.f32 %v4166_v17, %v2596_v42  ;;  %v1575_v40 = vmul.f32 0.618034, %v584_v38 }
  0x9a   :  { %v1831_v9 = vmul.f32 0.367879, %v4157_v14  ;;  %v4431_v3 = vadd.f32 %v4411_v24, %v4173_v1  ;;  %v2086_v51 = vadd.f32 %v1830_v10, %v1574_v15  ;;  %v2343_v7 = vmul.f32 0.318309, %v4420_v36  ;;  %v4447_v5 = vld [vmem:[%s7418_s1 + $0x52] sm:$0x1] }
  0x9b   :  { %v2597_v11 = vadd.f32 %v2341_v60, %v2085_v39  ;;  %v1080_v63 = vadd.f32 %v4427_v12, %v3884_v32  ;;  %3109 = vst [vmem:[%s7420_s2 + $0x3c] sm:$0x1] %v2853_v62  ;;  %v2344_v23 = vmul.f32 0.318309, %v4161_v30  ;;  %v330_v6 = vadd.f32 %v4187_v43, %v3884_v32 }
  0x9c   :  { %v2087_v14 = vadd.f32 %v1831_v9, %v1575_v40  ;;  %v1576_v25 = vmul.f32 0.618034, %v4431_v3  ;;  %v2598_v26 = vadd.f32 %v2342_v55, %v2086_v51  ;;  %v827_v56 = vadd.f32 %v4173_v1, %v3924_v13 }
  0x9d   :  { %v2854_v34 = vadd.f32 %v4166_v17, %v2597_v11  ;;  %v1832_v54 = vmul.f32 0.367879, %v1080_v63  ;;  %v586_v29 = vadd.f32 %v330_v6, %v4427_v12  ;;  %v1081_v58 = vadd.f32 %v4161_v30, %v4447_v5 }
  0x9e   :  { %v2599_v61 = vadd.f32 %v2343_v7, %v2087_v14  ;;  %v331_v32 = vadd.f32 %v4208_v47, %v3906_v21  ;;  %v2855_v4 = vadd.f32 %v4166_v17, %v2598_v26  ;;  %v1336_v60 = vadd.f32 %v827_v56, %v4411_v24  ;;  %v4467_v21 = vld [vmem:[%s7418_s1 + $0x53] sm:$0x1]  ;;  %v4481_v7 = vld [vmem:[%s7418_s1 + $0x54] sm:$0x1] }
  0x9f   :  { %3110 = vst [vmem:[%s7420_s2 + $0x3d] sm:$0x1] %v2854_v34  ;;  %v2088_v42 = vadd.f32 %v1832_v54, %v1576_v25  ;;  %v828_v10 = vadd.f32 %v4187_v43, %v3946_v57  ;;  %v1577_v39 = vmul.f32 0.618034, %v586_v29  ;;  %v1833_v15 = vmul.f32 0.367879, %v1081_v58 }
  0xa0   :  { %v2856_v38 = vadd.f32 %v4166_v17, %v2599_v61  ;;  %v587_v30 = vadd.f32 %v331_v32, %v4447_v5  ;;  %3111 = vst [vmem:[%s7420_s2 + $0x3e] sm:$0x1] %v2855_v4  ;;  %v2345_v62 = vmul.f32 0.318309, %v1336_v60  ;;  %v1082_v40 = vadd.f32 %v827_v56, %v4467_v21  ;;  %v4494_v61 = vld [vmem:[%s7418_s1 + $0x55] sm:$0x1] }
  0xa1   :  { %v2600_v55 = vadd.f32 %v2344_v23, %v2088_v42  ;;  %v1337_v9 = vadd.f32 %v828_v10, %v4427_v12  ;;  %v2089_v11 = vadd.f32 %v1833_v15, %v1577_v39  ;;  %v332_v63 = vadd.f32 %v4220_v50, %v3924_v13 }
  0xa2   :  { %3112 = vst [vmem:[%s7420_s2 + $0x3f] sm:$0x1] %v2856_v38  ;;  %v1578_v51 = vmul.f32 0.618034, %v587_v30  ;;  %v829_v14 = vadd.f32 %v4208_v47, %v3960_v31  ;;  %v1834_v23 = vmul.f32 0.367879, %v1082_v40  ;;  %v1083_v34 = vadd.f32 %v828_v10, %v4481_v7 }
  0xa3   :  { %v2857_v25 = vadd.f32 %v4166_v17, %v2600_v55  ;;  %v2346_v6 = vmul.f32 0.318309, %v1337_v9  ;;  %v2601_v26 = vadd.f32 %v2345_v62, %v2089_v11  ;;  %v588_v54 = vadd.f32 %v332_v63, %v4467_v21  ;;  %v4510_v30 = vld [vmem:[%s7418_s1 + $0x56] sm:$0x1] }
  0xa4   :  { %v1338_v56 = vadd.f32 %v829_v14, %v4447_v5  ;;  %v333_v13 = vadd.f32 %v4236_v48, %v3946_v57  ;;  %v2090_v29 = vadd.f32 %v1834_v23, %v1578_v51  ;;  %v1835_v58 = vmul.f32 0.367879, %v1083_v34 }
  0xa5   :  { %3113 = vst [vmem:[%s7420_s2 + $0x40] sm:$0x1] %v2857_v25  ;;  %v830_v32 = vadd.f32 %v4220_v50, %v3973_v8  ;;  %v1084_v4 = vadd.f32 %v829_v14, %v4494_v61  ;;  %v2858_v42 = vadd.f32 %v4166_v17, %v2601_v26  ;;  %v1579_v60 = vmul.f32 0.618034, %v588_v54  ;;  %v4528_v26 = vld [vmem:[%s7418_s1 + $0x57] sm:$0x1] }
  0xa6   :  { %v2347_v10 = vmul.f32 0.318309, %v1338_v56  ;;  %v589_v38 = vadd.f32 %v333_v13, %v4481_v7  ;;  %v2602_v39 = vadd.f32 %v2346_v6, %v2090_v29  ;;  %v334_v55 = vadd.f32 %v4252_v53, %v3960_v31 }
  0xa7   :  { %v1339_v57 = vadd.f32 %v830_v32, %v4467_v21  ;;  %v1836_v15 = vmul.f32 0.367879, %v1084_v4  ;;  %3114 = vst [vmem:[%s7420_s2 + $0x41] sm:$0x1] %v2858_v42  ;;  %v2091_v62 = vadd.f32 %v1835_v58, %v1579_v60  ;;  %v831_v9 = vadd.f32 %v4236_v48, %v3991_v19 }
  0xa8   :  { %v1580_v40 = vmul.f32 0.618034, %v589_v38  ;;  %v1085_v11 = vadd.f32 %v830_v32, %v4510_v30  ;;  %v2859_v51 = vadd.f32 %v4166_v17, %v2602_v39  ;;  %v590_v14 = vadd.f32 %v334_v55, %v4494_v61  ;;  %v4544_v39 = vld [vmem:[%s7418_s1 + $0x58] sm:$0x1] }
  0xa9   :  { %v2348_v63 = vmul.f32 0.318309, %v1339_v57  ;;  %v335_v25 = vadd.f32 %v4273_v22, %v3973_v8  ;;  %v2603_v31 = vadd.f32 %v2347_v10, %v2091_v62  ;;  %v1340_v6 = vadd.f32 %v831_v9, %v4481_v7 }
  0xaa   :  { %v2092_v23 = vadd.f32 %v1836_v15, %v1580_v40  ;;  %v1837_v34 = vmul.f32 0.367879, %v1085_v11  ;;  %3115 = vst [vmem:[%s7420_s2 + $0x42] sm:$0x1] %v2859_v51  ;;  %v1581_v54 = vmul.f32 0.618034, %v590_v14  ;;  %v832_v8 = vadd.f32 %v4252_v53, %v4010_v0 }
  0xab   :  { %v591_v56 = vadd.f32 %v335_v25, %v4510_v30  ;;  %v1086_v13 = vadd.f32 %v831_v9, %v4528_v26  ;;  %v2860_v29 = vadd.f32 %v4166_v17, %v2603_v31  ;;  %v2349_v32 = vmul.f32 0.318309, %v1340_v6  ;;  %v4557_v11 = vld [vmem:[%s7418_s1 + $0x59] sm:$0x1] }
  0xac   :  { %v2604_v58 = vadd.f32 %v2348_v63, %v2092_v23  ;;  %v336_v4 = vadd.f32 %v4284_v59, %v3991_v19  ;;  %v2093_v42 = vadd.f32 %v1837_v34, %v1581_v54  ;;  %v1341_v60 = vadd.f32 %v832_v8, %v4494_v61 }
  0xad   :  { %v1582_v10 = vmul.f32 0.618034, %v591_v56  ;;  %v1838_v38 = vmul.f32 0.367879, %v1086_v13  ;;  %3116 = vst [vmem:[%s7420_s2 + $0x43] sm:$0x1] %v2860_v29  ;;  %v833_v19 = vadd.f32 %v4273_v22, %v4023_v37  ;;  %v1087_v55 = vadd.f32 %v832_v8, %v4544_v39 }
  0xae   :  { %v2861_v57 = vadd.f32 %v4166_v17, %v2604_v58  ;;  %v592_v15 = vadd.f32 %v336_v4, %v4528_v26  ;;  %v2605_v62 = vadd.f32 %v2349_v32, %v2093_v42  ;;  %v2350_v9 = vmul.f32 0.318309, %v1341_v60  ;;  %v4574_v13 = vld [vmem:[%s7418_s1 + $0x5a] sm:$0x1] }
  0xaf   :  { %v2094_v40 = vadd.f32 %v1838_v38, %v1582_v10  ;;  %v337_v51 = vadd.f32 %v4300_v20, %v4010_v0  ;;  %v1342_v63 = vadd.f32 %v833_v19, %v4510_v30  ;;  %v1839_v25 = vmul.f32 0.367879, %v1087_v55 }
  0xb0   :  { %3117 = vst [vmem:[%s7420_s2 + $0x44] sm:$0x1] %v2861_v57  ;;  %v1583_v14 = vmul.f32 0.618034, %v592_v15  ;;  %v834_v31 = vadd.f32 %v4284_v59, %v4037_v2  ;;  %v2862_v23 = vadd.f32 %v4166_v17, %v2605_v62  ;;  %v1088_v54 = vadd.f32 %v833_v19, %v4557_v11  ;;  %v4593_v19 = vld [vmem:[%s7418_s1 + $0x5b] sm:$0x1] }
  0xb1   :  { %v2606_v6 = vadd.f32 %v2350_v9, %v2094_v40  ;;  %v593_v34 = vadd.f32 %v337_v51, %v4544_v39  ;;  %v2351_v0 = vmul.f32 0.318309, %v1342_v63  ;;  %v338_v29 = vadd.f32 %v4316_v28, %v4023_v37 }
  0xb2   :  { %v2095_v56 = vadd.f32 %v1839_v25, %v1583_v14  ;;  %v1343_v8 = vadd.f32 %v834_v31, %v4528_v26  ;;  %3118 = vst [vmem:[%s7420_s2 + $0x45] sm:$0x1] %v2862_v23  ;;  %v1840_v4 = vmul.f32 0.367879, %v1088_v54  ;;  %v835_v42 = vadd.f32 %v4300_v20, %v4058_v41 }
  0xb3   :  { %v2863_v58 = vadd.f32 %v4166_v17, %v2606_v6  ;;  %v1584_v32 = vmul.f32 0.618034, %v593_v34  ;;  %v594_v38 = vadd.f32 %v338_v29, %v4557_v11  ;;  %v1089_v57 = vadd.f32 %v834_v31, %v4574_v13  ;;  %v4609_v34 = vld [vmem:[%s7418_s1 + $0x5c] sm:$0x1] }
  0xb4   :  { %v2607_v60 = vadd.f32 %v2351_v0, %v2095_v56  ;;  %v2352_v10 = vmul.f32 0.318309, %v1343_v8  ;;  %v1344_v15 = vadd.f32 %v835_v42, %v4544_v39  ;;  %v339_v55 = vadd.f32 %v4337_v16, %v4037_v2 }
  0xb5   :  { %3119 = vst [vmem:[%s7420_s2 + $0x46] sm:$0x1] %v2863_v58  ;;  %v2096_v37 = vadd.f32 %v1840_v4, %v1584_v32  ;;  %v836_v62 = vadd.f32 %v4316_v28, %v4069_v46  ;;  %v1585_v9 = vmul.f32 0.618034, %v594_v38  ;;  %v1841_v51 = vmul.f32 0.367879, %v1089_v57 }
  0xb6   :  { %v2864_v40 = vadd.f32 %v4166_v17, %v2607_v60  ;;  %v1090_v63 = vadd.f32 %v835_v42, %v4593_v19  ;;  %v2353_v25 = vmul.f32 0.318309, %v1344_v15  ;;  %v595_v31 = vadd.f32 %v339_v55, %v4574_v13  ;;  %v4622_v60 = vld [vmem:[%s7418_s1 + $0x5d] sm:$0x1] }
  0xb7   :  { %v2608_v14 = vadd.f32 %v2352_v10, %v2096_v37  ;;  %v1345_v23 = vadd.f32 %v836_v62, %v4557_v11  ;;  %v2097_v2 = vadd.f32 %v1841_v51, %v1585_v9  ;;  %v340_v54 = vadd.f32 %v4348_v33, %v4058_v41 }
  0xb8   :  { %3120 = vst [vmem:[%s7420_s2 + $0x47] sm:$0x1] %v2864_v40  ;;  %v1842_v6 = vmul.f32 0.367879, %v1090_v63  ;;  %v837_v56 = vadd.f32 %v4337_v16, %v4085_v18  ;;  %v1586_v8 = vmul.f32 0.618034, %v595_v31  ;;  %v1091_v58 = vadd.f32 %v836_v62, %v4609_v34 }
  0xb9   :  { %v2865_v0 = vadd.f32 %v4166_v17, %v2608_v14  ;;  %v2354_v29 = vmul.f32 0.318309, %v1345_v23  ;;  %v2609_v32 = vadd.f32 %v2353_v25, %v2097_v2  ;;  %v596_v4 = vadd.f32 %v340_v54, %v4593_v19  ;;  %v4638_v63 = vld [vmem:[%s7418_s1 + $0x5e] sm:$0x1] }
  0xba   :  { %v1346_v42 = vadd.f32 %v837_v56, %v4574_v13  ;;  %v341_v41 = vadd.f32 %v4364_v45, %v4069_v46  ;;  %v2098_v10 = vadd.f32 %v1842_v6, %v1586_v8  ;;  %v1843_v38 = vmul.f32 0.367879, %v1091_v58 }
  0xbb   :  { %3121 = vst [vmem:[%s7420_s2 + $0x48] sm:$0x1] %v2865_v0  ;;  %v838_v57 = vadd.f32 %v4348_v33, %v4101_v49  ;;  %v1092_v37 = vadd.f32 %v837_v56, %v4622_v60  ;;  %v2866_v15 = vadd.f32 %v4166_v17, %v2609_v32  ;;  %v1587_v55 = vmul.f32 0.618034, %v596_v4  ;;  %v4656_v32 = vld [vmem:[%s7418_s1 + $0x5f] sm:$0x1] }
  0xbc   :  { %v2355_v62 = vmul.f32 0.318309, %v1346_v42  ;;  %v597_v40 = vadd.f32 %v341_v41, %v4609_v34  ;;  %v2610_v9 = vadd.f32 %v2354_v29, %v2098_v10  ;;  %v342_v14 = vadd.f32 %v4380_v35, %v4085_v18 }
  0xbd   :  { %v1347_v46 = vadd.f32 %v838_v57, %v4593_v19  ;;  %v1844_v51 = vmul.f32 0.367879, %v1092_v37  ;;  %3122 = vst [vmem:[%s7420_s2 + $0x49] sm:$0x1] %v2866_v15  ;;  %v2099_v25 = vadd.f32 %v1843_v38, %v1587_v55  ;;  %v839_v23 = vadd.f32 %v4364_v45, %v4122_v52  ;;  %v4671_v15 = vld [vmem:[%s7418_s1 + $0x60] sm:$0x1] }
  0xbe   :  { %v1588_v31 = vmul.f32 0.618034, %v597_v40  ;;  %v1093_v2 = vadd.f32 %v838_v57, %v4638_v63  ;;  %v2867_v6 = vadd.f32 %v4166_v17, %v2610_v9  ;;  %v598_v56 = vadd.f32 %v342_v14, %v4622_v60  ;;  %v4676_v55 = vld [vmem:[%s7418_s1 + $0x61] sm:$0x1] }
  0xbf   :  { %v2356_v54 = vmul.f32 0.318309, %v1347_v46  ;;  %v343_v0 = vadd.f32 %v4395_v27, %v4101_v49  ;;  %v2611_v18 = vadd.f32 %v2355_v62, %v2099_v25  ;;  %v1348_v29 = vadd.f32 %v839_v23, %v4609_v34 }
  0xc0   :  { %v2100_v8 = vadd.f32 %v1844_v51, %v1588_v31  ;;  %v1845_v58 = vmul.f32 0.367879, %v1093_v2  ;;  %3123 = vst [vmem:[%s7420_s2 + $0x4a] sm:$0x1] %v2867_v6  ;;  %v1589_v4 = vmul.f32 0.618034, %v598_v56  ;;  %v1094_v41 = vadd.f32 %v839_v23, %v4656_v32 }
  0xc1   :  { %v599_v42 = vadd.f32 %v343_v0, %v4638_v63  ;;  %v1349_v49 = vadd.f32 %v4420_v36, %v4622_v60  ;;  %v2868_v10 = vadd.f32 %v4166_v17, %v2611_v18  ;;  %v2357_v57 = vmul.f32 0.318309, %v1348_v29 }
  0xc2   :  { %v2612_v38 = vadd.f32 %v2356_v54, %v2100_v8  ;;  %v600_v37 = vadd.f32 %v4656_v32, %v4122_v52  ;;  %v2101_v62 = vadd.f32 %v1845_v58, %v1589_v4  ;;  %v1846_v9 = vmul.f32 0.367879, %v1094_v41  ;;  %v4705_v58 = vld [vmem:[%s7418_s1 + $0x62] sm:$0x1] }
  0xc3   :  { %v1590_v40 = vmul.f32 0.618034, %v599_v42  ;;  %v2358_v46 = vmul.f32 0.318309, %v1349_v49  ;;  %3124 = vst [vmem:[%s7420_s2 + $0x4b] sm:$0x1] %v2868_v10  ;;  %v4684_v51 = vadd.f32 %v4638_v63, %v4395_v27  ;;  %v4689_v2 = vadd.f32 %v4671_v15, %v4427_v12 }
  0xc4   :  { %v2869_v52 = vadd.f32 %v4166_v17, %v2612_v38  ;;  %v1591_v14 = vmul.f32 0.618034, %v600_v37  ;;  %v1847_v25 = vmul.f32 0.367879, %v4420_v36  ;;  %v2613_v31 = vadd.f32 %v2357_v57, %v2101_v62 }
  0xc5   :  { %v2102_v23 = vadd.f32 %v1846_v9, %v1590_v40  ;;  %v1096_v6 = vadd.f32 %v4676_v55, %v4140_v44  ;;  %v2359_v27 = vmul.f32 0.318309, %v4684_v51  ;;  %v2360_v56 = vmul.f32 0.318309, %v4431_v3 }
  0xc6   :  { %3125 = vst [vmem:[%s7420_s2 + $0x4c] sm:$0x1] %v2869_v52  ;;  %v2103_v54 = vadd.f32 %v1847_v25, %v1591_v14  ;;  %v346_v36 = vadd.f32 %v4447_v5, %v4140_v44  ;;  %v2870_v0 = vadd.f32 %v4166_v17, %v2613_v31  ;;  %v1592_v8 = vmul.f32 0.618034, %v4689_v2 }
  0xc7   :  { %v2614_v18 = vadd.f32 %v2358_v46, %v2102_v23  ;;  %v1848_v29 = vmul.f32 0.367879, %v1096_v6  ;;  %v843_v41 = vadd.f32 %v4427_v12, %v4187_v43  ;;  %v1097_v44 = vadd.f32 %v4431_v3, %v4705_v58  ;;  %v4725_v3 = vld [vmem:[%s7418_s1 + $0x63] sm:$0x1]  ;;  %v4739_v23 = vld [vmem:[%s7418_s1 + $0x64] sm:$0x1] }
  0xc8   :  { %v2615_v4 = vadd.f32 %v2359_v27, %v2103_v54  ;;  %v602_v42 = vadd.f32 %v346_v36, %v4676_v55  ;;  %3126 = vst [vmem:[%s7420_s2 + $0x4d] sm:$0x1] %v2870_v0  ;;  %v347_v38 = vadd.f32 %v4467_v21, %v4173_v1  ;;  %v844_v57 = vadd.f32 %v4447_v5, %v4208_v47 }
  0xc9   :  { %v2871_v49 = vadd.f32 %v4166_v17, %v2614_v18  ;;  %v2104_v10 = vadd.f32 %v1848_v29, %v1592_v8  ;;  %v1352_v62 = vadd.f32 %v843_v41, %v4671_v15  ;;  %v1849_v9 = vmul.f32 0.367879, %v1097_v44 }
  0xca   :  { %v2872_v37 = vadd.f32 %v4166_v17, %v2615_v4  ;;  %v1593_v40 = vmul.f32 0.618034, %v602_v42  ;;  %v603_v1 = vadd.f32 %v347_v38, %v4705_v58  ;;  %v1098_v52 = vadd.f32 %v843_v41, %v4725_v3  ;;  %v4752_v42 = vld [vmem:[%s7418_s1 + $0x65] sm:$0x1] }
  0xcb   :  { %3127 = vst [vmem:[%s7420_s2 + $0x4e] sm:$0x1] %v2871_v49  ;;  %v2616_v46 = vadd.f32 %v2360_v56, %v2104_v10  ;;  %v1353_v14 = vadd.f32 %v844_v57, %v4676_v55  ;;  %v2361_v31 = vmul.f32 0.318309, %v1352_v62  ;;  %v348_v6 = vadd.f32 %v4481_v7, %v4187_v43 }
  0xcc   :  { %3128 = vst [vmem:[%s7420_s2 + $0x4f] sm:$0x1] %v2872_v37  ;;  %v2105_v25 = vadd.f32 %v1849_v9, %v1593_v40  ;;  %v845_v54 = vadd.f32 %v4467_v21, %v4220_v50  ;;  %v1594_v56 = vmul.f32 0.618034, %v603_v1  ;;  %v1850_v36 = vmul.f32 0.367879, %v1098_v52 }
  0xcd   :  { %v2873_v27 = vadd.f32 %v4166_v17, %v2616_v46  ;;  %v2362_v0 = vmul.f32 0.318309, %v1353_v14  ;;  %v604_v8 = vadd.f32 %v348_v6, %v4725_v3  ;;  %v1099_v29 = vadd.f32 %v844_v57, %v4739_v23 }
  0xce   :  { %v2617_v18 = vadd.f32 %v2361_v31, %v2105_v25  ;;  %v1354_v4 = vadd.f32 %v845_v54, %v4705_v58  ;;  %v2106_v43 = vadd.f32 %v1850_v36, %v1594_v56  ;;  %v349_v41 = vadd.f32 %v4494_v61, %v4208_v47  ;;  %v4768_v47 = vld [vmem:[%s7418_s1 + $0x66] sm:$0x1] }
  0xcf   :  { %3129 = vst [vmem:[%s7420_s2 + $0x50] sm:$0x1] %v2873_v27  ;;  %v846_v44 = vadd.f32 %v4481_v7, %v4236_v48  ;;  %v1100_v49 = vadd.f32 %v845_v54, %v4752_v42  ;;  %v1595_v38 = vmul.f32 0.618034, %v604_v8  ;;  %v1851_v57 = vmul.f32 0.367879, %v1099_v29 }
  0xd0   :  { %v2874_v10 = vadd.f32 %v4166_v17, %v2617_v18  ;;  %v2363_v37 = vmul.f32 0.318309, %v1354_v4  ;;  %v2618_v62 = vadd.f32 %v2362_v0, %v2106_v43  ;;  %v605_v40 = vadd.f32 %v349_v41, %v4739_v23 }
  0xd1   :  { %v1355_v9 = vadd.f32 %v846_v44, %v4725_v3  ;;  %v1852_v46 = vmul.f32 0.367879, %v1100_v49  ;;  %v2107_v1 = vadd.f32 %v1851_v57, %v1595_v38  ;;  %v350_v52 = vadd.f32 %v4510_v30, %v4220_v50  ;;  %v4786_v50 = vld [vmem:[%s7418_s1 + $0x67] sm:$0x1] }
  0xd2   :  { %3130 = vst [vmem:[%s7420_s2 + $0x51] sm:$0x1] %v2874_v10  ;;  %v847_v14 = vadd.f32 %v4494_v61, %v4252_v53  ;;  %v1101_v25 = vadd.f32 %v846_v44, %v4768_v47  ;;  %v2875_v31 = vadd.f32 %v4166_v17, %v2618_v62  ;;  %v1596_v6 = vmul.f32 0.618034, %v605_v40  ;;  %v4802_v62 = vld [vmem:[%s7418_s1 + $0x68] sm:$0x1] }
  0xd3   :  { %v2364_v54 = vmul.f32 0.318309, %v1355_v9  ;;  %v351_v27 = vadd.f32 %v4528_v26, %v4236_v48  ;;  %v2619_v56 = vadd.f32 %v2363_v37, %v2107_v1  ;;  %v606_v36 = vadd.f32 %v350_v52, %v4752_v42 }
  0xd4   :  { %v1356_v0 = vadd.f32 %v847_v14, %v4739_v23  ;;  %v1853_v18 = vmul.f32 0.367879, %v1101_v25  ;;  %3131 = vst [vmem:[%s7420_s2 + $0x52] sm:$0x1] %v2875_v31  ;;  %v2108_v8 = vadd.f32 %v1852_v46, %v1596_v6  ;;  %v848_v48 = vadd.f32 %v4510_v30, %v4273_v22 }
  0xd5   :  { %v607_v29 = vadd.f32 %v351_v27, %v4768_v47  ;;  %v1102_v4 = vadd.f32 %v847_v14, %v4786_v50  ;;  %v2876_v43 = vadd.f32 %v4166_v17, %v2619_v56  ;;  %v1597_v41 = vmul.f32 0.618034, %v606_v36  ;;  %v4818_v56 = vld [vmem:[%s7418_s1 + $0x69] sm:$0x1] }
  0xd6   :  { %v2365_v44 = vmul.f32 0.318309, %v1356_v0  ;;  %v352_v49 = vadd.f32 %v4544_v39, %v4252_v53  ;;  %v2620_v10 = vadd.f32 %v2364_v54, %v2108_v8  ;;  %v1357_v38 = vadd.f32 %v848_v48, %v4752_v42 }
  0xd7   :  { %v1598_v57 = vmul.f32 0.618034, %v607_v29  ;;  %v1854_v37 = vmul.f32 0.367879, %v1102_v4  ;;  %3132 = vst [vmem:[%s7420_s2 + $0x53] sm:$0x1] %v2876_v43  ;;  %v2109_v40 = vadd.f32 %v1853_v18, %v1597_v41  ;;  %v849_v53 = vadd.f32 %v4528_v26, %v4284_v59 }
  0xd8   :  { %v608_v9 = vadd.f32 %v352_v49, %v4786_v50  ;;  %v1103_v46 = vadd.f32 %v848_v48, %v4802_v62  ;;  %v2877_v1 = vadd.f32 %v4166_v17, %v2620_v10  ;;  %v2366_v14 = vmul.f32 0.318309, %v1357_v38  ;;  %v4830_v18 = vld [vmem:[%s7419_s0] sm:$0x1]  ;;  %v4840_v10 = vld [vmem:[%s7418_s1 + $0x6a] sm:$0x1] }
  0xd9   :  { %v2110_v52 = vadd.f32 %v1854_v37, %v1598_v57  ;;  %v353_v25 = vadd.f32 %v4557_v11, %v4273_v22  ;;  %v2621_v31 = vadd.f32 %v2365_v44, %v2109_v40  ;;  %v1358_v6 = vadd.f32 %v849_v53, %v4768_v47 }
  0xda   :  { %v1599_v54 = vmul.f32 0.618034, %v608_v9  ;;  %v1855_v27 = vmul.f32 0.367879, %v1103_v46  ;;  %3133 = vst [vmem:[%s7420_s2 + $0x54] sm:$0x1] %v2877_v1  ;;  %v850_v22 = vadd.f32 %v4544_v39, %v4300_v20  ;;  %v1104_v0 = vadd.f32 %v849_v53, %v4818_v56 }
  0xdb   :  { %v2622_v17 = vadd.f32 %v2366_v14, %v2110_v52  ;;  %v609_v36 = vadd.f32 %v353_v25, %v4802_v62  ;;  %v2878_v8 = vadd.f32 %v4830_v18, %v2621_v31  ;;  %v2367_v48 = vmul.f32 0.318309, %v1358_v6  ;;  %v4861_v31 = vld [vmem:[%s7418_s1 + $0x6b] sm:$0x1] }
  0xdc   :  { %v2111_v29 = vadd.f32 %v1855_v27, %v1599_v54  ;;  %v354_v4 = vadd.f32 %v4574_v13, %v4284_v59  ;;  %v1359_v41 = vadd.f32 %v850_v22, %v4786_v50  ;;  %v1856_v49 = vmul.f32 0.367879, %v1104_v0 }
  0xdd   :  { %v2879_v43 = vadd.f32 %v4830_v18, %v2622_v17  ;;  %v1600_v44 = vmul.f32 0.618034, %v609_v36  ;;  %3134 = vst [vmem:[%s7420_s2 + $0x55] sm:$0x1] %v2878_v8  ;;  %v851_v59 = vadd.f32 %v4557_v11, %v4316_v28  ;;  %v1105_v37 = vadd.f32 %v850_v22, %v4840_v10  ;;  %v4872_v22 = vld [vmem:[%s7418_s1 + $0x6c] sm:$0x1] }
  0xde   :  { %v2623_v38 = vadd.f32 %v2367_v48, %v2111_v29  ;;  %v610_v57 = vadd.f32 %v354_v4, %v4818_v56  ;;  %v2368_v9 = vmul.f32 0.318309, %v1359_v41  ;;  %v355_v53 = vadd.f32 %v4593_v19, %v4300_v20 }
  0xdf   :  { %3135 = vst [vmem:[%s7420_s2 + $0x56] sm:$0x1] %v2879_v43  ;;  %v2112_v40 = vadd.f32 %v1856_v49, %v1600_v44  ;;  %v852_v46 = vadd.f32 %v4574_v13, %v4337_v16  ;;  %v1360_v52 = vadd.f32 %v851_v59, %v4802_v62  ;;  %v1857_v25 = vmul.f32 0.367879, %v1105_v37 }
  0xe0   :  { %v2880_v1 = vadd.f32 %v4830_v18, %v2623_v38  ;;  %v1601_v14 = vmul.f32 0.618034, %v610_v57  ;;  %v611_v54 = vadd.f32 %v355_v53, %v4840_v10  ;;  %v1106_v27 = vadd.f32 %v851_v59, %v4861_v31  ;;  %v4885_v57 = vld [vmem:[%s7418_s1 + $0x6d] sm:$0x1] }
  0xe1   :  { %v2624_v6 = vadd.f32 %v2368_v9, %v2112_v40  ;;  %v1361_v20 = vadd.f32 %v852_v46, %v4818_v56  ;;  %v2369_v36 = vmul.f32 0.318309, %v1360_v52  ;;  %v356_v0 = vadd.f32 %v4609_v34, %v4316_v28 }
  0xe2   :  { %3136 = vst [vmem:[%s7420_s2 + $0x57] sm:$0x1] %v2880_v1  ;;  %v2113_v17 = vadd.f32 %v1857_v25, %v1601_v14  ;;  %v853_v8 = vadd.f32 %v4593_v19, %v4348_v33  ;;  %v1602_v48 = vmul.f32 0.618034, %v611_v54  ;;  %v1858_v4 = vmul.f32 0.367879, %v1106_v27 }
  0xe3   :  { %v2881_v29 = vadd.f32 %v4830_v18, %v2624_v6  ;;  %v2370_v43 = vmul.f32 0.318309, %v1361_v20  ;;  %v612_v44 = vadd.f32 %v356_v0, %v4861_v31  ;;  %v1107_v49 = vadd.f32 %v852_v46, %v4872_v22 }
  0xe4   :  { %v2625_v41 = vadd.f32 %v2369_v36, %v2113_v17  ;;  %v1362_v38 = vadd.f32 %v853_v8, %v4840_v10  ;;  %v2114_v28 = vadd.f32 %v1858_v4, %v1602_v48  ;;  %v357_v59 = vadd.f32 %v4622_v60, %v4337_v16  ;;  %v4901_v16 = vld [vmem:[%s7418_s1 + $0x6e] sm:$0x1] }
  0xe5   :  { %3137 = vst [vmem:[%s7420_s2 + $0x58] sm:$0x1] %v2881_v29  ;;  %v854_v37 = vadd.f32 %v4609_v34, %v4364_v45  ;;  %v1108_v40 = vadd.f32 %v853_v8, %v4885_v57  ;;  %v1603_v53 = vmul.f32 0.618034, %v612_v44  ;;  %v1859_v46 = vmul.f32 0.367879, %v1107_v49 }
  0xe6   :  { %v2882_v9 = vadd.f32 %v4830_v18, %v2625_v41  ;;  %v2371_v1 = vmul.f32 0.318309, %v1362_v38  ;;  %v2626_v52 = vadd.f32 %v2370_v43, %v2114_v28  ;;  %v613_v14 = vadd.f32 %v357_v59, %v4872_v22  ;;  %v4931_v28 = vld [vmem:[%s7418_s1 + $0x70] sm:$0x1] }
  0xe7   :  { %v1363_v25 = vadd.f32 %v854_v37, %v4861_v31  ;;  %v1860_v6 = vmul.f32 0.367879, %v1108_v40  ;;  %v2115_v54 = vadd.f32 %v1859_v46, %v1603_v53  ;;  %v358_v27 = vadd.f32 %v4638_v63, %v4348_v33  ;;  %v4919_v33 = vld [vmem:[%s7418_s1 + $0x6f] sm:$0x1]  ;;  %v4939_v53 = vld [vmem:[%s7418_s1 + $0x71] sm:$0x1] }
  0xe8   :  { %3138 = vst [vmem:[%s7420_s2 + $0x59] sm:$0x1] %v2882_v9  ;;  %v855_v20 = vadd.f32 %v4622_v60, %v4380_v35  ;;  %v1109_v17 = vadd.f32 %v854_v37, %v4901_v16  ;;  %v2883_v36 = vadd.f32 %v4830_v18, %v2626_v52  ;;  %v1604_v0 = vmul.f32 0.618034, %v613_v14 }
  0xe9   :  { %v2372_v8 = vmul.f32 0.318309, %v1363_v25  ;;  %v359_v29 = vadd.f32 %v4656_v32, %v4364_v45  ;;  %v2627_v48 = vadd.f32 %v2371_v1, %v2115_v54  ;;  %v614_v4 = vadd.f32 %v358_v27, %v4885_v57 }
  0xea   :  { %v1364_v43 = vadd.f32 %v855_v20, %v4872_v22  ;;  %v1861_v41 = vmul.f32 0.367879, %v1109_v17  ;;  %3139 = vst [vmem:[%s7420_s2 + $0x5a] sm:$0x1] %v2883_v36  ;;  %v2116_v44 = vadd.f32 %v1860_v6, %v1604_v0  ;;  %v1110_v45 = vadd.f32 %v855_v20, %v4919_v33 }
  0xeb   :  { %v615_v49 = vadd.f32 %v359_v29, %v4901_v16  ;;  %v1365_v38 = vadd.f32 %v4684_v51, %v4885_v57  ;;  %v2884_v59 = vadd.f32 %v4830_v18, %v2627_v48  ;;  %v1605_v37 = vmul.f32 0.618034, %v614_v4 }
  0xec   :  { %v2373_v40 = vmul.f32 0.318309, %v1364_v43  ;;  %v616_v9 = vadd.f32 %v4919_v33, %v4380_v35  ;;  %v2628_v46 = vadd.f32 %v2372_v8, %v2116_v44  ;;  %v1862_v52 = vmul.f32 0.367879, %v1110_v45 }
  0xed   :  { %v1606_v1 = vmul.f32 0.618034, %v615_v49  ;;  %v2374_v14 = vmul.f32 0.318309, %v1365_v38  ;;  %3140 = vst [vmem:[%s7420_s2 + $0x5b] sm:$0x1] %v2884_v59  ;;  %v2117_v25 = vadd.f32 %v1861_v41, %v1605_v37  ;;  %v4946_v6 = vadd.f32 %v4901_v16, %v4656_v32 }
  0xee   :  { %v1607_v54 = vmul.f32 0.618034, %v616_v9  ;;  %v1863_v35 = vmul.f32 0.367879, %v4684_v51  ;;  %v2885_v27 = vadd.f32 %v4830_v18, %v2628_v46  ;;  %v4952_v17 = vadd.f32 %v4931_v28, %v4676_v55  ;;  %v4961_v51 = vld [vmem:[%s7418_s1 + $0x72] sm:$0x1] }
  0xef   :  { %v2118_v20 = vadd.f32 %v1862_v52, %v1606_v1  ;;  %v1112_v36 = vadd.f32 %v4939_v53, %v4411_v24  ;;  %v2629_v0 = vadd.f32 %v2373_v40, %v2117_v25  ;;  %v2375_v29 = vmul.f32 0.318309, %v4946_v6 }
  0xf0   :  { %v2119_v8 = vadd.f32 %v1863_v35, %v1607_v54  ;;  %v2376_v32 = vmul.f32 0.318309, %v4689_v2  ;;  %3141 = vst [vmem:[%s7420_s2 + $0x5c] sm:$0x1] %v2885_v27  ;;  %v1608_v4 = vmul.f32 0.618034, %v4952_v17  ;;  %v362_v41 = vadd.f32 %v4705_v58, %v4411_v24 }
  0xf1   :  { %v2630_v48 = vadd.f32 %v2374_v14, %v2118_v20  ;;  %v1864_v43 = vmul.f32 0.367879, %v1112_v36  ;;  %v2886_v44 = vadd.f32 %v4830_v18, %v2629_v0  ;;  %v859_v45 = vadd.f32 %v4676_v55, %v4447_v5 }
  0xf2   :  { %v2631_v49 = vadd.f32 %v2375_v29, %v2119_v8  ;;  %v1113_v38 = vadd.f32 %v4689_v2, %v4961_v51  ;;  %v618_v40 = vadd.f32 %v362_v41, %v4939_v53  ;;  %v363_v9 = vadd.f32 %v4725_v3, %v4427_v12  ;;  %v4986_v2 = vld [vmem:[%s7418_s1 + $0x73] sm:$0x1] }
  0xf3   :  { %v2887_v59 = vadd.f32 %v4830_v18, %v2630_v48  ;;  %v2120_v37 = vadd.f32 %v1864_v43, %v1608_v4  ;;  %3142 = vst [vmem:[%s7420_s2 + $0x5d] sm:$0x1] %v2886_v44  ;;  %v1368_v46 = vadd.f32 %v859_v45, %v4931_v28  ;;  %v860_v52 = vadd.f32 %v4705_v58, %v4467_v21  ;;  %v5007_v48 = vld [vmem:[%s7418_s1 + $0x74] sm:$0x1] }
  0xf4   :  { %v2888_v24 = vadd.f32 %v4830_v18, %v2631_v49  ;;  %v1865_v1 = vmul.f32 0.367879, %v1113_v38  ;;  %v1609_v14 = vmul.f32 0.618034, %v618_v40  ;;  %v619_v25 = vadd.f32 %v363_v9, %v4961_v51 }
  0xf5   :  { %3143 = vst [vmem:[%s7420_s2 + $0x5e] sm:$0x1] %v2887_v59  ;;  %v2632_v12 = vadd.f32 %v2376_v32, %v2120_v37  ;;  %v1114_v54 = vadd.f32 %v859_v45, %v4986_v2  ;;  %v2377_v35 = vmul.f32 0.318309, %v1368_v46  ;;  %v1369_v27 = vadd.f32 %v860_v52, %v4939_v53  ;;  %v5018_v45 = vld [vmem:[%s7418_s1 + $0x75] sm:$0x1] }
  0xf6   :  { %3144 = vst [vmem:[%s7420_s2 + $0x5f] sm:$0x1] %v2888_v24  ;;  %v364_v20 = vadd.f32 %v4739_v23, %v4447_v5  ;;  %v861_v36 = vadd.f32 %v4725_v3, %v4481_v7  ;;  %v2121_v8 = vadd.f32 %v1865_v1, %v1609_v14  ;;  %v1610_v29 = vmul.f32 0.618034, %v619_v25 }
  0xf7   :  { %v2889_v0 = vadd.f32 %v4830_v18, %v2632_v12  ;;  %v1866_v32 = vmul.f32 0.367879, %v1114_v54  ;;  %v2378_v4 = vmul.f32 0.318309, %v1369_v27  ;;  %v1115_v41 = vadd.f32 %v860_v52, %v5007_v48 }
  0xf8   :  { %v620_v43 = vadd.f32 %v364_v20, %v4986_v2  ;;  %v1370_v5 = vadd.f32 %v861_v36, %v4961_v51  ;;  %v2633_v44 = vadd.f32 %v2377_v35, %v2121_v8  ;;  %v365_v38 = vadd.f32 %v4752_v42, %v4467_v21  ;;  %v5031_v21 = vld [vmem:[%s7418_s1 + $0x76] sm:$0x1] }
  0xf9   :  { %3145 = vst [vmem:[%s7420_s2 + $0x60] sm:$0x1] %v2889_v0  ;;  %v2122_v49 = vadd.f32 %v1866_v32, %v1610_v29  ;;  %v862_v59 = vadd.f32 %v4739_v23, %v4494_v61  ;;  %v1867_v40 = vmul.f32 0.367879, %v1115_v41  ;;  %v1116_v24 = vadd.f32 %v861_v36, %v5018_v45 }
  0xfa   :  { %v1611_v37 = vmul.f32 0.618034, %v620_v43  ;;  %v2379_v9 = vmul.f32 0.318309, %v1370_v5  ;;  %v2890_v46 = vadd.f32 %v4830_v18, %v2633_v44  ;;  %v621_v52 = vadd.f32 %v365_v38, %v5007_v48 }
  0xfb   :  { %v2634_v1 = vadd.f32 %v2378_v4, %v2122_v49  ;;  %v1371_v12 = vadd.f32 %v862_v59, %v4986_v2  ;;  %v1868_v25 = vmul.f32 0.367879, %v1116_v24  ;;  %v366_v54 = vadd.f32 %v4768_v47, %v4481_v7  ;;  %v5047_v7 = vld [vmem:[%s7418_s1 + $0x77] sm:$0x1]  ;;  %v5063_v24 = vld [vmem:[%s7418_s1 + $0x78] sm:$0x1] }
  0xfc   :  { %v2123_v14 = vadd.f32 %v1867_v40, %v1611_v37  ;;  %v863_v35 = vadd.f32 %v4752_v42, %v4510_v30  ;;  %3146 = vst [vmem:[%s7420_s2 + $0x61] sm:$0x1] %v2890_v46  ;;  %v1612_v20 = vmul.f32 0.618034, %v621_v52  ;;  %v1117_v0 = vadd.f32 %v862_v59, %v5031_v21 }
  0xfd   :  { %v2891_v27 = vadd.f32 %v4830_v18, %v2634_v1  ;;  %v2380_v36 = vmul.f32 0.318309, %v1371_v12  ;;  %v622_v29 = vadd.f32 %v366_v54, %v5018_v45  ;;  %v367_v4 = vadd.f32 %v4786_v50, %v4494_v61 }
  0xfe   :  { %v2635_v8 = vadd.f32 %v2379_v9, %v2123_v14  ;;  %v1372_v32 = vadd.f32 %v863_v35, %v5007_v48  ;;  %v2124_v43 = vadd.f32 %v1868_v25, %v1612_v20  ;;  %v1869_v41 = vmul.f32 0.367879, %v1117_v0 }
  0xff   :  { %3147 = vst [vmem:[%s7420_s2 + $0x62] sm:$0x1] %v2891_v27  ;;  %v864_v5 = vadd.f32 %v4768_v47, %v4528_v26  ;;  %v1118_v44 = vadd.f32 %v863_v35, %v5047_v7  ;;  %v1613_v38 = vmul.f32 0.618034, %v622_v29  ;;  %v623_v37 = vadd.f32 %v367_v4, %v5031_v21 }
 0x100   :  { %v2892_v49 = vadd.f32 %v4830_v18, %v2635_v8  ;;  %v2381_v59 = vmul.f32 0.318309, %v1372_v32  ;;  %v2636_v40 = vadd.f32 %v2380_v36, %v2124_v43  ;;  %v368_v46 = vadd.f32 %v4802_v62, %v4510_v30  ;;  %v5081_v8 = vld [vmem:[%s7418_s1 + $0x79] sm:$0x1] }
 0x101   :  { %v1373_v61 = vadd.f32 %v864_v5, %v5018_v45  ;;  %v1870_v9 = vmul.f32 0.367879, %v1118_v44  ;;  %v2125_v1 = vadd.f32 %v1869_v41, %v1613_v38  ;;  %v1614_v52 = vmul.f32 0.618034, %v623_v37 }
 0x102   :  { %3148 = vst [vmem:[%s7420_s2 + $0x63] sm:$0x1] %v2892_v49  ;;  %v865_v12 = vadd.f32 %v4786_v50, %v4544_v39  ;;  %v1119_v14 = vadd.f32 %v864_v5, %v5063_v24  ;;  %v2893_v25 = vadd.f32 %v4830_v18, %v2636_v40  ;;  %v624_v35 = vadd.f32 %v368_v46, %v5047_v7  ;;  %v5097_v40 = vld [vmem:[%s7418_s1 + $0x7a] sm:$0x1] }
 0x103   :  { %v2382_v54 = vmul.f32 0.318309, %v1373_v61  ;;  %v369_v27 = vadd.f32 %v4818_v56, %v4528_v26  ;;  %v2637_v30 = vadd.f32 %v2381_v59, %v2125_v1  ;;  %v2126_v20 = vadd.f32 %v1870_v9, %v1614_v52 }
 0x104   :  { %v1374_v36 = vadd.f32 %v865_v12, %v5031_v21  ;;  %v1871_v0 = vmul.f32 0.367879, %v1119_v14  ;;  %3149 = vst [vmem:[%s7420_s2 + $0x64] sm:$0x1] %v2893_v25  ;;  %v1615_v29 = vmul.f32 0.618034, %v624_v35  ;;  %v866_v26 = vadd.f32 %v4802_v62, %v4557_v11 }
 0x105   :  { %v625_v32 = vadd.f32 %v369_v27, %v5063_v24  ;;  %v1120_v4 = vadd.f32 %v865_v12, %v5081_v8  ;;  %v2894_v43 = vadd.f32 %v4830_v18, %v2637_v30  ;;  %v2638_v41 = vadd.f32 %v2382_v54, %v2126_v20  ;;  %v5110_v14 = vld [vmem:[%s7418_s1 + $0x7b] sm:$0x1] }
 0x106   :  { %v2383_v5 = vmul.f32 0.318309, %v1374_v36  ;;  %v370_v44 = vadd.f32 %v4840_v10, %v4544_v39  ;;  %v2127_v49 = vadd.f32 %v1871_v0, %v1615_v29  ;;  %v1375_v38 = vadd.f32 %v866_v26, %v5047_v7 }
 0x107   :  { %v1616_v59 = vmul.f32 0.618034, %v625_v32  ;;  %v1872_v37 = vmul.f32 0.367879, %v1120_v4  ;;  %3150 = vst [vmem:[%s7420_s2 + $0x65] sm:$0x1] %v2894_v43  ;;  %v2895_v61 = vadd.f32 %v4830_v18, %v2638_v41  ;;  %v867_v39 = vadd.f32 %v4818_v56, %v4574_v13 }
 0x108   :  { %v626_v9 = vadd.f32 %v370_v44, %v5081_v8  ;;  %v1121_v46 = vadd.f32 %v866_v26, %v5097_v40  ;;  %v2639_v1 = vadd.f32 %v2383_v5, %v2127_v49  ;;  %v2384_v12 = vmul.f32 0.318309, %v1375_v38  ;;  %v5127_v4 = vld [vmem:[%s7418_s1 + $0x7c] sm:$0x1] }
 0x109   :  { %v2128_v52 = vadd.f32 %v1872_v37, %v1616_v59  ;;  %v371_v25 = vadd.f32 %v4861_v31, %v4557_v11  ;;  %3151 = vst [vmem:[%s7420_s2 + $0x66] sm:$0x1] %v2895_v61  ;;  %v1376_v54 = vadd.f32 %v867_v39, %v5063_v24  ;;  %v868_v30 = vadd.f32 %v4840_v10, %v4593_v19 }
 0x10a   :  { %v1617_v35 = vmul.f32 0.618034, %v626_v9  ;;  %v1873_v27 = vmul.f32 0.367879, %v1121_v46  ;;  %v2896_v20 = vadd.f32 %v4830_v18, %v2639_v1  ;;  %v1122_v29 = vadd.f32 %v867_v39, %v5110_v14  ;;  %v5146_v39 = vld [vmem:[%s7418_s1 + $0x7d] sm:$0x1] }
 0x10b   :  { %v2640_v36 = vadd.f32 %v2384_v12, %v2128_v52  ;;  %v627_v0 = vadd.f32 %v371_v25, %v5097_v40  ;;  %v2385_v11 = vmul.f32 0.318309, %v1376_v54  ;;  %v1377_v26 = vadd.f32 %v868_v30, %v5081_v8 }
 0x10c   :  { %v2129_v32 = vadd.f32 %v1873_v27, %v1617_v35  ;;  %v372_v43 = vadd.f32 %v4872_v22, %v4574_v13  ;;  %3152 = vst [vmem:[%s7420_s2 + $0x67] sm:$0x1] %v2896_v20  ;;  %v1874_v44 = vmul.f32 0.367879, %v1122_v29  ;;  %v869_v49 = vadd.f32 %v4861_v31, %v4609_v34 }
 0x10d   :  { %v2897_v41 = vadd.f32 %v4830_v18, %v2640_v36  ;;  %v1618_v5 = vmul.f32 0.618034, %v627_v0  ;;  %v2386_v59 = vmul.f32 0.318309, %v1377_v26  ;;  %v1123_v61 = vadd.f32 %v868_v30, %v5127_v4  ;;  %v5162_v0 = vld [vmem:[%s7418_s1 + $0x7e] sm:$0x1] }
 0x10e   :  { %v2641_v38 = vadd.f32 %v2385_v11, %v2129_v32  ;;  %v628_v37 = vadd.f32 %v372_v43, %v5110_v14  ;;  %v1378_v9 = vadd.f32 %v869_v49, %v5097_v40  ;;  %v373_v46 = vadd.f32 %v4885_v57, %v4593_v19 }
 0x10f   :  { %3153 = vst [vmem:[%s7420_s2 + $0x68] sm:$0x1] %v2897_v41  ;;  %v2130_v13 = vadd.f32 %v1874_v44, %v1618_v5  ;;  %v870_v1 = vadd.f32 %v4872_v22, %v4622_v60  ;;  %v1875_v25 = vmul.f32 0.367879, %v1123_v61  ;;  %v1124_v54 = vadd.f32 %v869_v49, %v5146_v39 }
 0x110   :  { %v2898_v52 = vadd.f32 %v4830_v18, %v2641_v38  ;;  %v1619_v12 = vmul.f32 0.618034, %v628_v37  ;;  %v2387_v27 = vmul.f32 0.318309, %v1378_v9  ;;  %v629_v30 = vadd.f32 %v373_v46, %v5127_v4  ;;  %v5175_v38 = vld [vmem:[%s7418_s1 + $0x7f] sm:$0x1] }
 0x111   :  { %v2642_v35 = vadd.f32 %v2386_v59, %v2130_v13  ;;  %v1379_v20 = vadd.f32 %v870_v1, %v5110_v14  ;;  %v1876_v36 = vmul.f32 0.367879, %v1124_v54  ;;  %v374_v29 = vadd.f32 %v4901_v16, %v4609_v34 }
 0x112   :  { %3154 = vst [vmem:[%s7420_s2 + $0x69] sm:$0x1] %v2898_v52  ;;  %v2131_v19 = vadd.f32 %v1875_v25, %v1619_v12  ;;  %v871_v32 = vadd.f32 %v4885_v57, %v4638_v63  ;;  %v1620_v26 = vmul.f32 0.618034, %v629_v30  ;;  %v1125_v41 = vadd.f32 %v870_v1, %v5162_v0 }
 0x113   :  { %v2899_v11 = vadd.f32 %v4830_v18, %v2642_v35  ;;  %v2388_v43 = vmul.f32 0.318309, %v1379_v20  ;;  %v630_v44 = vadd.f32 %v374_v29, %v5146_v39  ;;  %v375_v34 = vadd.f32 %v4919_v33, %v4622_v60  ;;  %v5190_v60 = vld [vmem:[%s7418_s1 + $0x80] sm:$0x1] }
 0x114   :  { %v2643_v5 = vadd.f32 %v2387_v27, %v2131_v19  ;;  %v1380_v49 = vadd.f32 %v871_v32, %v5127_v4  ;;  %v2132_v59 = vadd.f32 %v1876_v36, %v1620_v26  ;;  %v1877_v37 = vmul.f32 0.367879, %v1125_v41  ;;  %v5197_v27 = vld [vmem:[%s7418_s1 + $0x81] sm:$0x1] }
 0x115   :  { %3155 = vst [vmem:[%s7420_s2 + $0x6a] sm:$0x1] %v2899_v11  ;;  %v1126_v61 = vadd.f32 %v871_v32, %v5175_v38  ;;  %v1381_v13 = vadd.f32 %v4946_v6, %v5146_v39  ;;  %v1621_v46 = vmul.f32 0.618034, %v630_v44  ;;  %v631_v52 = vadd.f32 %v375_v34, %v5162_v0 }
 0x116   :  { %v2900_v9 = vadd.f32 %v4830_v18, %v2643_v5  ;;  %v2389_v1 = vmul.f32 0.318309, %v1380_v49  ;;  %v2644_v12 = vadd.f32 %v2388_v43, %v2132_v59  ;;  %v632_v35 = vadd.f32 %v5175_v38, %v4638_v63 }
 0x117   :  { %v1878_v25 = vmul.f32 0.367879, %v1126_v61  ;;  %v2390_v54 = vmul.f32 0.318309, %v1381_v13  ;;  %v2133_v30 = vadd.f32 %v1877_v37, %v1621_v46  ;;  %v1622_v20 = vmul.f32 0.618034, %v631_v52 }
 0x118   :  { %3156 = vst [vmem:[%s7420_s2 + $0x6b] sm:$0x1] %v2900_v9  ;;  %v5204_v19 = vadd.f32 %v5162_v0, %v4919_v33  ;;  %v1879_v36 = vmul.f32 0.367879, %v4946_v6  ;;  %v2901_v29 = vadd.f32 %v4830_v18, %v2644_v12  ;;  %v1623_v63 = vmul.f32 0.618034, %v632_v35 }
 0x119   :  { %v5210_v32 = vadd.f32 %v5190_v60, %v4939_v53  ;;  %v1128_v11 = vadd.f32 %v5197_v27, %v4671_v15  ;;  %v2645_v26 = vadd.f32 %v2389_v1, %v2133_v30  ;;  %v2134_v43 = vadd.f32 %v1878_v25, %v1622_v20  ;;  %v5219_v33 = vld [vmem:[%s7418_s1 + $0x82] sm:$0x1] }
 0x11a   :  { %v2391_v41 = vmul.f32 0.318309, %v5204_v19  ;;  %v2392_v5 = vmul.f32 0.318309, %v4952_v17  ;;  %3157 = vst [vmem:[%s7420_s2 + $0x6c] sm:$0x1] %v2901_v29  ;;  %v2135_v6 = vadd.f32 %v1879_v36, %v1623_v63  ;;  %v378_v34 = vadd.f32 %v4961_v51, %v4671_v15 }
 0x11b   :  { %v1624_v44 = vmul.f32 0.618034, %v5210_v32  ;;  %v1880_v49 = vmul.f32 0.367879, %v1128_v11  ;;  %v2902_v59 = vadd.f32 %v4830_v18, %v2645_v26  ;;  %v2646_v37 = vadd.f32 %v2390_v54, %v2134_v43 }
 0x11c   :  { %v875_v61 = vadd.f32 %v4939_v53, %v4705_v58  ;;  %v1129_v13 = vadd.f32 %v4952_v17, %v5219_v33  ;;  %v2647_v9 = vadd.f32 %v2391_v41, %v2135_v6  ;;  %v634_v1 = vadd.f32 %v378_v34, %v5197_v27 }
 0x11d   :  { %v2136_v46 = vadd.f32 %v1880_v49, %v1624_v44  ;;  %v379_v52 = vadd.f32 %v4986_v2, %v4676_v55  ;;  %3158 = vst [vmem:[%s7420_s2 + $0x6d] sm:$0x1] %v2902_v59  ;;  %v2903_v15 = vadd.f32 %v4830_v18, %v2646_v37  ;;  %v876_v54 = vadd.f32 %v4961_v51, %v4725_v3  ;;  %v5246_v55 = vld [vmem:[%s7418_s1 + $0x83] sm:$0x1] }
 0x11e   :  { %v1384_v12 = vadd.f32 %v875_v61, %v5190_v60  ;;  %v1881_v25 = vmul.f32 0.367879, %v1129_v13  ;;  %v2904_v17 = vadd.f32 %v4830_v18, %v2647_v9  ;;  %v1625_v30 = vmul.f32 0.618034, %v634_v1 }
 0x11f   :  { %v2648_v35 = vadd.f32 %v2392_v5, %v2136_v46  ;;  %v635_v20 = vadd.f32 %v379_v52, %v5219_v33  ;;  %3159 = vst [vmem:[%s7420_s2 + $0x6e] sm:$0x1] %v2903_v15  ;;  %v1130_v29 = vadd.f32 %v875_v61, %v5246_v55  ;;  %v1385_v63 = vadd.f32 %v876_v54, %v5197_v27  ;;  %v5263_v5 = vld [vmem:[%s7418_s1 + $0x84] sm:$0x1]  ;;  %v5276_v61 = vld [vmem:[%s7418_s1 + $0x85] sm:$0x1] }
 0x120   :  { %v2393_v36 = vmul.f32 0.318309, %v1384_v12  ;;  %v380_v11 = vadd.f32 %v5007_v48, %v4705_v58  ;;  %3160 = vst [vmem:[%s7420_s2 + $0x6f] sm:$0x1] %v2904_v17  ;;  %v2137_v43 = vadd.f32 %v1881_v25, %v1625_v30  ;;  %v877_v6 = vadd.f32 %v4986_v2, %v4739_v23 }
 0x121   :  { %v2905_v26 = vadd.f32 %v4830_v18, %v2648_v35  ;;  %v1626_v41 = vmul.f32 0.618034, %v635_v20  ;;  %v1882_v44 = vmul.f32 0.367879, %v1130_v29  ;;  %v2394_v49 = vmul.f32 0.318309, %v1385_v63 }
 0x122   :  { %v636_v58 = vadd.f32 %v380_v11, %v5246_v55  ;;  %v1131_v34 = vadd.f32 %v876_v54, %v5263_v5  ;;  %v2649_v59 = vadd.f32 %v2393_v36, %v2137_v43  ;;  %v1386_v37 = vadd.f32 %v877_v6, %v5219_v33 }
 0x123   :  { %3161 = vst [vmem:[%s7420_s2 + $0x70] sm:$0x1] %v2905_v26  ;;  %v381_v13 = vadd.f32 %v5018_v45, %v4725_v3  ;;  %v878_v9 = vadd.f32 %v5007_v48, %v4752_v42  ;;  %v2138_v46 = vadd.f32 %v1882_v44, %v1626_v41  ;;  %v1132_v15 = vadd.f32 %v877_v6, %v5276_v61  ;;  %v5289_v3 = vld [vmem:[%s7418_s1 + $0x86] sm:$0x1] }
 0x124   :  { %v1627_v1 = vmul.f32 0.618034, %v636_v58  ;;  %v1883_v52 = vmul.f32 0.367879, %v1131_v34  ;;  %v2906_v12 = vadd.f32 %v4830_v18, %v2649_v59  ;;  %v2395_v25 = vmul.f32 0.318309, %v1386_v37 }
 0x125   :  { %v637_v54 = vadd.f32 %v381_v13, %v5263_v5  ;;  %v1387_v17 = vadd.f32 %v878_v9, %v5246_v55  ;;  %v2650_v35 = vadd.f32 %v2394_v49, %v2138_v46  ;;  %v1884_v20 = vmul.f32 0.367879, %v1132_v15  ;;  %v5307_v34 = vld [vmem:[%s7418_s1 + $0x87] sm:$0x1]  ;;  %v5321_v15 = vld [vmem:[%s7418_s1 + $0x88] sm:$0x1] }
 0x126   :  { %v2139_v30 = vadd.f32 %v1883_v52, %v1627_v1  ;;  %v382_v36 = vadd.f32 %v5031_v21, %v4739_v23  ;;  %3162 = vst [vmem:[%s7420_s2 + $0x71] sm:$0x1] %v2906_v12  ;;  %v879_v11 = vadd.f32 %v5018_v45, %v4768_v47  ;;  %v1133_v26 = vadd.f32 %v878_v9, %v5289_v3 }
 0x127   :  { %v1628_v29 = vmul.f32 0.618034, %v637_v54  ;;  %v2396_v63 = vmul.f32 0.318309, %v1387_v17  ;;  %v2907_v43 = vadd.f32 %v4830_v18, %v2650_v35  ;;  %v383_v44 = vadd.f32 %v5047_v7, %v4752_v42 }
 0x128   :  { %v2651_v41 = vadd.f32 %v2395_v25, %v2139_v30  ;;  %v638_v6 = vadd.f32 %v382_v36, %v5276_v61  ;;  %v1388_v49 = vadd.f32 %v879_v11, %v5263_v5  ;;  %v1885_v58 = vmul.f32 0.367879, %v1133_v26  ;;  %v5337_v26 = vld [vmem:[%s7418_s1 + $0x89] sm:$0x1] }
 0x129   :  { %v2140_v23 = vadd.f32 %v1884_v20, %v1628_v29  ;;  %v880_v59 = vadd.f32 %v5031_v21, %v4786_v50  ;;  %3163 = vst [vmem:[%s7420_s2 + $0x72] sm:$0x1] %v2907_v43  ;;  %v639_v42 = vadd.f32 %v383_v44, %v5289_v3  ;;  %v1134_v9 = vadd.f32 %v879_v11, %v5307_v34 }
 0x12a   :  { %v2908_v37 = vadd.f32 %v4830_v18, %v2651_v41  ;;  %v1629_v13 = vmul.f32 0.618034, %v638_v6  ;;  %v2397_v1 = vmul.f32 0.318309, %v1388_v49  ;;  %v384_v12 = vadd.f32 %v5063_v24, %v4768_v47 }
 0x12b   :  { %v2652_v46 = vadd.f32 %v2396_v63, %v2140_v23  ;;  %v1389_v52 = vadd.f32 %v880_v59, %v5276_v61  ;;  %v1630_v54 = vmul.f32 0.618034, %v639_v42  ;;  %v1886_v17 = vmul.f32 0.367879, %v1134_v9  ;;  %v5353_v9 = vld [vmem:[%s7418_s1 + $0x8a] sm:$0x1] }
 0x12c   :  { %3164 = vst [vmem:[%s7420_s2 + $0x73] sm:$0x1] %v2908_v37  ;;  %v2141_v25 = vadd.f32 %v1885_v58, %v1629_v13  ;;  %v881_v35 = vadd.f32 %v5047_v7, %v4802_v62  ;;  %v640_v36 = vadd.f32 %v384_v12, %v5307_v34  ;;  %v1135_v29 = vadd.f32 %v880_v59, %v5321_v15 }
 0x12d   :  { %v2909_v30 = vadd.f32 %v4830_v18, %v2652_v46  ;;  %v2398_v20 = vmul.f32 0.318309, %v1389_v52  ;;  %v2142_v11 = vadd.f32 %v1886_v17, %v1630_v54  ;;  %v385_v43 = vadd.f32 %v5081_v8, %v4786_v50 }
 0x12e   :  { %v2653_v63 = vadd.f32 %v2397_v1, %v2141_v25  ;;  %v1390_v47 = vadd.f32 %v881_v35, %v5289_v3  ;;  %v1631_v41 = vmul.f32 0.618034, %v640_v36  ;;  %v1887_v6 = vmul.f32 0.367879, %v1135_v29  ;;  %v5374_v29 = vld [vmem:[%s7418_s1 + $0x8b] sm:$0x1] }
 0x12f   :  { %3165 = vst [vmem:[%s7420_s2 + $0x74] sm:$0x1] %v2909_v30  ;;  %v882_v44 = vadd.f32 %v5063_v24, %v4818_v56  ;;  %v1136_v23 = vadd.f32 %v881_v35, %v5337_v26  ;;  %v2654_v58 = vadd.f32 %v2398_v20, %v2142_v11  ;;  %v641_v37 = vadd.f32 %v385_v43, %v5321_v15 }
 0x130   :  { %v2910_v49 = vadd.f32 %v4830_v18, %v2653_v63  ;;  %v2399_v59 = vmul.f32 0.318309, %v1390_v47  ;;  %v2143_v13 = vadd.f32 %v1887_v6, %v1631_v41  ;;  %v386_v46 = vadd.f32 %v5097_v40, %v4802_v62 }
 0x131   :  { %v1391_v50 = vadd.f32 %v882_v44, %v5307_v34  ;;  %v1888_v42 = vmul.f32 0.367879, %v1136_v23  ;;  %v2911_v1 = vadd.f32 %v4830_v18, %v2654_v58  ;;  %v1632_v52 = vmul.f32 0.618034, %v641_v37  ;;  %v5385_v23 = vld [vmem:[%s7418_s1 + $0x8c] sm:$0x1] }
 0x132   :  { %3166 = vst [vmem:[%s7420_s2 + $0x75] sm:$0x1] %v2910_v49  ;;  %v883_v12 = vadd.f32 %v5081_v8, %v4840_v10  ;;  %v1137_v25 = vadd.f32 %v882_v44, %v5353_v9  ;;  %v2655_v54 = vadd.f32 %v2399_v59, %v2143_v13  ;;  %v642_v35 = vadd.f32 %v386_v46, %v5337_v26 }
 0x133   :  { %v2400_v17 = vmul.f32 0.318309, %v1391_v50  ;;  %v387_v30 = vadd.f32 %v5110_v14, %v4818_v56  ;;  %3167 = vst [vmem:[%s7420_s2 + $0x76] sm:$0x1] %v2911_v1  ;;  %v2144_v62 = vadd.f32 %v1888_v42, %v1632_v52  ;;  %v884_v63 = vadd.f32 %v5097_v40, %v4861_v31 }
 0x134   :  { %v1392_v20 = vadd.f32 %v883_v12, %v5321_v15  ;;  %v1889_v36 = vmul.f32 0.367879, %v1137_v25  ;;  %v2912_v11 = vadd.f32 %v4830_v18, %v2655_v54  ;;  %v1633_v47 = vmul.f32 0.618034, %v642_v35  ;;  %v5401_v25 = vld [vmem:[%s7418_s1 + $0x8d] sm:$0x1] }
 0x135   :  { %v643_v56 = vadd.f32 %v387_v30, %v5353_v9  ;;  %v1138_v43 = vadd.f32 %v883_v12, %v5374_v29  ;;  %v2656_v41 = vadd.f32 %v2400_v17, %v2144_v62  ;;  %v1393_v44 = vadd.f32 %v884_v63, %v5337_v26 }
 0x136   :  { %v2401_v6 = vmul.f32 0.318309, %v1392_v20  ;;  %v388_v49 = vadd.f32 %v5127_v4, %v4840_v10  ;;  %3168 = vst [vmem:[%s7420_s2 + $0x77] sm:$0x1] %v2912_v11  ;;  %v2145_v58 = vadd.f32 %v1889_v36, %v1633_v47  ;;  %v885_v13 = vadd.f32 %v5110_v14, %v4872_v22 }
 0x137   :  { %v1634_v59 = vmul.f32 0.618034, %v643_v56  ;;  %v1890_v37 = vmul.f32 0.367879, %v1138_v43  ;;  %v2913_v50 = vadd.f32 %v4830_v18, %v2656_v41  ;;  %v2402_v42 = vmul.f32 0.318309, %v1393_v44 }
 0x138   :  { %v644_v46 = vadd.f32 %v388_v49, %v5374_v29  ;;  %v1139_v1 = vadd.f32 %v884_v63, %v5385_v23  ;;  %v2657_v52 = vadd.f32 %v2401_v6, %v2145_v58  ;;  %v1394_v10 = vadd.f32 %v885_v13, %v5353_v9  ;;  %v5417_v43 = vld [vmem:[%s7418_s1 + $0x8e] sm:$0x1] }
 0x139   :  { %v2146_v12 = vadd.f32 %v1890_v37, %v1634_v59  ;;  %v389_v54 = vadd.f32 %v5146_v39, %v4861_v31  ;;  %3169 = vst [vmem:[%s7420_s2 + $0x78] sm:$0x1] %v2913_v50  ;;  %v886_v30 = vadd.f32 %v5127_v4, %v4885_v57  ;;  %v1140_v62 = vadd.f32 %v885_v13, %v5401_v25 }
 0x13a   :  { %v1635_v17 = vmul.f32 0.618034, %v644_v46  ;;  %v1891_v35 = vmul.f32 0.367879, %v1139_v1  ;;  %v2914_v20 = vadd.f32 %v4830_v18, %v2657_v52  ;;  %v2403_v63 = vmul.f32 0.318309, %v1394_v10 }
 0x13b   :  { %v2658_v36 = vadd.f32 %v2402_v42, %v2146_v12  ;;  %v645_v11 = vadd.f32 %v389_v54, %v5385_v23  ;;  %v1395_v31 = vadd.f32 %v886_v30, %v5374_v29  ;;  %v1892_v56 = vmul.f32 0.367879, %v1140_v62 }
 0x13c   :  { %v2147_v47 = vadd.f32 %v1891_v35, %v1635_v17  ;;  %v390_v41 = vadd.f32 %v5162_v0, %v4872_v22  ;;  %3170 = vst [vmem:[%s7420_s2 + $0x79] sm:$0x1] %v2914_v20  ;;  %v887_v49 = vadd.f32 %v5146_v39, %v4901_v16  ;;  %v1141_v58 = vadd.f32 %v886_v30, %v5417_v43  ;;  %v5432_v22 = vld [vmem:[%s7418_s1 + $0x8f] sm:$0x1] }
 0x13d   :  { %v2915_v6 = vadd.f32 %v4830_v18, %v2658_v36  ;;  %v1636_v44 = vmul.f32 0.618034, %v645_v11  ;;  %v2404_v37 = vmul.f32 0.318309, %v1395_v31  ;;  %v391_v50 = vadd.f32 %v5175_v38, %v4885_v57  ;;  %v5448_v57 = vld [vmem:[%s7418_s1 + $0x90] sm:$0x1] }
 0x13e   :  { %v2659_v59 = vadd.f32 %v2403_v63, %v2147_v47  ;;  %v646_v13 = vadd.f32 %v390_v41, %v5401_v25  ;;  %v1396_v46 = vadd.f32 %v887_v49, %v5385_v23  ;;  %v1893_v1 = vmul.f32 0.367879, %v1141_v58 }
 0x13f   :  { %3171 = vst [vmem:[%s7420_s2 + $0x7a] sm:$0x1] %v2915_v6  ;;  %v2148_v42 = vadd.f32 %v1892_v56, %v1636_v44  ;;  %v1142_v52 = vadd.f32 %v887_v49, %v5432_v22  ;;  %v647_v54 = vadd.f32 %v391_v50, %v5417_v43  ;;  %v1397_v17 = vadd.f32 %v5204_v19, %v5401_v25 }
 0x140   :  { %v2916_v12 = vadd.f32 %v4830_v18, %v2659_v59  ;;  %v1637_v10 = vmul.f32 0.618034, %v646_v13  ;;  %v2405_v30 = vmul.f32 0.318309, %v1396_v46  ;;  %v648_v20 = vadd.f32 %v5432_v22, %v4901_v16  ;;  %v5464_v16 = vld [vmem:[%s7418_s1 + $0x91] sm:$0x1] }
 0x141   :  { %v2660_v35 = vadd.f32 %v2404_v37, %v2148_v42  ;;  %v1894_v62 = vmul.f32 0.367879, %v1142_v52  ;;  %v1638_v63 = vmul.f32 0.618034, %v647_v54  ;;  %v2406_v11 = vmul.f32 0.318309, %v1397_v17 }
 0x142   :  { %3172 = vst [vmem:[%s7420_s2 + $0x7b] sm:$0x1] %v2916_v12  ;;  %v2149_v36 = vadd.f32 %v1893_v1, %v1637_v10  ;;  %v5457_v47 = vadd.f32 %v5417_v43, %v5175_v38  ;;  %v1639_v56 = vmul.f32 0.618034, %v648_v20  ;;  %v1895_v41 = vmul.f32 0.367879, %v5204_v19 }
 0x143   :  { %v2917_v31 = vadd.f32 %v4830_v18, %v2660_v35  ;;  %v5468_v6 = vadd.f32 %v5448_v57, %v5197_v27  ;;  %v2150_v49 = vadd.f32 %v1894_v62, %v1638_v63  ;;  %v1144_v38 = vadd.f32 %v5464_v16, %v4931_v28  ;;  %v5484_v1 = vld [vmem:[%s7418_s1 + $0x92] sm:$0x1] }
 0x144   :  { %v2661_v44 = vadd.f32 %v2405_v30, %v2149_v36  ;;  %v2407_v58 = vmul.f32 0.318309, %v5457_v47  ;;  %v2151_v19 = vadd.f32 %v1895_v41, %v1639_v56  ;;  %v2408_v37 = vmul.f32 0.318309, %v5210_v32  ;;  %v5509_v36 = vld [vmem:[%s7418_s1 + $0x93] sm:$0x1] }
 0x145   :  { %3173 = vst [vmem:[%s7420_s2 + $0x7c] sm:$0x1] %v2917_v31  ;;  %v1640_v59 = vmul.f32 0.618034, %v5468_v6  ;;  %v394_v13 = vadd.f32 %v5219_v33, %v4931_v28  ;;  %v2662_v42 = vadd.f32 %v2406_v11, %v2150_v49  ;;  %v1896_v46 = vmul.f32 0.367879, %v1144_v38 }
 0x146   :  { %v2918_v50 = vadd.f32 %v4830_v18, %v2661_v44  ;;  %v891_v52 = vadd.f32 %v5197_v27, %v4961_v51  ;;  %v2663_v12 = vadd.f32 %v2407_v58, %v2151_v19  ;;  %v1145_v54 = vadd.f32 %v5210_v32, %v5484_v1  ;;  %v5499_v18 = vld [vmem:[%s7419_s0] sm:$0x1]  ;;  %v5523_v58 = vld [vmem:[%s7418_s1 + $0x94] sm:$0x1] }
 0x147   :  { %v650_v10 = vadd.f32 %v394_v13, %v5464_v16  ;;  %v395_v28 = vadd.f32 %v5246_v55, %v4939_v53  ;;  %v2919_v17 = vadd.f32 %v5499_v18, %v2662_v42  ;;  %v2152_v35 = vadd.f32 %v1896_v46, %v1640_v59 }
 0x148   :  { %3174 = vst [vmem:[%s7420_s2 + $0x7d] sm:$0x1] %v2918_v50  ;;  %v1400_v30 = vadd.f32 %v891_v52, %v5448_v57  ;;  %v892_v32 = vadd.f32 %v5219_v33, %v4986_v2  ;;  %v2920_v62 = vadd.f32 %v5499_v18, %v2663_v12  ;;  %v1897_v20 = vmul.f32 0.367879, %v1145_v54  ;;  %v5536_v12 = vld [vmem:[%s7418_s1 + $0x95] sm:$0x1] }
 0x149   :  { %v1641_v53 = vmul.f32 0.618034, %v650_v10  ;;  %v651_v63 = vadd.f32 %v395_v28, %v5484_v1  ;;  %3175 = vst [vmem:[%s7420_s2 + $0x7e] sm:$0x1] %v2919_v17  ;;  %v2664_v11 = vadd.f32 %v2408_v37, %v2152_v35  ;;  %v1146_v56 = vadd.f32 %v891_v52, %v5509_v36 }
 0x14a   :  { %v2409_v31 = vmul.f32 0.318309, %v1400_v30  ;;  %v1401_v41 = vadd.f32 %v892_v32, %v5464_v16  ;;  %3176 = vst [vmem:[%s7420_s2 + $0x7f] sm:$0x1] %v2920_v62  ;;  %v396_v38 = vadd.f32 %v5263_v5, %v4961_v51  ;;  %v893_v19 = vadd.f32 %v5246_v55, %v5007_v48 }
 0x14b   :  { %v2153_v44 = vadd.f32 %v1897_v20, %v1641_v53  ;;  %v1642_v49 = vmul.f32 0.618034, %v651_v63  ;;  %v2921_v59 = vadd.f32 %v5499_v18, %v2664_v11  ;;  %v1898_v37 = vmul.f32 0.367879, %v1146_v56  ;;  %v5552_v63 = vld [vmem:[%s7418_s1 + $0x96] sm:$0x1] }
 0x14c   :  { %v2410_v13 = vmul.f32 0.318309, %v1401_v41  ;;  %v1147_v50 = vadd.f32 %v892_v32, %v5523_v58  ;;  %v652_v46 = vadd.f32 %v396_v38, %v5509_v36  ;;  %v1402_v52 = vadd.f32 %v893_v19, %v5484_v1 }
 0x14d   :  { %v2665_v42 = vadd.f32 %v2409_v31, %v2153_v44  ;;  %v397_v51 = vadd.f32 %v5276_v61, %v4986_v2  ;;  %3177 = vst [vmem:[%s7420_s2 + $0x80] sm:$0x1] %v2921_v59  ;;  %v2154_v10 = vadd.f32 %v1898_v37, %v1642_v49  ;;  %v894_v28 = vadd.f32 %v5263_v5, %v5018_v45 }
 0x14e   :  { %v1899_v54 = vmul.f32 0.367879, %v1147_v50  ;;  %v1148_v17 = vadd.f32 %v893_v19, %v5536_v12  ;;  %v1643_v30 = vmul.f32 0.618034, %v652_v46  ;;  %v2411_v32 = vmul.f32 0.318309, %v1402_v52 }
 0x14f   :  { %v2922_v35 = vadd.f32 %v5499_v18, %v2665_v42  ;;  %v653_v62 = vadd.f32 %v397_v51, %v5523_v58  ;;  %v2666_v53 = vadd.f32 %v2410_v13, %v2154_v10  ;;  %v1403_v2 = vadd.f32 %v894_v28, %v5509_v36  ;;  %v5570_v42 = vld [vmem:[%s7418_s1 + $0x97] sm:$0x1] }
 0x150   :  { %v1900_v20 = vmul.f32 0.367879, %v1148_v17  ;;  %v398_v11 = vadd.f32 %v5289_v3, %v5007_v48  ;;  %v2155_v31 = vadd.f32 %v1899_v54, %v1643_v30  ;;  %v895_v41 = vadd.f32 %v5276_v61, %v5031_v21 }
 0x151   :  { %3178 = vst [vmem:[%s7420_s2 + $0x81] sm:$0x1] %v2922_v35  ;;  %v1644_v56 = vmul.f32 0.618034, %v653_v62  ;;  %v1149_v44 = vadd.f32 %v894_v28, %v5552_v63  ;;  %v2923_v49 = vadd.f32 %v5499_v18, %v2666_v53  ;;  %v2412_v38 = vmul.f32 0.318309, %v1403_v2 }
 0x152   :  { %v654_v19 = vadd.f32 %v398_v11, %v5536_v12  ;;  %v399_v59 = vadd.f32 %v5307_v34, %v5018_v45  ;;  %v2667_v48 = vadd.f32 %v2411_v32, %v2155_v31  ;;  %v1404_v13 = vadd.f32 %v895_v41, %v5523_v58  ;;  %v5586_v53 = vld [vmem:[%s7418_s1 + $0x98] sm:$0x1] }
 0x153   :  { %v2156_v37 = vadd.f32 %v1900_v20, %v1644_v56  ;;  %v1901_v50 = vmul.f32 0.367879, %v1149_v44  ;;  %3179 = vst [vmem:[%s7420_s2 + $0x82] sm:$0x1] %v2923_v49  ;;  %v896_v45 = vadd.f32 %v5289_v3, %v5047_v7  ;;  %v1150_v51 = vadd.f32 %v895_v41, %v5570_v42  ;;  %v5599_v44 = vld [vmem:[%s7418_s1 + $0x99] sm:$0x1] }
 0x154   :  { %v1645_v46 = vmul.f32 0.618034, %v654_v19  ;;  %v655_v52 = vadd.f32 %v399_v59, %v5552_v63  ;;  %v2924_v10 = vadd.f32 %v5499_v18, %v2667_v48  ;;  %v2413_v28 = vmul.f32 0.318309, %v1404_v13 }
 0x155   :  { %v2668_v54 = vadd.f32 %v2412_v38, %v2156_v37  ;;  %v400_v17 = vadd.f32 %v5321_v15, %v5031_v21  ;;  %v1405_v30 = vadd.f32 %v896_v45, %v5536_v12  ;;  %v1902_v62 = vmul.f32 0.367879, %v1150_v51  ;;  %v5616_v51 = vld [vmem:[%s7418_s1 + $0x9a] sm:$0x1] }
 0x156   :  { %v2157_v35 = vadd.f32 %v1901_v50, %v1645_v46  ;;  %v1646_v32 = vmul.f32 0.618034, %v655_v52  ;;  %3180 = vst [vmem:[%s7420_s2 + $0x83] sm:$0x1] %v2924_v10  ;;  %v897_v21 = vadd.f32 %v5307_v34, %v5063_v24  ;;  %v1151_v11 = vadd.f32 %v896_v45, %v5586_v53 }
 0x157   :  { %v2925_v2 = vadd.f32 %v5499_v18, %v2668_v54  ;;  %v656_v20 = vadd.f32 %v400_v17, %v5570_v42  ;;  %v2414_v41 = vmul.f32 0.318309, %v1405_v30  ;;  %v401_v49 = vadd.f32 %v5337_v26, %v5047_v7 }
 0x158   :  { %v2669_v31 = vadd.f32 %v2413_v28, %v2157_v35  ;;  %v2158_v56 = vadd.f32 %v1902_v62, %v1646_v32  ;;  %v1406_v38 = vadd.f32 %v897_v21, %v5552_v63  ;;  %v1903_v59 = vmul.f32 0.367879, %v1151_v11 }
 0x159   :  { %3181 = vst [vmem:[%s7420_s2 + $0x84] sm:$0x1] %v2925_v2  ;;  %v1647_v19 = vmul.f32 0.618034, %v656_v20  ;;  %v898_v48 = vadd.f32 %v5321_v15, %v5081_v8  ;;  %v657_v50 = vadd.f32 %v401_v49, %v5586_v53  ;;  %v1152_v46 = vadd.f32 %v897_v21, %v5599_v44  ;;  %v5635_v21 = vld [vmem:[%s7418_s1 + $0x9b] sm:$0x1] }
 0x15a   :  { %v2926_v37 = vadd.f32 %v5499_v18, %v2669_v31  ;;  %v2670_v13 = vadd.f32 %v2414_v41, %v2158_v56  ;;  %v2415_v7 = vmul.f32 0.318309, %v1406_v38  ;;  %v402_v10 = vadd.f32 %v5353_v9, %v5063_v24 }
 0x15b   :  { %v2159_v52 = vadd.f32 %v1903_v59, %v1647_v19  ;;  %v1407_v45 = vadd.f32 %v898_v48, %v5570_v42  ;;  %v1648_v28 = vmul.f32 0.618034, %v657_v50  ;;  %v1904_v17 = vmul.f32 0.367879, %v1152_v46  ;;  %v5651_v50 = vld [vmem:[%s7418_s1 + $0x9c] sm:$0x1] }
 0x15c   :  { %3182 = vst [vmem:[%s7420_s2 + $0x85] sm:$0x1] %v2926_v37  ;;  %v2927_v54 = vadd.f32 %v5499_v18, %v2670_v13  ;;  %v899_v35 = vadd.f32 %v5337_v26, %v5097_v40  ;;  %v658_v62 = vadd.f32 %v402_v10, %v5599_v44  ;;  %v1153_v2 = vadd.f32 %v898_v48, %v5616_v51 }
 0x15d   :  { %v2671_v30 = vadd.f32 %v2415_v7, %v2159_v52  ;;  %v2416_v32 = vmul.f32 0.318309, %v1407_v45  ;;  %v2160_v24 = vadd.f32 %v1904_v17, %v1648_v28  ;;  %v403_v11 = vadd.f32 %v5374_v29, %v5081_v8 }
 0x15e   :  { %3183 = vst [vmem:[%s7420_s2 + $0x86] sm:$0x1] %v2927_v54  ;;  %v1408_v20 = vadd.f32 %v899_v35, %v5586_v53  ;;  %v900_v31 = vadd.f32 %v5353_v9, %v5110_v14  ;;  %v1649_v41 = vmul.f32 0.618034, %v658_v62  ;;  %v1905_v49 = vmul.f32 0.367879, %v1153_v2 }
 0x15f   :  { %v2928_v56 = vadd.f32 %v5499_v18, %v2671_v30  ;;  %v1154_v38 = vadd.f32 %v899_v35, %v5635_v21  ;;  %v2672_v19 = vadd.f32 %v2416_v32, %v2160_v24  ;;  %v659_v48 = vadd.f32 %v403_v11, %v5616_v51  ;;  %v5664_v30 = vld [vmem:[%s7418_s1 + $0x9d] sm:$0x1] }
 0x160   :  { %v2417_v59 = vmul.f32 0.318309, %v1408_v20  ;;  %v1409_v37 = vadd.f32 %v900_v31, %v5599_v44  ;;  %v2161_v8 = vadd.f32 %v1905_v49, %v1649_v41  ;;  %v404_v46 = vadd.f32 %v5385_v23, %v5097_v40 }
 0x161   :  { %3184 = vst [vmem:[%s7420_s2 + $0x87] sm:$0x1] %v2928_v56  ;;  %v1906_v13 = vmul.f32 0.367879, %v1154_v38  ;;  %v901_v52 = vadd.f32 %v5374_v29, %v5127_v4  ;;  %v2929_v7 = vadd.f32 %v5499_v18, %v2672_v19  ;;  %v1650_v45 = vmul.f32 0.618034, %v659_v48 }
 0x162   :  { %v2418_v10 = vmul.f32 0.318309, %v1409_v37  ;;  %v1155_v54 = vadd.f32 %v900_v31, %v5651_v50  ;;  %v2673_v28 = vadd.f32 %v2417_v59, %v2161_v8  ;;  %v660_v17 = vadd.f32 %v404_v46, %v5635_v21  ;;  %v5680_v38 = vld [vmem:[%s7418_s1 + $0x9e] sm:$0x1] }
 0x163   :  { %v1410_v35 = vadd.f32 %v901_v52, %v5616_v51  ;;  %v405_v40 = vadd.f32 %v5401_v25, %v5110_v14  ;;  %3185 = vst [vmem:[%s7420_s2 + $0x88] sm:$0x1] %v2929_v7  ;;  %v2162_v32 = vadd.f32 %v1906_v13, %v1650_v45  ;;  %v902_v2 = vadd.f32 %v5385_v23, %v5146_v39 }
 0x164   :  { %v1907_v62 = vmul.f32 0.367879, %v1155_v54  ;;  %v1156_v24 = vadd.f32 %v901_v52, %v5664_v30  ;;  %v2930_v20 = vadd.f32 %v5499_v18, %v2673_v28  ;;  %v1651_v11 = vmul.f32 0.618034, %v660_v17  ;;  %v5698_v28 = vld [vmem:[%s7418_s1 + $0x9f] sm:$0x1] }
 0x165   :  { %v2419_v31 = vmul.f32 0.318309, %v1410_v35  ;;  %v661_v56 = vadd.f32 %v405_v40, %v5651_v50  ;;  %v2674_v41 = vadd.f32 %v2418_v10, %v2162_v32  ;;  %v1411_v14 = vadd.f32 %v902_v2, %v5635_v21 }
 0x166   :  { %v1908_v49 = vmul.f32 0.367879, %v1156_v24  ;;  %v406_v19 = vadd.f32 %v5417_v43, %v5127_v4  ;;  %3186 = vst [vmem:[%s7420_s2 + $0x89] sm:$0x1] %v2930_v20  ;;  %v2163_v59 = vadd.f32 %v1907_v62, %v1651_v11  ;;  %v903_v37 = vadd.f32 %v5401_v25, %v5162_v0  ;;  %v5713_v20 = vld [vmem:[%s7418_s1 + $0xa0] sm:$0x1] }
 0x167   :  { %v1652_v48 = vmul.f32 0.618034, %v661_v56  ;;  %v1157_v8 = vadd.f32 %v902_v2, %v5680_v38  ;;  %v2931_v13 = vadd.f32 %v5499_v18, %v2674_v41  ;;  %v2420_v46 = vmul.f32 0.318309, %v1411_v14  ;;  %v5718_v11 = vld [vmem:[%s7418_s1 + $0xa1] sm:$0x1] }
 0x168   :  { %v662_v52 = vadd.f32 %v406_v19, %v5664_v30  ;;  %v407_v7 = vadd.f32 %v5432_v22, %v5146_v39  ;;  %v2675_v4 = vadd.f32 %v2419_v31, %v2163_v59  ;;  %v1412_v10 = vadd.f32 %v903_v37, %v5651_v50 }
 0x169   :  { %v2164_v45 = vadd.f32 %v1908_v49, %v1652_v48  ;;  %v1909_v54 = vmul.f32 0.367879, %v1157_v8  ;;  %3187 = vst [vmem:[%s7420_s2 + $0x8a] sm:$0x1] %v2931_v13  ;;  %v1158_v40 = vadd.f32 %v903_v37, %v5698_v28  ;;  %v1413_v39 = vadd.f32 %v5457_v47, %v5664_v30 }
 0x16a   :  { %v1653_v17 = vmul.f32 0.618034, %v662_v52  ;;  %v663_v35 = vadd.f32 %v407_v7, %v5680_v38  ;;  %v2932_v32 = vadd.f32 %v5499_v18, %v2675_v4  ;;  %v2421_v2 = vmul.f32 0.318309, %v1412_v10 }
 0x16b   :  { %v2676_v62 = vadd.f32 %v2420_v46, %v2164_v45  ;;  %v664_v24 = vadd.f32 %v5698_v28, %v5162_v0  ;;  %v1910_v41 = vmul.f32 0.367879, %v1158_v40  ;;  %v2422_v14 = vmul.f32 0.318309, %v1413_v39 }
 0x16c   :  { %v2165_v31 = vadd.f32 %v1909_v54, %v1653_v17  ;;  %v1654_v56 = vmul.f32 0.618034, %v663_v35  ;;  %3188 = vst [vmem:[%s7420_s2 + $0x8b] sm:$0x1] %v2932_v32  ;;  %v5726_v49 = vadd.f32 %v5680_v38, %v5432_v22  ;;  %v1911_v59 = vmul.f32 0.367879, %v5457_v47 }
 0x16d   :  { %v2933_v0 = vadd.f32 %v5499_v18, %v2676_v62  ;;  %v1655_v19 = vmul.f32 0.618034, %v664_v24  ;;  %v5731_v8 = vadd.f32 %v5713_v20, %v5464_v16  ;;  %v1160_v13 = vadd.f32 %v5718_v11, %v5190_v60  ;;  %v5747_v54 = vld [vmem:[%s7418_s1 + $0xa2] sm:$0x1] }
 0x16e   :  { %v2677_v48 = vadd.f32 %v2421_v2, %v2165_v31  ;;  %v2166_v37 = vadd.f32 %v1910_v41, %v1654_v56  ;;  %v2423_v22 = vmul.f32 0.318309, %v5726_v49  ;;  %v2424_v52 = vmul.f32 0.318309, %v5468_v6 }
 0x16f   :  { %3189 = vst [vmem:[%s7420_s2 + $0x8c] sm:$0x1] %v2933_v0  ;;  %v2167_v46 = vadd.f32 %v1911_v59, %v1655_v19  ;;  %v410_v47 = vadd.f32 %v5484_v1, %v5190_v60  ;;  %v1656_v45 = vmul.f32 0.618034, %v5731_v8  ;;  %v1912_v10 = vmul.f32 0.367879, %v1160_v13 }
 0x170   :  { %v2934_v7 = vadd.f32 %v5499_v18, %v2677_v48  ;;  %v2678_v4 = vadd.f32 %v2422_v14, %v2166_v37  ;;  %v907_v40 = vadd.f32 %v5464_v16, %v5219_v33  ;;  %v1161_v60 = vadd.f32 %v5468_v6, %v5747_v54  ;;  %v5767_v6 = vld [vmem:[%s7418_s1 + $0xa3] sm:$0x1]  ;;  %v5781_v37 = vld [vmem:[%s7418_s1 + $0xa4] sm:$0x1] }
 0x171   :  { %v2679_v17 = vadd.f32 %v2423_v22, %v2167_v46  ;;  %v666_v35 = vadd.f32 %v410_v47, %v5718_v11  ;;  %v2168_v32 = vadd.f32 %v1912_v10, %v1656_v45  ;;  %v411_v62 = vadd.f32 %v5509_v36, %v5197_v27 }
 0x172   :  { %3190 = vst [vmem:[%s7420_s2 + $0x8d] sm:$0x1] %v2934_v7  ;;  %v2935_v39 = vadd.f32 %v5499_v18, %v2678_v4  ;;  %v908_v2 = vadd.f32 %v5484_v1, %v5246_v55  ;;  %v1416_v31 = vadd.f32 %v907_v40, %v5713_v20  ;;  %v1913_v41 = vmul.f32 0.367879, %v1161_v60 }
 0x173   :  { %v2936_v24 = vadd.f32 %v5499_v18, %v2679_v17  ;;  %v1657_v56 = vmul.f32 0.618034, %v666_v35  ;;  %v2680_v14 = vadd.f32 %v2424_v52, %v2168_v32  ;;  %v667_v27 = vadd.f32 %v411_v62, %v5747_v54  ;;  %v5794_v35 = vld [vmem:[%s7418_s1 + $0xa5] sm:$0x1] }
 0x174   :  { %3191 = vst [vmem:[%s7420_s2 + $0x8e] sm:$0x1] %v2935_v39  ;;  %v1162_v0 = vadd.f32 %v907_v40, %v5767_v6  ;;  %v1417_v19 = vadd.f32 %v908_v2, %v5718_v11  ;;  %v2425_v48 = vmul.f32 0.318309, %v1416_v31  ;;  %v412_v13 = vadd.f32 %v5523_v58, %v5219_v33 }
 0x175   :  { %3192 = vst [vmem:[%s7420_s2 + $0x8f] sm:$0x1] %v2936_v24  ;;  %v2169_v59 = vadd.f32 %v1913_v41, %v1657_v56  ;;  %v909_v46 = vadd.f32 %v5509_v36, %v5263_v5  ;;  %v2937_v22 = vadd.f32 %v5499_v18, %v2680_v14  ;;  %v1658_v52 = vmul.f32 0.618034, %v667_v27 }
 0x176   :  { %v1914_v47 = vmul.f32 0.367879, %v1162_v0  ;;  %v2426_v7 = vmul.f32 0.318309, %v1417_v19  ;;  %v668_v45 = vadd.f32 %v412_v13, %v5767_v6  ;;  %v1163_v10 = vadd.f32 %v908_v2, %v5781_v37 }
 0x177   :  { %v2681_v4 = vadd.f32 %v2425_v48, %v2169_v59  ;;  %v1418_v17 = vadd.f32 %v909_v46, %v5747_v54  ;;  %3193 = vst [vmem:[%s7420_s2 + $0x90] sm:$0x1] %v2937_v22  ;;  %v413_v40 = vadd.f32 %v5536_v12, %v5246_v55  ;;  %v910_v60 = vadd.f32 %v5523_v58, %v5276_v61  ;;  %v5810_v55 = vld [vmem:[%s7418_s1 + $0xa6] sm:$0x1] }
 0x178   :  { %v2170_v33 = vadd.f32 %v1914_v47, %v1658_v52  ;;  %v1164_v39 = vadd.f32 %v909_v46, %v5794_v35  ;;  %v1659_v62 = vmul.f32 0.618034, %v668_v45  ;;  %v1915_v2 = vmul.f32 0.367879, %v1163_v10 }
 0x179   :  { %v2938_v32 = vadd.f32 %v5499_v18, %v2681_v4  ;;  %v2427_v24 = vmul.f32 0.318309, %v1418_v17  ;;  %v669_v56 = vadd.f32 %v413_v40, %v5781_v37  ;;  %v1419_v41 = vadd.f32 %v910_v60, %v5767_v6 }
 0x17a   :  { %v2682_v31 = vadd.f32 %v2426_v7, %v2170_v33  ;;  %v1916_v14 = vmul.f32 0.367879, %v1164_v39  ;;  %v2171_v27 = vadd.f32 %v1915_v2, %v1659_v62  ;;  %v414_v0 = vadd.f32 %v5552_v63, %v5263_v5  ;;  %v5828_v5 = vld [vmem:[%s7418_s1 + $0xa7] sm:$0x1] }
 0x17b   :  { %3194 = vst [vmem:[%s7420_s2 + $0x91] sm:$0x1] %v2938_v32  ;;  %v911_v19 = vadd.f32 %v5536_v12, %v5289_v3  ;;  %v1165_v59 = vadd.f32 %v910_v60, %v5810_v55  ;;  %v1660_v13 = vmul.f32 0.618034, %v669_v56  ;;  %v2428_v46 = vmul.f32 0.318309, %v1419_v41 }
 0x17c   :  { %v2939_v48 = vadd.f32 %v5499_v18, %v2682_v31  ;;  %v415_v22 = vadd.f32 %v5570_v42, %v5276_v61  ;;  %v2683_v52 = vadd.f32 %v2427_v24, %v2171_v27  ;;  %v670_v47 = vadd.f32 %v414_v0, %v5794_v35  ;;  %v5844_v31 = vld [vmem:[%s7418_s1 + $0xa8] sm:$0x1] }
 0x17d   :  { %v1420_v7 = vadd.f32 %v911_v19, %v5781_v37  ;;  %v1917_v4 = vmul.f32 0.367879, %v1165_v59  ;;  %v2172_v45 = vadd.f32 %v1916_v14, %v1660_v13  ;;  %v912_v61 = vadd.f32 %v5552_v63, %v5307_v34 }
 0x17e   :  { %3195 = vst [vmem:[%s7420_s2 + $0x92] sm:$0x1] %v2939_v48  ;;  %v671_v10 = vadd.f32 %v415_v22, %v5810_v55  ;;  %v1166_v17 = vadd.f32 %v911_v19, %v5828_v5  ;;  %v2940_v33 = vadd.f32 %v5499_v18, %v2683_v52  ;;  %v1661_v40 = vmul.f32 0.618034, %v670_v47  ;;  %v5860_v52 = vld [vmem:[%s7418_s1 + $0xa9] sm:$0x1] }
 0x17f   :  { %v2429_v60 = vmul.f32 0.318309, %v1420_v7  ;;  %v416_v39 = vadd.f32 %v5586_v53, %v5289_v3  ;;  %v2684_v32 = vadd.f32 %v2428_v46, %v2172_v45  ;;  %v1421_v62 = vadd.f32 %v912_v61, %v5794_v35 }
 0x180   :  { %v1662_v2 = vmul.f32 0.618034, %v671_v10  ;;  %v1918_v24 = vmul.f32 0.367879, %v1166_v17  ;;  %3196 = vst [vmem:[%s7420_s2 + $0x93] sm:$0x1] %v2940_v33  ;;  %v2173_v56 = vadd.f32 %v1917_v4, %v1661_v40  ;;  %v913_v3 = vadd.f32 %v5570_v42, %v5321_v15 }
 0x181   :  { %v672_v41 = vadd.f32 %v416_v39, %v5828_v5  ;;  %v1167_v14 = vadd.f32 %v912_v61, %v5844_v31  ;;  %v2941_v27 = vadd.f32 %v5499_v18, %v2684_v32  ;;  %v2430_v19 = vmul.f32 0.318309, %v1421_v62  ;;  %v5877_v32 = vld [vmem:[%s7418_s1 + $0xaa] sm:$0x1] }
 0x182   :  { %v2174_v0 = vadd.f32 %v1918_v24, %v1662_v2  ;;  %v417_v59 = vadd.f32 %v5599_v44, %v5307_v34  ;;  %v2685_v48 = vadd.f32 %v2429_v60, %v2173_v56  ;;  %v1422_v13 = vadd.f32 %v913_v3, %v5810_v55 }
 0x183   :  { %v1663_v46 = vmul.f32 0.618034, %v672_v41  ;;  %v1919_v22 = vmul.f32 0.367879, %v1167_v14  ;;  %3197 = vst [vmem:[%s7420_s2 + $0x94] sm:$0x1] %v2941_v27  ;;  %v914_v34 = vadd.f32 %v5586_v53, %v5337_v26  ;;  %v1168_v4 = vadd.f32 %v913_v3, %v5860_v52 }
 0x184   :  { %v2686_v47 = vadd.f32 %v2430_v19, %v2174_v0  ;;  %v673_v7 = vadd.f32 %v417_v59, %v5844_v31  ;;  %v2942_v45 = vadd.f32 %v5499_v18, %v2685_v48  ;;  %v2431_v61 = vmul.f32 0.318309, %v1422_v13  ;;  %v5898_v48 = vld [vmem:[%s7418_s1 + $0xab] sm:$0x1] }
 0x185   :  { %v2175_v10 = vadd.f32 %v1919_v22, %v1663_v46  ;;  %v418_v17 = vadd.f32 %v5616_v51, %v5321_v15  ;;  %v1423_v40 = vadd.f32 %v914_v34, %v5828_v5  ;;  %v1920_v39 = vmul.f32 0.367879, %v1168_v4 }
 0x186   :  { %v2943_v33 = vadd.f32 %v5499_v18, %v2686_v47  ;;  %v1664_v60 = vmul.f32 0.618034, %v673_v7  ;;  %3198 = vst [vmem:[%s7420_s2 + $0x95] sm:$0x1] %v2942_v45  ;;  %v915_v15 = vadd.f32 %v5599_v44, %v5353_v9  ;;  %v1169_v24 = vadd.f32 %v914_v34, %v5877_v32  ;;  %v5909_v34 = vld [vmem:[%s7418_s1 + $0xac] sm:$0x1] }
 0x187   :  { %v2687_v62 = vadd.f32 %v2431_v61, %v2175_v10  ;;  %v674_v2 = vadd.f32 %v418_v17, %v5860_v52  ;;  %v2432_v41 = vmul.f32 0.318309, %v1423_v40  ;;  %v419_v3 = vadd.f32 %v5635_v21, %v5337_v26 }
 0x188   :  { %3199 = vst [vmem:[%s7420_s2 + $0x96] sm:$0x1] %v2943_v33  ;;  %v2176_v56 = vadd.f32 %v1920_v39, %v1664_v60  ;;  %v916_v14 = vadd.f32 %v5616_v51, %v5374_v29  ;;  %v1424_v0 = vadd.f32 %v915_v15, %v5844_v31  ;;  %v1921_v59 = vmul.f32 0.367879, %v1169_v24 }
 0x189   :  { %v2944_v27 = vadd.f32 %v5499_v18, %v2687_v62  ;;  %v1665_v19 = vmul.f32 0.618034, %v674_v2  ;;  %v675_v46 = vadd.f32 %v419_v3, %v5877_v32  ;;  %v1170_v22 = vadd.f32 %v915_v15, %v5898_v48  ;;  %v5922_v2 = vld [vmem:[%s7418_s1 + $0xad] sm:$0x1] }
 0x18a   :  { %v2688_v13 = vadd.f32 %v2432_v41, %v2176_v56  ;;  %v1425_v26 = vadd.f32 %v916_v14, %v5860_v52  ;;  %v2433_v7 = vmul.f32 0.318309, %v1424_v0  ;;  %v420_v4 = vadd.f32 %v5651_v50, %v5353_v9 }
 0x18b   :  { %3200 = vst [vmem:[%s7420_s2 + $0x97] sm:$0x1] %v2944_v27  ;;  %v2177_v47 = vadd.f32 %v1921_v59, %v1665_v19  ;;  %v917_v45 = vadd.f32 %v5635_v21, %v5385_v23  ;;  %v1666_v61 = vmul.f32 0.618034, %v675_v46  ;;  %v1922_v17 = vmul.f32 0.367879, %v1170_v22 }
 0x18c   :  { %v2945_v10 = vadd.f32 %v5499_v18, %v2688_v13  ;;  %v2434_v33 = vmul.f32 0.318309, %v1425_v26  ;;  %v676_v60 = vadd.f32 %v420_v4, %v5898_v48  ;;  %v1171_v39 = vadd.f32 %v916_v14, %v5909_v34 }
 0x18d   :  { %v2689_v40 = vadd.f32 %v2433_v7, %v2177_v47  ;;  %v1426_v62 = vadd.f32 %v917_v45, %v5877_v32  ;;  %v2178_v9 = vadd.f32 %v1922_v17, %v1666_v61  ;;  %v421_v15 = vadd.f32 %v5664_v30, %v5374_v29  ;;  %v5938_v29 = vld [vmem:[%s7418_s1 + $0xae] sm:$0x1] }
 0x18e   :  { %3201 = vst [vmem:[%s7420_s2 + $0x98] sm:$0x1] %v2945_v10  ;;  %v918_v24 = vadd.f32 %v5651_v50, %v5401_v25  ;;  %v1172_v56 = vadd.f32 %v917_v45, %v5922_v2  ;;  %v1667_v3 = vmul.f32 0.618034, %v676_v60  ;;  %v1923_v14 = vmul.f32 0.367879, %v1171_v39 }
 0x18f   :  { %v2946_v41 = vadd.f32 %v5499_v18, %v2689_v40  ;;  %v2435_v27 = vmul.f32 0.318309, %v1426_v62  ;;  %v2690_v0 = vadd.f32 %v2434_v33, %v2178_v9  ;;  %v677_v19 = vadd.f32 %v421_v15, %v5909_v34  ;;  %v5968_v9 = vld [vmem:[%s7418_s1 + $0xb0] sm:$0x1] }
 0x190   :  { %v1427_v59 = vadd.f32 %v918_v24, %v5898_v48  ;;  %v1924_v13 = vmul.f32 0.367879, %v1172_v56  ;;  %v2179_v46 = vadd.f32 %v1923_v14, %v1667_v3  ;;  %v422_v22 = vadd.f32 %v5680_v38, %v5385_v23  ;;  %v5956_v23 = vld [vmem:[%s7418_s1 + $0xaf] sm:$0x1]  ;;  %v5976_v3 = vld [vmem:[%s7418_s1 + $0xb1] sm:$0x1] }
 0x191   :  { %3202 = vst [vmem:[%s7420_s2 + $0x99] sm:$0x1] %v2946_v41  ;;  %v919_v26 = vadd.f32 %v5664_v30, %v5417_v43  ;;  %v1173_v47 = vadd.f32 %v918_v24, %v5938_v29  ;;  %v2947_v7 = vadd.f32 %v5499_v18, %v2690_v0  ;;  %v1668_v4 = vmul.f32 0.618034, %v677_v19 }
 0x192   :  { %v2436_v45 = vmul.f32 0.318309, %v1427_v59  ;;  %v423_v10 = vadd.f32 %v5698_v28, %v5401_v25  ;;  %v2691_v61 = vadd.f32 %v2435_v27, %v2179_v46  ;;  %v678_v17 = vadd.f32 %v422_v22, %v5922_v2 }
 0x193   :  { %v1428_v33 = vadd.f32 %v919_v26, %v5909_v34  ;;  %v1925_v40 = vmul.f32 0.367879, %v1173_v47  ;;  %3203 = vst [vmem:[%s7420_s2 + $0x9a] sm:$0x1] %v2947_v7  ;;  %v2180_v60 = vadd.f32 %v1924_v13, %v1668_v4  ;;  %v1174_v25 = vadd.f32 %v919_v26, %v5956_v23 }
 0x194   :  { %v679_v39 = vadd.f32 %v423_v10, %v5938_v29  ;;  %v1429_v62 = vadd.f32 %v5726_v49, %v5922_v2  ;;  %v2948_v15 = vadd.f32 %v5499_v18, %v2691_v61  ;;  %v1669_v24 = vmul.f32 0.618034, %v678_v17 }
 0x195   :  { %v2437_v56 = vmul.f32 0.318309, %v1428_v33  ;;  %v680_v41 = vadd.f32 %v5956_v23, %v5417_v43  ;;  %v2692_v14 = vadd.f32 %v2436_v45, %v2180_v60  ;;  %v1926_v0 = vmul.f32 0.367879, %v1174_v25 }
 0x196   :  { %v1670_v27 = vmul.f32 0.618034, %v679_v39  ;;  %v2438_v19 = vmul.f32 0.318309, %v1429_v62  ;;  %3204 = vst [vmem:[%s7420_s2 + $0x9b] sm:$0x1] %v2948_v15  ;;  %v2181_v59 = vadd.f32 %v1925_v40, %v1669_v24  ;;  %v5983_v13 = vadd.f32 %v5938_v29, %v5698_v28 }
 0x197   :  { %v1671_v46 = vmul.f32 0.618034, %v680_v41  ;;  %v1927_v43 = vmul.f32 0.367879, %v5726_v49  ;;  %v2949_v22 = vadd.f32 %v5499_v18, %v2692_v14  ;;  %v5989_v47 = vadd.f32 %v5968_v9, %v5718_v11  ;;  %v5998_v49 = vld [vmem:[%s7418_s1 + $0xb2] sm:$0x1] }
 0x198   :  { %v2182_v26 = vadd.f32 %v1926_v0, %v1670_v27  ;;  %v1176_v7 = vadd.f32 %v5976_v3, %v5448_v57  ;;  %v2693_v4 = vadd.f32 %v2437_v56, %v2181_v59  ;;  %v2439_v10 = vmul.f32 0.318309, %v5983_v13 }
 0x199   :  { %v2183_v45 = vadd.f32 %v1927_v43, %v1671_v46  ;;  %v2440_v28 = vmul.f32 0.318309, %v5731_v8  ;;  %3205 = vst [vmem:[%s7420_s2 + $0x9c] sm:$0x1] %v2949_v22  ;;  %v1672_v17 = vmul.f32 0.618034, %v5989_v47  ;;  %v426_v40 = vadd.f32 %v5747_v54, %v5448_v57 }
 0x19a   :  { %v2694_v61 = vadd.f32 %v2438_v19, %v2182_v26  ;;  %v1928_v33 = vmul.f32 0.367879, %v1176_v7  ;;  %v2950_v60 = vadd.f32 %v5499_v18, %v2693_v4  ;;  %v923_v25 = vadd.f32 %v5718_v11, %v5484_v1 }
 0x19b   :  { %v2695_v39 = vadd.f32 %v2439_v10, %v2183_v45  ;;  %v1177_v62 = vadd.f32 %v5731_v8, %v5998_v49  ;;  %v682_v56 = vadd.f32 %v426_v40, %v5976_v3  ;;  %v427_v41 = vadd.f32 %v5767_v6, %v5464_v16  ;;  %v6023_v8 = vld [vmem:[%s7418_s1 + $0xb3] sm:$0x1] }
 0x19c   :  { %v2951_v15 = vadd.f32 %v5499_v18, %v2694_v61  ;;  %v2184_v24 = vadd.f32 %v1928_v33, %v1672_v17  ;;  %3206 = vst [vmem:[%s7420_s2 + $0x9d] sm:$0x1] %v2950_v60  ;;  %v1432_v14 = vadd.f32 %v923_v25, %v5968_v9  ;;  %v924_v0 = vadd.f32 %v5747_v54, %v5509_v36  ;;  %v6044_v61 = vld [vmem:[%s7418_s1 + $0xb4] sm:$0x1] }
 0x19d   :  { %v2952_v57 = vadd.f32 %v5499_v18, %v2695_v39  ;;  %v1929_v27 = vmul.f32 0.367879, %v1177_v62  ;;  %v1673_v19 = vmul.f32 0.618034, %v682_v56  ;;  %v683_v59 = vadd.f32 %v427_v41, %v5998_v49 }
 0x19e   :  { %3207 = vst [vmem:[%s7420_s2 + $0x9e] sm:$0x1] %v2951_v15  ;;  %v2696_v16 = vadd.f32 %v2440_v28, %v2184_v24  ;;  %v1178_v46 = vadd.f32 %v923_v25, %v6023_v8  ;;  %v2441_v43 = vmul.f32 0.318309, %v1432_v14  ;;  %v1433_v22 = vadd.f32 %v924_v0, %v5976_v3  ;;  %v6055_v25 = vld [vmem:[%s7418_s1 + $0xb5] sm:$0x1] }
 0x19f   :  { %3208 = vst [vmem:[%s7420_s2 + $0x9f] sm:$0x1] %v2952_v57  ;;  %v428_v26 = vadd.f32 %v5781_v37, %v5484_v1  ;;  %v925_v7 = vadd.f32 %v5767_v6, %v5523_v58  ;;  %v2185_v45 = vadd.f32 %v1929_v27, %v1673_v19  ;;  %v1674_v10 = vmul.f32 0.618034, %v683_v59 }
 0x1a0   :  { %v2953_v4 = vadd.f32 %v5499_v18, %v2696_v16  ;;  %v1930_v28 = vmul.f32 0.367879, %v1178_v46  ;;  %v2442_v17 = vmul.f32 0.318309, %v1433_v22  ;;  %v1179_v40 = vadd.f32 %v924_v0, %v6044_v61 }
 0x1a1   :  { %v684_v33 = vadd.f32 %v428_v26, %v6023_v8  ;;  %v1434_v1 = vadd.f32 %v925_v7, %v5998_v49  ;;  %v2697_v60 = vadd.f32 %v2441_v43, %v2185_v45  ;;  %v429_v62 = vadd.f32 %v5794_v35, %v5509_v36  ;;  %v6068_v36 = vld [vmem:[%s7418_s1 + $0xb6] sm:$0x1] }
 0x1a2   :  { %3209 = vst [vmem:[%s7420_s2 + $0xa0] sm:$0x1] %v2953_v4  ;;  %v2186_v39 = vadd.f32 %v1930_v28, %v1674_v10  ;;  %v926_v15 = vadd.f32 %v5781_v37, %v5536_v12  ;;  %v1931_v56 = vmul.f32 0.367879, %v1179_v40  ;;  %v1180_v57 = vadd.f32 %v925_v7, %v6055_v25 }
 0x1a3   :  { %v1675_v24 = vmul.f32 0.618034, %v684_v33  ;;  %v2443_v41 = vmul.f32 0.318309, %v1434_v1  ;;  %v2954_v14 = vadd.f32 %v5499_v18, %v2697_v60  ;;  %v685_v0 = vadd.f32 %v429_v62, %v6044_v61 }
 0x1a4   :  { %v2698_v27 = vadd.f32 %v2442_v17, %v2186_v39  ;;  %v1435_v16 = vadd.f32 %v926_v15, %v6023_v8  ;;  %v1932_v59 = vmul.f32 0.367879, %v1180_v57  ;;  %v430_v46 = vadd.f32 %v5810_v55, %v5523_v58  ;;  %v6084_v58 = vld [vmem:[%s7418_s1 + $0xb7] sm:$0x1]  ;;  %v6100_v57 = vld [vmem:[%s7418_s1 + $0xb8] sm:$0x1] }
 0x1a5   :  { %v2187_v19 = vadd.f32 %v1931_v56, %v1675_v24  ;;  %v927_v43 = vadd.f32 %v5794_v35, %v5552_v63  ;;  %3210 = vst [vmem:[%s7420_s2 + $0xa1] sm:$0x1] %v2954_v14  ;;  %v1676_v26 = vmul.f32 0.618034, %v685_v0  ;;  %v1181_v4 = vadd.f32 %v926_v15, %v6068_v36 }
 0x1a6   :  { %v2955_v22 = vadd.f32 %v5499_v18, %v2698_v27  ;;  %v2444_v7 = vmul.f32 0.318309, %v1435_v16  ;;  %v686_v10 = vadd.f32 %v430_v46, %v6055_v25  ;;  %v431_v17 = vadd.f32 %v5828_v5, %v5536_v12 }
 0x1a7   :  { %v2699_v45 = vadd.f32 %v2443_v41, %v2187_v19  ;;  %v1436_v28 = vadd.f32 %v927_v43, %v6044_v61  ;;  %v2188_v33 = vadd.f32 %v1932_v59, %v1676_v26  ;;  %v1933_v40 = vmul.f32 0.367879, %v1181_v4 }
 0x1a8   :  { %3211 = vst [vmem:[%s7420_s2 + $0xa2] sm:$0x1] %v2955_v22  ;;  %v928_v1 = vadd.f32 %v5810_v55, %v5570_v42  ;;  %v1182_v60 = vadd.f32 %v927_v43, %v6084_v58  ;;  %v1677_v62 = vmul.f32 0.618034, %v686_v10  ;;  %v687_v24 = vadd.f32 %v431_v17, %v6068_v36 }
 0x1a9   :  { %v2956_v39 = vadd.f32 %v5499_v18, %v2699_v45  ;;  %v2445_v15 = vmul.f32 0.318309, %v1436_v28  ;;  %v2700_v56 = vadd.f32 %v2444_v7, %v2188_v33  ;;  %v432_v14 = vadd.f32 %v5844_v31, %v5552_v63  ;;  %v6118_v45 = vld [vmem:[%s7418_s1 + $0xb9] sm:$0x1] }
 0x1aa   :  { %v1437_v12 = vadd.f32 %v928_v1, %v6055_v25  ;;  %v1934_v41 = vmul.f32 0.367879, %v1182_v60  ;;  %v2189_v27 = vadd.f32 %v1933_v40, %v1677_v62  ;;  %v1678_v0 = vmul.f32 0.618034, %v687_v24 }
 0x1ab   :  { %3212 = vst [vmem:[%s7420_s2 + $0xa3] sm:$0x1] %v2956_v39  ;;  %v929_v16 = vadd.f32 %v5828_v5, %v5586_v53  ;;  %v1183_v19 = vadd.f32 %v928_v1, %v6100_v57  ;;  %v2957_v59 = vadd.f32 %v5499_v18, %v2700_v56  ;;  %v688_v43 = vadd.f32 %v432_v14, %v6084_v58  ;;  %v6134_v56 = vld [vmem:[%s7418_s1 + $0xba] sm:$0x1] }
 0x1ac   :  { %v2446_v46 = vmul.f32 0.318309, %v1437_v12  ;;  %v433_v22 = vadd.f32 %v5860_v52, %v5570_v42  ;;  %v2701_v63 = vadd.f32 %v2445_v15, %v2189_v27  ;;  %v2190_v26 = vadd.f32 %v1934_v41, %v1678_v0 }
 0x1ad   :  { %v1438_v7 = vadd.f32 %v929_v16, %v6068_v36  ;;  %v1935_v4 = vmul.f32 0.367879, %v1183_v19  ;;  %3213 = vst [vmem:[%s7420_s2 + $0xa4] sm:$0x1] %v2957_v59  ;;  %v1679_v10 = vmul.f32 0.618034, %v688_v43  ;;  %v930_v42 = vadd.f32 %v5844_v31, %v5599_v44 }
 0x1ae   :  { %v689_v28 = vadd.f32 %v433_v22, %v6100_v57  ;;  %v1184_v17 = vadd.f32 %v929_v16, %v6118_v45  ;;  %v2958_v33 = vadd.f32 %v5499_v18, %v2701_v63  ;;  %v2702_v40 = vadd.f32 %v2446_v46, %v2190_v26  ;;  %v6147_v19 = vld [vmem:[%s7418_s1 + $0xbb] sm:$0x1]  ;;  %v6160_v63 = vld [vmem:[%s7419_s0] sm:$0x1] }
 0x1af   :  { %v2447_v1 = vmul.f32 0.318309, %v1438_v7  ;;  %v434_v60 = vadd.f32 %v5877_v32, %v5586_v53  ;;  %v2191_v39 = vadd.f32 %v1935_v4, %v1679_v10  ;;  %v1439_v62 = vadd.f32 %v930_v42, %v6084_v58 }
 0x1b0   :  { %v1680_v15 = vmul.f32 0.618034, %v689_v28  ;;  %v1936_v24 = vmul.f32 0.367879, %v1184_v17  ;;  %3214 = vst [vmem:[%s7420_s2 + $0xa5] sm:$0x1] %v2958_v33  ;;  %v2959_v12 = vadd.f32 %v5499_v18, %v2702_v40  ;;  %v931_v53 = vadd.f32 %v5860_v52, %v5616_v51 }
 0x1b1   :  { %v690_v41 = vadd.f32 %v434_v60, %v6118_v45  ;;  %v1185_v14 = vadd.f32 %v930_v42, %v6134_v56  ;;  %v2703_v27 = vadd.f32 %v2447_v1, %v2191_v39  ;;  %v2448_v16 = vmul.f32 0.318309, %v1439_v62  ;;  %v6169_v17 = vld [vmem:[%s7418_s1 + $0xbc] sm:$0x1] }
 0x1b2   :  { %v2192_v0 = vadd.f32 %v1936_v24, %v1680_v15  ;;  %v435_v59 = vadd.f32 %v5898_v48, %v5599_v44  ;;  %3215 = vst [vmem:[%s7420_s2 + $0xa6] sm:$0x1] %v2959_v12  ;;  %v1440_v18 = vadd.f32 %v931_v53, %v6100_v57  ;;  %v932_v22 = vadd.f32 %v5877_v32, %v5635_v21 }
 0x1b3   :  { %v1681_v46 = vmul.f32 0.618034, %v690_v41  ;;  %v1937_v43 = vmul.f32 0.367879, %v1185_v14  ;;  %v2960_v26 = vadd.f32 %v6160_v63, %v2703_v27  ;;  %v1186_v4 = vadd.f32 %v931_v53, %v6147_v19  ;;  %v6188_v53 = vld [vmem:[%s7418_s1 + $0xbd] sm:$0x1] }
 0x1b4   :  { %v2704_v7 = vadd.f32 %v2448_v16, %v2192_v0  ;;  %v691_v44 = vadd.f32 %v435_v59, %v6134_v56  ;;  %v2449_v28 = vmul.f32 0.318309, %v1440_v18  ;;  %v1441_v42 = vadd.f32 %v932_v22, %v6118_v45 }
 0x1b5   :  { %v2193_v10 = vadd.f32 %v1937_v43, %v1681_v46  ;;  %v436_v33 = vadd.f32 %v5909_v34, %v5616_v51  ;;  %3216 = vst [vmem:[%s7420_s2 + $0xa7] sm:$0x1] %v2960_v26  ;;  %v1938_v60 = vmul.f32 0.367879, %v1186_v4  ;;  %v933_v39 = vadd.f32 %v5898_v48, %v5651_v50 }
 0x1b6   :  { %v2961_v40 = vadd.f32 %v6160_v63, %v2704_v7  ;;  %v1682_v1 = vmul.f32 0.618034, %v691_v44  ;;  %v2450_v15 = vmul.f32 0.318309, %v1441_v42  ;;  %v1187_v12 = vadd.f32 %v932_v22, %v6169_v17  ;;  %v6204_v44 = vld [vmem:[%s7418_s1 + $0xbe] sm:$0x1] }
 0x1b7   :  { %v2705_v62 = vadd.f32 %v2449_v28, %v2193_v10  ;;  %v692_v24 = vadd.f32 %v436_v33, %v6147_v19  ;;  %v1442_v41 = vadd.f32 %v933_v39, %v6134_v56  ;;  %v437_v14 = vadd.f32 %v5922_v2, %v5635_v21 }
 0x1b8   :  { %3217 = vst [vmem:[%s7420_s2 + $0xa8] sm:$0x1] %v2961_v40  ;;  %v2194_v51 = vadd.f32 %v1938_v60, %v1682_v1  ;;  %v934_v27 = vadd.f32 %v5909_v34, %v5664_v30  ;;  %v1939_v59 = vmul.f32 0.367879, %v1187_v12  ;;  %v1188_v18 = vadd.f32 %v933_v39, %v6188_v53 }
 0x1b9   :  { %v2962_v0 = vadd.f32 %v6160_v63, %v2705_v62  ;;  %v1683_v16 = vmul.f32 0.618034, %v692_v24  ;;  %v2451_v43 = vmul.f32 0.318309, %v1442_v41  ;;  %v693_v22 = vadd.f32 %v437_v14, %v6169_v17  ;;  %v6217_v62 = vld [vmem:[%s7418_s1 + $0xbf] sm:$0x1] }
 0x1ba   :  { %v2706_v46 = vadd.f32 %v2450_v15, %v2194_v51  ;;  %v1443_v26 = vadd.f32 %v934_v27, %v6147_v19  ;;  %v1940_v7 = vmul.f32 0.367879, %v1188_v18  ;;  %v438_v4 = vadd.f32 %v5938_v29, %v5651_v50 }
 0x1bb   :  { %3218 = vst [vmem:[%s7420_s2 + $0xa9] sm:$0x1] %v2962_v0  ;;  %v2195_v21 = vadd.f32 %v1939_v59, %v1683_v16  ;;  %v935_v10 = vadd.f32 %v5922_v2, %v5680_v38  ;;  %v1684_v42 = vmul.f32 0.618034, %v693_v22  ;;  %v1189_v40 = vadd.f32 %v934_v27, %v6204_v44 }
 0x1bc   :  { %v2963_v28 = vadd.f32 %v6160_v63, %v2706_v46  ;;  %v2452_v33 = vmul.f32 0.318309, %v1443_v26  ;;  %v694_v60 = vadd.f32 %v438_v4, %v6188_v53  ;;  %v439_v50 = vadd.f32 %v5956_v23, %v5664_v30  ;;  %v6232_v30 = vld [vmem:[%s7418_s1 + $0xc0] sm:$0x1] }
 0x1bd   :  { %v2707_v1 = vadd.f32 %v2451_v43, %v2195_v21  ;;  %v1444_v39 = vadd.f32 %v935_v10, %v6169_v17  ;;  %v2196_v15 = vadd.f32 %v1940_v7, %v1684_v42  ;;  %v1941_v24 = vmul.f32 0.367879, %v1189_v40  ;;  %v6239_v43 = vld [vmem:[%s7418_s1 + $0xc1] sm:$0x1] }
 0x1be   :  { %3219 = vst [vmem:[%s7420_s2 + $0xaa] sm:$0x1] %v2963_v28  ;;  %v1190_v12 = vadd.f32 %v935_v10, %v6217_v62  ;;  %v1445_v51 = vadd.f32 %v5983_v13, %v6188_v53  ;;  %v1685_v14 = vmul.f32 0.618034, %v694_v60  ;;  %v695_v0 = vadd.f32 %v439_v50, %v6204_v44 }
 0x1bf   :  { %v2964_v41 = vadd.f32 %v6160_v63, %v2707_v1  ;;  %v2453_v27 = vmul.f32 0.318309, %v1444_v39  ;;  %v2708_v16 = vadd.f32 %v2452_v33, %v2196_v15  ;;  %v696_v46 = vadd.f32 %v6217_v62, %v5680_v38 }
 0x1c0   :  { %v1942_v59 = vmul.f32 0.367879, %v1190_v12  ;;  %v2454_v18 = vmul.f32 0.318309, %v1445_v51  ;;  %v2197_v22 = vadd.f32 %v1941_v24, %v1685_v14  ;;  %v1686_v26 = vmul.f32 0.618034, %v695_v0 }
 0x1c1   :  { %3220 = vst [vmem:[%s7420_s2 + $0xab] sm:$0x1] %v2964_v41  ;;  %v6246_v21 = vadd.f32 %v6204_v44, %v5956_v23  ;;  %v1943_v7 = vmul.f32 0.367879, %v5983_v13  ;;  %v2965_v4 = vadd.f32 %v6160_v63, %v2708_v16  ;;  %v1687_v38 = vmul.f32 0.618034, %v696_v46 }
 0x1c2   :  { %v6252_v10 = vadd.f32 %v6232_v30, %v5976_v3  ;;  %v1192_v28 = vadd.f32 %v6239_v43, %v5713_v20  ;;  %v2709_v42 = vadd.f32 %v2453_v27, %v2197_v22  ;;  %v2198_v33 = vadd.f32 %v1942_v59, %v1686_v26  ;;  %v6261_v23 = vld [vmem:[%s7418_s1 + $0xc2] sm:$0x1] }
 0x1c3   :  { %v2455_v40 = vmul.f32 0.318309, %v6246_v21  ;;  %v2456_v1 = vmul.f32 0.318309, %v5989_v47  ;;  %3221 = vst [vmem:[%s7420_s2 + $0xac] sm:$0x1] %v2965_v4  ;;  %v2199_v13 = vadd.f32 %v1943_v7, %v1687_v38  ;;  %v442_v50 = vadd.f32 %v5998_v49, %v5713_v20 }
 0x1c4   :  { %v1688_v60 = vmul.f32 0.618034, %v6252_v10  ;;  %v1944_v39 = vmul.f32 0.367879, %v1192_v28  ;;  %v2966_v15 = vadd.f32 %v6160_v63, %v2709_v42  ;;  %v2710_v24 = vadd.f32 %v2454_v18, %v2198_v33 }
 0x1c5   :  { %v939_v12 = vadd.f32 %v5976_v3, %v5747_v54  ;;  %v1193_v51 = vadd.f32 %v5989_v47, %v6261_v23  ;;  %v2711_v41 = vadd.f32 %v2455_v40, %v2199_v13  ;;  %v698_v27 = vadd.f32 %v442_v50, %v6239_v43 }
 0x1c6   :  { %v2200_v14 = vadd.f32 %v1944_v39, %v1688_v60  ;;  %v443_v0 = vadd.f32 %v6023_v8, %v5718_v11  ;;  %3222 = vst [vmem:[%s7420_s2 + $0xad] sm:$0x1] %v2966_v15  ;;  %v2967_v20 = vadd.f32 %v6160_v63, %v2710_v24  ;;  %v940_v18 = vadd.f32 %v5998_v49, %v5767_v6  ;;  %v6288_v11 = vld [vmem:[%s7418_s1 + $0xc3] sm:$0x1] }
 0x1c7   :  { %v1448_v16 = vadd.f32 %v939_v12, %v6232_v30  ;;  %v1945_v59 = vmul.f32 0.367879, %v1193_v51  ;;  %v2968_v47 = vadd.f32 %v6160_v63, %v2711_v41  ;;  %v1689_v22 = vmul.f32 0.618034, %v698_v27 }
 0x1c8   :  { %v2712_v46 = vadd.f32 %v2456_v1, %v2200_v14  ;;  %v699_v26 = vadd.f32 %v443_v0, %v6261_v23  ;;  %3223 = vst [vmem:[%s7420_s2 + $0xae] sm:$0x1] %v2967_v20  ;;  %v1194_v4 = vadd.f32 %v939_v12, %v6288_v11  ;;  %v1449_v38 = vadd.f32 %v940_v18, %v6239_v43  ;;  %v6305_v1 = vld [vmem:[%s7418_s1 + $0xc4] sm:$0x1]  ;;  %v6318_v12 = vld [vmem:[%s7418_s1 + $0xc5] sm:$0x1] }
 0x1c9   :  { %v2457_v7 = vmul.f32 0.318309, %v1448_v16  ;;  %v444_v28 = vadd.f32 %v6044_v61, %v5747_v54  ;;  %3224 = vst [vmem:[%s7420_s2 + $0xaf] sm:$0x1] %v2968_v47  ;;  %v2201_v33 = vadd.f32 %v1945_v59, %v1689_v22  ;;  %v941_v13 = vadd.f32 %v6023_v8, %v5781_v37 }
 0x1ca   :  { %v2969_v42 = vadd.f32 %v6160_v63, %v2712_v46  ;;  %v1690_v40 = vmul.f32 0.618034, %v699_v26  ;;  %v1946_v60 = vmul.f32 0.367879, %v1194_v4  ;;  %v2458_v39 = vmul.f32 0.318309, %v1449_v38 }
 0x1cb   :  { %v700_v54 = vadd.f32 %v444_v28, %v6288_v11  ;;  %v1195_v50 = vadd.f32 %v940_v18, %v6305_v1  ;;  %v2713_v15 = vadd.f32 %v2457_v7, %v2201_v33  ;;  %v1450_v24 = vadd.f32 %v941_v13, %v6261_v23 }
 0x1cc   :  { %3225 = vst [vmem:[%s7420_s2 + $0xb0] sm:$0x1] %v2969_v42  ;;  %v445_v51 = vadd.f32 %v6055_v25, %v5767_v6  ;;  %v942_v41 = vadd.f32 %v6044_v61, %v5794_v35  ;;  %v2202_v14 = vadd.f32 %v1946_v60, %v1690_v40  ;;  %v1196_v20 = vadd.f32 %v941_v13, %v6318_v12  ;;  %v6331_v6 = vld [vmem:[%s7418_s1 + $0xc6] sm:$0x1] }
 0x1cd   :  { %v1691_v27 = vmul.f32 0.618034, %v700_v54  ;;  %v1947_v0 = vmul.f32 0.367879, %v1195_v50  ;;  %v2970_v16 = vadd.f32 %v6160_v63, %v2713_v15  ;;  %v2459_v59 = vmul.f32 0.318309, %v1450_v24 }
 0x1ce   :  { %v701_v18 = vadd.f32 %v445_v51, %v6305_v1  ;;  %v1451_v47 = vadd.f32 %v942_v41, %v6288_v11  ;;  %v2714_v46 = vadd.f32 %v2458_v39, %v2202_v14  ;;  %v1948_v26 = vmul.f32 0.367879, %v1196_v20  ;;  %v6349_v50 = vld [vmem:[%s7418_s1 + $0xc7] sm:$0x1]  ;;  %v6363_v20 = vld [vmem:[%s7418_s1 + $0xc8] sm:$0x1] }
 0x1cf   :  { %v2203_v22 = vadd.f32 %v1947_v0, %v1691_v27  ;;  %v446_v7 = vadd.f32 %v6068_v36, %v5781_v37  ;;  %3226 = vst [vmem:[%s7420_s2 + $0xb1] sm:$0x1] %v2970_v16  ;;  %v943_v28 = vadd.f32 %v6055_v25, %v5810_v55  ;;  %v1197_v42 = vadd.f32 %v942_v41, %v6331_v6 }
 0x1d0   :  { %v1692_v4 = vmul.f32 0.618034, %v701_v18  ;;  %v2460_v38 = vmul.f32 0.318309, %v1451_v47  ;;  %v2971_v33 = vadd.f32 %v6160_v63, %v2714_v46  ;;  %v447_v60 = vadd.f32 %v6084_v58, %v5794_v35 }
 0x1d1   :  { %v2715_v40 = vadd.f32 %v2459_v59, %v2203_v22  ;;  %v702_v13 = vadd.f32 %v446_v7, %v6318_v12  ;;  %v1452_v39 = vadd.f32 %v943_v28, %v6305_v1  ;;  %v1949_v54 = vmul.f32 0.367879, %v1197_v42  ;;  %v6379_v42 = vld [vmem:[%s7418_s1 + $0xc9] sm:$0x1] }
 0x1d2   :  { %v2204_v37 = vadd.f32 %v1948_v26, %v1692_v4  ;;  %v944_v15 = vadd.f32 %v6068_v36, %v5828_v5  ;;  %3227 = vst [vmem:[%s7420_s2 + $0xb2] sm:$0x1] %v2971_v33  ;;  %v703_v35 = vadd.f32 %v447_v60, %v6331_v6  ;;  %v1198_v41 = vadd.f32 %v943_v28, %v6349_v50 }
 0x1d3   :  { %v2972_v24 = vadd.f32 %v6160_v63, %v2715_v40  ;;  %v1693_v51 = vmul.f32 0.618034, %v702_v13  ;;  %v2461_v27 = vmul.f32 0.318309, %v1452_v39  ;;  %v448_v16 = vadd.f32 %v6100_v57, %v5810_v55 }
 0x1d4   :  { %v2716_v14 = vadd.f32 %v2460_v38, %v2204_v37  ;;  %v1453_v0 = vadd.f32 %v944_v15, %v6318_v12  ;;  %v1694_v18 = vmul.f32 0.618034, %v703_v35  ;;  %v1950_v47 = vmul.f32 0.367879, %v1198_v41  ;;  %v6395_v41 = vld [vmem:[%s7418_s1 + $0xca] sm:$0x1] }
 0x1d5   :  { %3228 = vst [vmem:[%s7420_s2 + $0xb3] sm:$0x1] %v2972_v24  ;;  %v2205_v59 = vadd.f32 %v1949_v54, %v1693_v51  ;;  %v945_v46 = vadd.f32 %v6084_v58, %v5844_v31  ;;  %v704_v7 = vadd.f32 %v448_v16, %v6349_v50  ;;  %v1199_v4 = vadd.f32 %v944_v15, %v6363_v20 }
 0x1d6   :  { %v2973_v22 = vadd.f32 %v6160_v63, %v2716_v14  ;;  %v2462_v26 = vmul.f32 0.318309, %v1453_v0  ;;  %v2206_v28 = vadd.f32 %v1950_v47, %v1694_v18  ;;  %v449_v33 = vadd.f32 %v6118_v45, %v5828_v5 }
 0x1d7   :  { %v2717_v38 = vadd.f32 %v2461_v27, %v2205_v59  ;;  %v1454_v55 = vadd.f32 %v945_v46, %v6331_v6  ;;  %v1695_v40 = vmul.f32 0.618034, %v704_v7  ;;  %v1951_v13 = vmul.f32 0.367879, %v1199_v4  ;;  %v6416_v4 = vld [vmem:[%s7418_s1 + $0xcb] sm:$0x1] }
 0x1d8   :  { %3229 = vst [vmem:[%s7420_s2 + $0xb4] sm:$0x1] %v2973_v22  ;;  %v946_v60 = vadd.f32 %v6100_v57, %v5860_v52  ;;  %v1200_v37 = vadd.f32 %v945_v46, %v6379_v42  ;;  %v2718_v54 = vadd.f32 %v2462_v26, %v2206_v28  ;;  %v705_v24 = vadd.f32 %v449_v33, %v6363_v20 }
 0x1d9   :  { %v2974_v39 = vadd.f32 %v6160_v63, %v2717_v38  ;;  %v2463_v15 = vmul.f32 0.318309, %v1454_v55  ;;  %v2207_v51 = vadd.f32 %v1951_v13, %v1695_v40  ;;  %v450_v14 = vadd.f32 %v6134_v56, %v5844_v31 }
 0x1da   :  { %v1455_v5 = vadd.f32 %v946_v60, %v6349_v50  ;;  %v1952_v35 = vmul.f32 0.367879, %v1200_v37  ;;  %v2975_v27 = vadd.f32 %v6160_v63, %v2718_v54  ;;  %v1696_v0 = vmul.f32 0.618034, %v705_v24  ;;  %v6427_v37 = vld [vmem:[%s7418_s1 + $0xcc] sm:$0x1] }
 0x1db   :  { %3230 = vst [vmem:[%s7420_s2 + $0xb5] sm:$0x1] %v2974_v39  ;;  %v947_v16 = vadd.f32 %v6118_v45, %v5877_v32  ;;  %v1201_v59 = vadd.f32 %v946_v60, %v6395_v41  ;;  %v2719_v18 = vadd.f32 %v2463_v15, %v2207_v51  ;;  %v706_v46 = vadd.f32 %v450_v14, %v6379_v42 }
 0x1dc   :  { %v2464_v47 = vmul.f32 0.318309, %v1455_v5  ;;  %v451_v22 = vadd.f32 %v6147_v19, %v5860_v52  ;;  %3231 = vst [vmem:[%s7420_s2 + $0xb6] sm:$0x1] %v2975_v27  ;;  %v2208_v31 = vadd.f32 %v1952_v35, %v1696_v0  ;;  %v948_v38 = vadd.f32 %v6134_v56, %v5898_v48 }
 0x1dd   :  { %v1456_v26 = vadd.f32 %v947_v16, %v6363_v20  ;;  %v1953_v7 = vmul.f32 0.367879, %v1201_v59  ;;  %v2976_v28 = vadd.f32 %v6160_v63, %v2719_v18  ;;  %v1697_v55 = vmul.f32 0.618034, %v706_v46  ;;  %v6443_v59 = vld [vmem:[%s7418_s1 + $0xcd] sm:$0x1] }
 0x1de   :  { %v707_v52 = vadd.f32 %v451_v22, %v6395_v41  ;;  %v1202_v33 = vadd.f32 %v947_v16, %v6416_v4  ;;  %v2720_v40 = vadd.f32 %v2464_v47, %v2208_v31  ;;  %v1457_v60 = vadd.f32 %v948_v38, %v6379_v42 }
 0x1df   :  { %v2465_v13 = vmul.f32 0.318309, %v1456_v26  ;;  %v452_v39 = vadd.f32 %v6169_v17, %v5877_v32  ;;  %3232 = vst [vmem:[%s7420_s2 + $0xb7] sm:$0x1] %v2976_v28  ;;  %v2209_v54 = vadd.f32 %v1953_v7, %v1697_v55  ;;  %v949_v51 = vadd.f32 %v6147_v19, %v5909_v34 }
 0x1e0   :  { %v1698_v15 = vmul.f32 0.618034, %v707_v52  ;;  %v1954_v24 = vmul.f32 0.367879, %v1202_v33  ;;  %v2977_v5 = vadd.f32 %v6160_v63, %v2720_v40  ;;  %v2466_v35 = vmul.f32 0.318309, %v1457_v60 }
 0x1e1   :  { %v708_v14 = vadd.f32 %v452_v39, %v6416_v4  ;;  %v1203_v27 = vadd.f32 %v948_v38, %v6427_v37  ;;  %v2721_v0 = vadd.f32 %v2465_v13, %v2209_v54  ;;  %v1458_v32 = vadd.f32 %v949_v51, %v6395_v41  ;;  %v6459_v33 = vld [vmem:[%s7418_s1 + $0xce] sm:$0x1] }
 0x1e2   :  { %v2210_v16 = vadd.f32 %v1954_v24, %v1698_v15  ;;  %v453_v18 = vadd.f32 %v6188_v53, %v5898_v48  ;;  %3233 = vst [vmem:[%s7420_s2 + $0xb8] sm:$0x1] %v2977_v5  ;;  %v950_v22 = vadd.f32 %v6169_v17, %v5922_v2  ;;  %v1204_v31 = vadd.f32 %v949_v51, %v6443_v59 }
 0x1e3   :  { %v1699_v47 = vmul.f32 0.618034, %v708_v14  ;;  %v1955_v46 = vmul.f32 0.367879, %v1203_v27  ;;  %v2978_v26 = vadd.f32 %v6160_v63, %v2721_v0  ;;  %v2467_v38 = vmul.f32 0.318309, %v1458_v32 }
 0x1e4   :  { %v2722_v7 = vadd.f32 %v2466_v35, %v2210_v16  ;;  %v709_v28 = vadd.f32 %v453_v18, %v6427_v37  ;;  %v1459_v48 = vadd.f32 %v950_v22, %v6416_v4  ;;  %v1956_v52 = vmul.f32 0.367879, %v1204_v31 }
 0x1e5   :  { %v2211_v55 = vadd.f32 %v1955_v46, %v1699_v47  ;;  %v454_v40 = vadd.f32 %v6204_v44, %v5909_v34  ;;  %3234 = vst [vmem:[%s7420_s2 + $0xb9] sm:$0x1] %v2978_v26  ;;  %v951_v39 = vadd.f32 %v6188_v53, %v5938_v29  ;;  %v1205_v54 = vadd.f32 %v950_v22, %v6459_v33  ;;  %v6474_v34 = vld [vmem:[%s7418_s1 + $0xcf] sm:$0x1] }
 0x1e6   :  { %v2979_v13 = vadd.f32 %v6160_v63, %v2722_v7  ;;  %v1700_v60 = vmul.f32 0.618034, %v709_v28  ;;  %v2468_v24 = vmul.f32 0.318309, %v1459_v48  ;;  %v455_v5 = vadd.f32 %v6217_v62, %v5922_v2  ;;  %v6490_v2 = vld [vmem:[%s7418_s1 + $0xd0] sm:$0x1] }
 0x1e7   :  { %v2723_v15 = vadd.f32 %v2467_v38, %v2211_v55  ;;  %v710_v51 = vadd.f32 %v454_v40, %v6443_v59  ;;  %v1460_v14 = vadd.f32 %v951_v39, %v6427_v37  ;;  %v1957_v27 = vmul.f32 0.367879, %v1205_v54 }
 0x1e8   :  { %3235 = vst [vmem:[%s7420_s2 + $0xba] sm:$0x1] %v2979_v13  ;;  %v2212_v35 = vadd.f32 %v1956_v52, %v1700_v60  ;;  %v1206_v0 = vadd.f32 %v951_v39, %v6474_v34  ;;  %v711_v18 = vadd.f32 %v455_v5, %v6459_v33  ;;  %v1461_v47 = vadd.f32 %v6246_v21, %v6443_v59 }
 0x1e9   :  { %v2980_v16 = vadd.f32 %v6160_v63, %v2723_v15  ;;  %v1701_v32 = vmul.f32 0.618034, %v710_v51  ;;  %v2469_v22 = vmul.f32 0.318309, %v1460_v14  ;;  %v712_v26 = vadd.f32 %v6474_v34, %v5938_v29  ;;  %v6506_v29 = vld [vmem:[%s7418_s1 + $0xd1] sm:$0x1] }
 0x1ea   :  { %v2724_v46 = vadd.f32 %v2468_v24, %v2212_v35  ;;  %v1958_v31 = vmul.f32 0.367879, %v1206_v0  ;;  %v1702_v38 = vmul.f32 0.618034, %v711_v18  ;;  %v2470_v28 = vmul.f32 0.318309, %v1461_v47 }
 0x1eb   :  { %3236 = vst [vmem:[%s7420_s2 + $0xbb] sm:$0x1] %v2980_v16  ;;  %v2213_v7 = vadd.f32 %v1957_v27, %v1701_v32  ;;  %v6499_v55 = vadd.f32 %v6459_v33, %v6217_v62  ;;  %v1703_v52 = vmul.f32 0.618034, %v712_v26  ;;  %v1959_v40 = vmul.f32 0.367879, %v6246_v21 }
 0x1ec   :  { %v2981_v48 = vadd.f32 %v6160_v63, %v2724_v46  ;;  %v6510_v13 = vadd.f32 %v6490_v2, %v6239_v43  ;;  %v2214_v39 = vadd.f32 %v1958_v31, %v1702_v38  ;;  %v1208_v62 = vadd.f32 %v6506_v29, %v5968_v9  ;;  %v6526_v27 = vld [vmem:[%s7418_s1 + $0xd2] sm:$0x1] }
 0x1ed   :  { %v2725_v60 = vadd.f32 %v2469_v22, %v2213_v7  ;;  %v2471_v54 = vmul.f32 0.318309, %v6499_v55  ;;  %v2215_v21 = vadd.f32 %v1959_v40, %v1703_v52  ;;  %v2472_v24 = vmul.f32 0.318309, %v6252_v10 }
 0x1ee   :  { %3237 = vst [vmem:[%s7420_s2 + $0xbc] sm:$0x1] %v2981_v48  ;;  %v1704_v15 = vmul.f32 0.618034, %v6510_v13  ;;  %v458_v51 = vadd.f32 %v6261_v23, %v5968_v9  ;;  %v2726_v35 = vadd.f32 %v2470_v28, %v2214_v39  ;;  %v1960_v14 = vmul.f32 0.367879, %v1208_v62 }
 0x1ef   :  { %v2982_v5 = vadd.f32 %v6160_v63, %v2725_v60  ;;  %v955_v0 = vadd.f32 %v6239_v43, %v5998_v49  ;;  %v2727_v16 = vadd.f32 %v2471_v54, %v2215_v21  ;;  %v1209_v18 = vadd.f32 %v6252_v10, %v6526_v27  ;;  %v6560_v54 = vld [vmem:[%s7418_s1 + $0xd4] sm:$0x1] }
 0x1f0   :  { %v714_v32 = vadd.f32 %v458_v51, %v6506_v29  ;;  %v459_v9 = vadd.f32 %v6288_v11, %v5976_v3  ;;  %v2983_v47 = vadd.f32 %v6160_v63, %v2726_v35  ;;  %v2216_v46 = vadd.f32 %v1960_v14, %v1704_v15  ;;  %v6546_v3 = vld [vmem:[%s7418_s1 + $0xd3] sm:$0x1] }
 0x1f1   :  { %3238 = vst [vmem:[%s7420_s2 + $0xbd] sm:$0x1] %v2982_v5  ;;  %v1464_v22 = vadd.f32 %v955_v0, %v6490_v2  ;;  %v956_v31 = vadd.f32 %v6261_v23, %v6023_v8  ;;  %v2984_v26 = vadd.f32 %v6160_v63, %v2727_v16  ;;  %v1961_v38 = vmul.f32 0.367879, %v1209_v18  ;;  %v6573_v16 = vld [vmem:[%s7418_s1 + $0xd5] sm:$0x1] }
 0x1f2   :  { %v1705_v7 = vmul.f32 0.618034, %v714_v32  ;;  %v715_v10 = vadd.f32 %v459_v9, %v6526_v27  ;;  %3239 = vst [vmem:[%s7420_s2 + $0xbe] sm:$0x1] %v2983_v47  ;;  %v2728_v28 = vadd.f32 %v2472_v24, %v2216_v46  ;;  %v1210_v52 = vadd.f32 %v955_v0, %v6546_v3 }
 0x1f3   :  { %v2473_v48 = vmul.f32 0.318309, %v1464_v22  ;;  %v1465_v40 = vadd.f32 %v956_v31, %v6506_v29  ;;  %3240 = vst [vmem:[%s7420_s2 + $0xbf] sm:$0x1] %v2984_v26  ;;  %v460_v62 = vadd.f32 %v6305_v1, %v5998_v49  ;;  %v957_v21 = vadd.f32 %v6288_v11, %v6044_v61 }
 0x1f4   :  { %v2217_v60 = vadd.f32 %v1961_v38, %v1705_v7  ;;  %v1706_v39 = vmul.f32 0.618034, %v715_v10  ;;  %v2985_v15 = vadd.f32 %v6160_v63, %v2728_v28  ;;  %v1962_v24 = vmul.f32 0.367879, %v1210_v52  ;;  %v6589_v10 = vld [vmem:[%s7418_s1 + $0xd6] sm:$0x1] }
 0x1f5   :  { %v2474_v51 = vmul.f32 0.318309, %v1465_v40  ;;  %v1211_v5 = vadd.f32 %v956_v31, %v6560_v54  ;;  %v716_v14 = vadd.f32 %v460_v62, %v6546_v3  ;;  %v1466_v0 = vadd.f32 %v957_v21, %v6526_v27 }
 0x1f6   :  { %v2729_v35 = vadd.f32 %v2473_v48, %v2217_v60  ;;  %v461_v49 = vadd.f32 %v6318_v12, %v6023_v8  ;;  %3241 = vst [vmem:[%s7420_s2 + $0xc0] sm:$0x1] %v2985_v15  ;;  %v2218_v32 = vadd.f32 %v1962_v24, %v1706_v39  ;;  %v958_v9 = vadd.f32 %v6305_v1, %v6055_v25 }
 0x1f7   :  { %v1963_v18 = vmul.f32 0.367879, %v1211_v5  ;;  %v1212_v47 = vadd.f32 %v957_v21, %v6573_v16  ;;  %v1707_v22 = vmul.f32 0.618034, %v716_v14  ;;  %v2475_v31 = vmul.f32 0.318309, %v1466_v0 }
 0x1f8   :  { %v2986_v46 = vadd.f32 %v6160_v63, %v2729_v35  ;;  %v717_v26 = vadd.f32 %v461_v49, %v6560_v54  ;;  %v2730_v7 = vadd.f32 %v2474_v51, %v2218_v32  ;;  %v1467_v8 = vadd.f32 %v958_v9, %v6546_v3  ;;  %v6607_v35 = vld [vmem:[%s7418_s1 + $0xd7] sm:$0x1] }
 0x1f9   :  { %v1964_v38 = vmul.f32 0.367879, %v1212_v47  ;;  %v462_v28 = vadd.f32 %v6331_v6, %v6044_v61  ;;  %v2219_v48 = vadd.f32 %v1963_v18, %v1707_v22  ;;  %v959_v40 = vadd.f32 %v6318_v12, %v6068_v36 }
 0x1fa   :  { %3242 = vst [vmem:[%s7420_s2 + $0xc1] sm:$0x1] %v2986_v46  ;;  %v1708_v52 = vmul.f32 0.618034, %v717_v26  ;;  %v1213_v60 = vadd.f32 %v958_v9, %v6589_v10  ;;  %v2987_v39 = vadd.f32 %v6160_v63, %v2730_v7  ;;  %v2476_v62 = vmul.f32 0.318309, %v1467_v8 }
 0x1fb   :  { %v718_v21 = vadd.f32 %v462_v28, %v6573_v16  ;;  %v463_v15 = vadd.f32 %v6349_v50, %v6055_v25  ;;  %v2731_v61 = vadd.f32 %v2475_v31, %v2219_v48  ;;  %v1468_v51 = vadd.f32 %v959_v40, %v6560_v54  ;;  %v6623_v7 = vld [vmem:[%s7418_s1 + $0xd8] sm:$0x1] }
 0x1fc   :  { %v2220_v24 = vadd.f32 %v1964_v38, %v1708_v52  ;;  %v1965_v5 = vmul.f32 0.367879, %v1213_v60  ;;  %3243 = vst [vmem:[%s7420_s2 + $0xc2] sm:$0x1] %v2987_v39  ;;  %v960_v25 = vadd.f32 %v6331_v6, %v6084_v58  ;;  %v1214_v49 = vadd.f32 %v959_v40, %v6607_v35  ;;  %v6636_v60 = vld [vmem:[%s7418_s1 + $0xd9] sm:$0x1] }
 0x1fd   :  { %v1709_v14 = vmul.f32 0.618034, %v718_v21  ;;  %v719_v0 = vadd.f32 %v463_v15, %v6589_v10  ;;  %v2988_v32 = vadd.f32 %v6160_v63, %v2731_v61  ;;  %v2477_v9 = vmul.f32 0.318309, %v1468_v51 }
 0x1fe   :  { %v2732_v18 = vadd.f32 %v2476_v62, %v2220_v24  ;;  %v464_v47 = vadd.f32 %v6363_v20, %v6068_v36  ;;  %v1469_v22 = vadd.f32 %v960_v25, %v6573_v16  ;;  %v1966_v26 = vmul.f32 0.367879, %v1214_v49  ;;  %v6653_v49 = vld [vmem:[%s7418_s1 + $0xda] sm:$0x1] }
 0x1ff   :  { %v2221_v46 = vadd.f32 %v1965_v5, %v1709_v14  ;;  %v1710_v31 = vmul.f32 0.618034, %v719_v0  ;;  %3244 = vst [vmem:[%s7420_s2 + $0xc3] sm:$0x1] %v2988_v32  ;;  %v961_v36 = vadd.f32 %v6349_v50, %v6100_v57  ;;  %v1215_v28 = vadd.f32 %v960_v25, %v6623_v7 }
 0x200   :  { %v2989_v8 = vadd.f32 %v6160_v63, %v2732_v18  ;;  %v720_v38 = vadd.f32 %v464_v47, %v6607_v35  ;;  %v2478_v40 = vmul.f32 0.318309, %v1469_v22  ;;  %v465_v39 = vadd.f32 %v6379_v42, %v6084_v58 }
 0x201   :  { %v2733_v48 = vadd.f32 %v2477_v9, %v2221_v46  ;;  %v2222_v52 = vadd.f32 %v1966_v26, %v1710_v31  ;;  %v1470_v62 = vadd.f32 %v961_v36, %v6589_v10  ;;  %v1967_v15 = vmul.f32 0.367879, %v1215_v28 }
 0x202   :  { %3245 = vst [vmem:[%s7420_s2 + $0xc4] sm:$0x1] %v2989_v8  ;;  %v1711_v21 = vmul.f32 0.618034, %v720_v38  ;;  %v962_v61 = vadd.f32 %v6363_v20, %v6118_v45  ;;  %v721_v5 = vadd.f32 %v465_v39, %v6623_v7  ;;  %v1216_v14 = vadd.f32 %v961_v36, %v6636_v60  ;;  %v6672_v36 = vld [vmem:[%s7418_s1 + $0xdb] sm:$0x1] }
 0x203   :  { %v2990_v24 = vadd.f32 %v6160_v63, %v2733_v48  ;;  %v2734_v51 = vadd.f32 %v2478_v40, %v2222_v52  ;;  %v2479_v58 = vmul.f32 0.318309, %v1470_v62  ;;  %v466_v32 = vadd.f32 %v6395_v41, %v6100_v57 }
 0x204   :  { %v2223_v0 = vadd.f32 %v1967_v15, %v1711_v21  ;;  %v1471_v25 = vadd.f32 %v962_v61, %v6607_v35  ;;  %v1712_v9 = vmul.f32 0.618034, %v721_v5  ;;  %v1968_v47 = vmul.f32 0.367879, %v1216_v14  ;;  %v6688_v5 = vld [vmem:[%s7418_s1 + $0xdc] sm:$0x1] }
 0x205   :  { %3246 = vst [vmem:[%s7420_s2 + $0xc5] sm:$0x1] %v2990_v24  ;;  %v2991_v18 = vadd.f32 %v6160_v63, %v2734_v51  ;;  %v963_v46 = vadd.f32 %v6379_v42, %v6134_v56  ;;  %v722_v26 = vadd.f32 %v466_v32, %v6636_v60  ;;  %v1217_v8 = vadd.f32 %v962_v61, %v6653_v49 }
 0x206   :  { %v2735_v22 = vadd.f32 %v2479_v58, %v2223_v0  ;;  %v2480_v31 = vmul.f32 0.318309, %v1471_v25  ;;  %v2224_v57 = vadd.f32 %v1968_v47, %v1712_v9  ;;  %v467_v28 = vadd.f32 %v6416_v4, %v6118_v45 }
 0x207   :  { %3247 = vst [vmem:[%s7420_s2 + $0xc6] sm:$0x1] %v2991_v18  ;;  %v1472_v38 = vadd.f32 %v963_v46, %v6623_v7  ;;  %v964_v48 = vadd.f32 %v6395_v41, %v6147_v19  ;;  %v1713_v40 = vmul.f32 0.618034, %v722_v26  ;;  %v1969_v39 = vmul.f32 0.367879, %v1217_v8 }
 0x208   :  { %v2992_v52 = vadd.f32 %v6160_v63, %v2735_v22  ;;  %v1218_v62 = vadd.f32 %v963_v46, %v6672_v36  ;;  %v2736_v21 = vadd.f32 %v2480_v31, %v2224_v57  ;;  %v723_v61 = vadd.f32 %v467_v28, %v6653_v49  ;;  %v6701_v22 = vld [vmem:[%s7418_s1 + $0xdd] sm:$0x1] }
 0x209   :  { %v2481_v15 = vmul.f32 0.318309, %v1472_v38  ;;  %v1473_v24 = vadd.f32 %v964_v48, %v6636_v60  ;;  %v2225_v45 = vadd.f32 %v1969_v39, %v1713_v40  ;;  %v468_v14 = vadd.f32 %v6427_v37, %v6134_v56 }
 0x20a   :  { %3248 = vst [vmem:[%s7420_s2 + $0xc7] sm:$0x1] %v2992_v52  ;;  %v1970_v51 = vmul.f32 0.367879, %v1218_v62  ;;  %v965_v0 = vadd.f32 %v6416_v4, %v6169_v17  ;;  %v2993_v58 = vadd.f32 %v6160_v63, %v2736_v21  ;;  %v1714_v25 = vmul.f32 0.618034, %v723_v61 }
 0x20b   :  { %v2482_v32 = vmul.f32 0.318309, %v1473_v24  ;;  %v1219_v18 = vadd.f32 %v964_v48, %v6688_v5  ;;  %v2737_v9 = vadd.f32 %v2481_v15, %v2225_v45  ;;  %v724_v47 = vadd.f32 %v468_v14, %v6672_v36  ;;  %v6717_v62 = vld [vmem:[%s7418_s1 + $0xde] sm:$0x1] }
 0x20c   :  { %v1474_v46 = vadd.f32 %v965_v0, %v6653_v49  ;;  %v469_v56 = vadd.f32 %v6443_v59, %v6147_v19  ;;  %3249 = vst [vmem:[%s7420_s2 + $0xc8] sm:$0x1] %v2993_v58  ;;  %v2226_v31 = vadd.f32 %v1970_v51, %v1714_v25  ;;  %v966_v8 = vadd.f32 %v6427_v37, %v6188_v53 }
 0x20d   :  { %v1971_v26 = vmul.f32 0.367879, %v1219_v18  ;;  %v1220_v57 = vadd.f32 %v965_v0, %v6701_v22  ;;  %v2994_v38 = vadd.f32 %v6160_v63, %v2737_v9  ;;  %v1715_v28 = vmul.f32 0.618034, %v724_v47  ;;  %v6735_v9 = vld [vmem:[%s7418_s1 + $0xdf] sm:$0x1] }
 0x20e   :  { %v2483_v48 = vmul.f32 0.318309, %v1474_v46  ;;  %v725_v52 = vadd.f32 %v469_v56, %v6688_v5  ;;  %v2738_v40 = vadd.f32 %v2482_v32, %v2226_v31  ;;  %v1475_v19 = vadd.f32 %v966_v8, %v6672_v36 }
 0x20f   :  { %v1972_v39 = vmul.f32 0.367879, %v1220_v57  ;;  %v470_v21 = vadd.f32 %v6459_v33, %v6169_v17  ;;  %3250 = vst [vmem:[%s7420_s2 + $0xc9] sm:$0x1] %v2994_v38  ;;  %v2227_v15 = vadd.f32 %v1971_v26, %v1715_v28  ;;  %v967_v24 = vadd.f32 %v6443_v59, %v6204_v44  ;;  %v6750_v38 = vld [vmem:[%s7418_s1 + $0xe0] sm:$0x1] }
 0x210   :  { %v1716_v61 = vmul.f32 0.618034, %v725_v52  ;;  %v1221_v45 = vadd.f32 %v966_v8, %v6717_v62  ;;  %v2995_v51 = vadd.f32 %v6160_v63, %v2738_v40  ;;  %v2484_v14 = vmul.f32 0.318309, %v1475_v19  ;;  %v6755_v28 = vld [vmem:[%s7418_s1 + $0xe1] sm:$0x1] }
 0x211   :  { %v726_v0 = vadd.f32 %v470_v21, %v6701_v22  ;;  %v471_v58 = vadd.f32 %v6474_v34, %v6188_v53  ;;  %v2739_v17 = vadd.f32 %v2483_v48, %v2227_v15  ;;  %v1476_v32 = vadd.f32 %v967_v24, %v6688_v5 }
 0x212   :  { %v2228_v25 = vadd.f32 %v1972_v39, %v1716_v61  ;;  %v1973_v18 = vmul.f32 0.367879, %v1221_v45  ;;  %3251 = vst [vmem:[%s7420_s2 + $0xca] sm:$0x1] %v2995_v51  ;;  %v1222_v56 = vadd.f32 %v967_v24, %v6735_v9  ;;  %v1477_v53 = vadd.f32 %v6499_v55, %v6701_v22 }
 0x213   :  { %v1717_v47 = vmul.f32 0.618034, %v726_v0  ;;  %v727_v46 = vadd.f32 %v471_v58, %v6717_v62  ;;  %v2996_v31 = vadd.f32 %v6160_v63, %v2739_v17  ;;  %v2485_v8 = vmul.f32 0.318309, %v1476_v32 }
 0x214   :  { %v2740_v26 = vadd.f32 %v2484_v14, %v2228_v25  ;;  %v728_v57 = vadd.f32 %v6735_v9, %v6204_v44  ;;  %v1974_v40 = vmul.f32 0.367879, %v1222_v56  ;;  %v2486_v19 = vmul.f32 0.318309, %v1477_v53 }
 0x215   :  { %v2229_v48 = vadd.f32 %v1973_v18, %v1717_v47  ;;  %v1718_v52 = vmul.f32 0.618034, %v727_v46  ;;  %3252 = vst [vmem:[%s7420_s2 + $0xcb] sm:$0x1] %v2996_v31  ;;  %v6763_v39 = vadd.f32 %v6717_v62, %v6474_v34  ;;  %v1975_v15 = vmul.f32 0.367879, %v6499_v55 }
 0x216   :  { %v2997_v44 = vadd.f32 %v6160_v63, %v2740_v26  ;;  %v1719_v21 = vmul.f32 0.618034, %v728_v57  ;;  %v6768_v45 = vadd.f32 %v6750_v38, %v6506_v29  ;;  %v1224_v51 = vadd.f32 %v6755_v28, %v6232_v30  ;;  %v6784_v18 = vld [vmem:[%s7418_s1 + $0xe2] sm:$0x1] }
 0x217   :  { %v2741_v61 = vadd.f32 %v2485_v8, %v2229_v48  ;;  %v2230_v24 = vadd.f32 %v1974_v40, %v1718_v52  ;;  %v2487_v34 = vmul.f32 0.318309, %v6763_v39  ;;  %v2488_v0 = vmul.f32 0.318309, %v6510_v13 }
 0x218   :  { %3253 = vst [vmem:[%s7420_s2 + $0xcc] sm:$0x1] %v2997_v44  ;;  %v2231_v14 = vadd.f32 %v1975_v15, %v1719_v21  ;;  %v474_v55 = vadd.f32 %v6526_v27, %v6232_v30  ;;  %v1720_v25 = vmul.f32 0.618034, %v6768_v45  ;;  %v1976_v32 = vmul.f32 0.367879, %v1224_v51 }
 0x219   :  { %v2998_v58 = vadd.f32 %v6160_v63, %v2741_v61  ;;  %v2742_v17 = vadd.f32 %v2486_v19, %v2230_v24  ;;  %v971_v56 = vadd.f32 %v6506_v29, %v6261_v23  ;;  %v1225_v30 = vadd.f32 %v6510_v13, %v6784_v18  ;;  %v6804_v13 = vld [vmem:[%s7418_s1 + $0xe3] sm:$0x1]  ;;  %v6818_v24 = vld [vmem:[%s7418_s1 + $0xe4] sm:$0x1] }
 0x21a   :  { %v2743_v47 = vadd.f32 %v2487_v34, %v2231_v14  ;;  %v730_v46 = vadd.f32 %v474_v55, %v6755_v28  ;;  %v2232_v31 = vadd.f32 %v1976_v32, %v1720_v25  ;;  %v475_v26 = vadd.f32 %v6546_v3, %v6239_v43 }
 0x21b   :  { %3254 = vst [vmem:[%s7420_s2 + $0xcd] sm:$0x1] %v2998_v58  ;;  %v2999_v53 = vadd.f32 %v6160_v63, %v2742_v17  ;;  %v972_v8 = vadd.f32 %v6526_v27, %v6288_v11  ;;  %v1480_v48 = vadd.f32 %v971_v56, %v6750_v38  ;;  %v1977_v40 = vmul.f32 0.367879, %v1225_v30 }
 0x21c   :  { %v3000_v57 = vadd.f32 %v6160_v63, %v2743_v47  ;;  %v1721_v52 = vmul.f32 0.618034, %v730_v46  ;;  %v2744_v19 = vadd.f32 %v2488_v0, %v2232_v31  ;;  %v731_v43 = vadd.f32 %v475_v26, %v6784_v18  ;;  %v6831_v46 = vld [vmem:[%s7418_s1 + $0xe5] sm:$0x1] }
 0x21d   :  { %3255 = vst [vmem:[%s7420_s2 + $0xce] sm:$0x1] %v2999_v53  ;;  %v1226_v44 = vadd.f32 %v971_v56, %v6804_v13  ;;  %v1481_v21 = vadd.f32 %v972_v8, %v6755_v28  ;;  %v2489_v61 = vmul.f32 0.318309, %v1480_v48  ;;  %v476_v51 = vadd.f32 %v6560_v54, %v6261_v23  ;;  %v6844_v53 = vld [vmem:[%s7419_s0] sm:$0x1] }
 0x21e   :  { %3256 = vst [vmem:[%s7420_s2 + $0xcf] sm:$0x1] %v3000_v57  ;;  %v2233_v15 = vadd.f32 %v1977_v40, %v1721_v52  ;;  %v973_v14 = vadd.f32 %v6546_v3, %v6305_v1  ;;  %v3001_v34 = vadd.f32 %v6160_v63, %v2744_v19  ;;  %v1722_v0 = vmul.f32 0.618034, %v731_v43  ;;  %v6852_v19 = vld [vmem:[%s7418_s1 + $0xe6] sm:$0x1] }
 0x21f   :  { %v1978_v55 = vmul.f32 0.367879, %v1226_v44  ;;  %v2490_v58 = vmul.f32 0.318309, %v1481_v21  ;;  %v732_v25 = vadd.f32 %v476_v51, %v6804_v13  ;;  %v1227_v32 = vadd.f32 %v972_v8, %v6818_v24 }
 0x220   :  { %v2745_v17 = vadd.f32 %v2489_v61, %v2233_v15  ;;  %v1482_v47 = vadd.f32 %v973_v14, %v6784_v18  ;;  %3257 = vst [vmem:[%s7420_s2 + $0xd0] sm:$0x1] %v3001_v34  ;;  %v477_v23 = vadd.f32 %v6573_v16, %v6288_v11  ;;  %v974_v56 = vadd.f32 %v6560_v54, %v6318_v12 }
 0x221   :  { %v2234_v63 = vadd.f32 %v1978_v55, %v1722_v0  ;;  %v1228_v30 = vadd.f32 %v973_v14, %v6831_v46  ;;  %v1723_v26 = vmul.f32 0.618034, %v732_v25  ;;  %v1979_v8 = vmul.f32 0.367879, %v1227_v32 }
 0x222   :  { %v3002_v31 = vadd.f32 %v6844_v53, %v2745_v17  ;;  %v2491_v57 = vmul.f32 0.318309, %v1482_v47  ;;  %v733_v52 = vadd.f32 %v477_v23, %v6818_v24  ;;  %v1483_v11 = vadd.f32 %v974_v56, %v6804_v13 }
 0x223   :  { %v2746_v48 = vadd.f32 %v2490_v58, %v2234_v63  ;;  %v1980_v40 = vmul.f32 0.367879, %v1228_v30  ;;  %v2235_v43 = vadd.f32 %v1979_v8, %v1723_v26  ;;  %v478_v44 = vadd.f32 %v6589_v10, %v6305_v1  ;;  %v6870_v1 = vld [vmem:[%s7418_s1 + $0xe7] sm:$0x1] }
 0x224   :  { %3258 = vst [vmem:[%s7420_s2 + $0xd1] sm:$0x1] %v3002_v31  ;;  %v975_v21 = vadd.f32 %v6573_v16, %v6331_v6  ;;  %v1229_v15 = vadd.f32 %v974_v56, %v6852_v19  ;;  %v1724_v51 = vmul.f32 0.618034, %v733_v52  ;;  %v2492_v14 = vmul.f32 0.318309, %v1483_v11 }
 0x225   :  { %v3003_v61 = vadd.f32 %v6844_v53, %v2746_v48  ;;  %v479_v34 = vadd.f32 %v6607_v35, %v6318_v12  ;;  %v2747_v0 = vadd.f32 %v2491_v57, %v2235_v43  ;;  %v734_v55 = vadd.f32 %v478_v44, %v6831_v46  ;;  %v6886_v48 = vld [vmem:[%s7418_s1 + $0xe8] sm:$0x1] }
 0x226   :  { %v1484_v58 = vadd.f32 %v975_v21, %v6818_v24  ;;  %v1981_v17 = vmul.f32 0.367879, %v1229_v15  ;;  %v2236_v25 = vadd.f32 %v1980_v40, %v1724_v51  ;;  %v976_v12 = vadd.f32 %v6589_v10, %v6349_v50 }
 0x227   :  { %3259 = vst [vmem:[%s7420_s2 + $0xd2] sm:$0x1] %v3003_v61  ;;  %v735_v32 = vadd.f32 %v479_v34, %v6852_v19  ;;  %v1230_v47 = vadd.f32 %v975_v21, %v6870_v1  ;;  %v3004_v63 = vadd.f32 %v6844_v53, %v2747_v0  ;;  %v1725_v23 = vmul.f32 0.618034, %v734_v55  ;;  %v6902_v0 = vld [vmem:[%s7418_s1 + $0xe9] sm:$0x1] }
 0x228   :  { %v2493_v56 = vmul.f32 0.318309, %v1484_v58  ;;  %v480_v30 = vadd.f32 %v6623_v7, %v6331_v6  ;;  %v2748_v31 = vadd.f32 %v2492_v14, %v2236_v25  ;;  %v1485_v26 = vadd.f32 %v976_v12, %v6831_v46 }
 0x229   :  { %v1726_v8 = vmul.f32 0.618034, %v735_v32  ;;  %v1982_v57 = vmul.f32 0.367879, %v1230_v47  ;;  %3260 = vst [vmem:[%s7420_s2 + $0xd3] sm:$0x1] %v3004_v63  ;;  %v2237_v52 = vadd.f32 %v1981_v17, %v1725_v23  ;;  %v977_v6 = vadd.f32 %v6607_v35, %v6363_v20 }
 0x22a   :  { %v736_v11 = vadd.f32 %v480_v30, %v6870_v1  ;;  %v1231_v40 = vadd.f32 %v976_v12, %v6886_v48  ;;  %v3005_v43 = vadd.f32 %v6844_v53, %v2748_v31  ;;  %v2494_v21 = vmul.f32 0.318309, %v1485_v26  ;;  %v6919_v31 = vld [vmem:[%s7418_s1 + $0xea] sm:$0x1] }
 0x22b   :  { %v2238_v44 = vadd.f32 %v1982_v57, %v1726_v8  ;;  %v481_v15 = vadd.f32 %v6636_v60, %v6349_v50  ;;  %v2749_v61 = vadd.f32 %v2493_v56, %v2237_v52  ;;  %v1486_v51 = vadd.f32 %v977_v6, %v6852_v19 }
 0x22c   :  { %v1727_v14 = vmul.f32 0.618034, %v736_v11  ;;  %v1983_v34 = vmul.f32 0.367879, %v1231_v40  ;;  %3261 = vst [vmem:[%s7420_s2 + $0xd4] sm:$0x1] %v3005_v43  ;;  %v978_v50 = vadd.f32 %v6623_v7, %v6379_v42  ;;  %v1232_v17 = vadd.f32 %v977_v6, %v6902_v0 }
 0x22d   :  { %v2750_v55 = vadd.f32 %v2494_v21, %v2238_v44  ;;  %v737_v58 = vadd.f32 %v481_v15, %v6886_v48  ;;  %v3006_v25 = vadd.f32 %v6844_v53, %v2749_v61  ;;  %v2495_v12 = vmul.f32 0.318309, %v1486_v51  ;;  %v6940_v61 = vld [vmem:[%s7418_s1 + $0xeb] sm:$0x1] }
 0x22e   :  { %v2239_v32 = vadd.f32 %v1983_v34, %v1727_v14  ;;  %v482_v47 = vadd.f32 %v6653_v49, %v6363_v20  ;;  %v1487_v23 = vadd.f32 %v978_v50, %v6870_v1  ;;  %v1984_v30 = vmul.f32 0.367879, %v1232_v17 }
 0x22f   :  { %v3007_v63 = vadd.f32 %v6844_v53, %v2750_v55  ;;  %v1728_v56 = vmul.f32 0.618034, %v737_v58  ;;  %3262 = vst [vmem:[%s7420_s2 + $0xd5] sm:$0x1] %v3006_v25  ;;  %v979_v20 = vadd.f32 %v6636_v60, %v6395_v41  ;;  %v1233_v57 = vadd.f32 %v978_v50, %v6919_v31  ;;  %v6951_v50 = vld [vmem:[%s7418_s1 + $0xec] sm:$0x1] }
 0x230   :  { %v2751_v26 = vadd.f32 %v2495_v12, %v2239_v32  ;;  %v738_v8 = vadd.f32 %v482_v47, %v6902_v0  ;;  %v2496_v11 = vmul.f32 0.318309, %v1487_v23  ;;  %v483_v6 = vadd.f32 %v6672_v36, %v6379_v42 }
 0x231   :  { %3263 = vst [vmem:[%s7420_s2 + $0xd6] sm:$0x1] %v3007_v63  ;;  %v2240_v52 = vadd.f32 %v1984_v30, %v1728_v56  ;;  %v980_v40 = vadd.f32 %v6653_v49, %v6416_v4  ;;  %v1488_v44 = vadd.f32 %v979_v20, %v6886_v48  ;;  %v1985_v15 = vmul.f32 0.367879, %v1233_v57 }
 0x232   :  { %v3008_v43 = vadd.f32 %v6844_v53, %v2751_v26  ;;  %v1729_v21 = vmul.f32 0.618034, %v738_v8  ;;  %v739_v14 = vadd.f32 %v483_v6, %v6919_v31  ;;  %v1234_v34 = vadd.f32 %v979_v20, %v6940_v61  ;;  %v6964_v8 = vld [vmem:[%s7418_s1 + $0xed] sm:$0x1] }
 0x233   :  { %v2752_v51 = vadd.f32 %v2496_v11, %v2240_v52  ;;  %v1489_v42 = vadd.f32 %v980_v40, %v6902_v0  ;;  %v2497_v58 = vmul.f32 0.318309, %v1488_v44  ;;  %v484_v17 = vadd.f32 %v6688_v5, %v6395_v41 }
 0x234   :  { %3264 = vst [vmem:[%s7420_s2 + $0xd7] sm:$0x1] %v3008_v43  ;;  %v2241_v55 = vadd.f32 %v1985_v15, %v1729_v21  ;;  %v981_v25 = vadd.f32 %v6672_v36, %v6427_v37  ;;  %v1730_v12 = vmul.f32 0.618034, %v739_v14  ;;  %v1986_v47 = vmul.f32 0.367879, %v1234_v34 }
 0x235   :  { %v3009_v32 = vadd.f32 %v6844_v53, %v2752_v51  ;;  %v2498_v63 = vmul.f32 0.318309, %v1489_v42  ;;  %v740_v56 = vadd.f32 %v484_v17, %v6940_v61  ;;  %v1235_v30 = vadd.f32 %v980_v40, %v6951_v50 }
 0x236   :  { %v2753_v23 = vadd.f32 %v2497_v58, %v2241_v55  ;;  %v1490_v26 = vadd.f32 %v981_v25, %v6919_v31  ;;  %v2242_v41 = vadd.f32 %v1986_v47, %v1730_v12  ;;  %v485_v20 = vadd.f32 %v6701_v22, %v6416_v4  ;;  %v6980_v4 = vld [vmem:[%s7418_s1 + $0xee] sm:$0x1] }
 0x237   :  { %3265 = vst [vmem:[%s7420_s2 + $0xd8] sm:$0x1] %v3009_v32  ;;  %v982_v57 = vadd.f32 %v6688_v5, %v6443_v59  ;;  %v1236_v52 = vadd.f32 %v981_v25, %v6964_v8  ;;  %v1731_v6 = vmul.f32 0.618034, %v740_v56  ;;  %v1987_v40 = vmul.f32 0.367879, %v1235_v30 }
 0x238   :  { %v3010_v11 = vadd.f32 %v6844_v53, %v2753_v23  ;;  %v2499_v43 = vmul.f32 0.318309, %v1490_v26  ;;  %v2754_v44 = vadd.f32 %v2498_v63, %v2242_v41  ;;  %v741_v21 = vadd.f32 %v485_v20, %v6951_v50  ;;  %v251_v41 = vld [vmem:[%s7418_s1 + $0xf0] sm:$0x1] }
 0x239   :  { %v1491_v15 = vadd.f32 %v982_v57, %v6940_v61  ;;  %v1988_v51 = vmul.f32 0.367879, %v1236_v52  ;;  %v2243_v14 = vadd.f32 %v1987_v40, %v1731_v6  ;;  %v486_v34 = vadd.f32 %v6717_v62, %v6427_v37  ;;  %v6998_v37 = vld [vmem:[%s7418_s1 + $0xef] sm:$0x1]  ;;  %v7016_v6 = vld [vmem:[%s7418_s1 + $0xf1] sm:$0x1] }
 0x23a   :  { %3266 = vst [vmem:[%s7420_s2 + $0xd9] sm:$0x1] %v3010_v11  ;;  %v983_v42 = vadd.f32 %v6701_v22, %v6459_v33  ;;  %v1237_v55 = vadd.f32 %v982_v57, %v6980_v4  ;;  %v3011_v58 = vadd.f32 %v6844_v53, %v2754_v44  ;;  %v1732_v17 = vmul.f32 0.618034, %v741_v21 }
 0x23b   :  { %v2500_v25 = vmul.f32 0.318309, %v1491_v15  ;;  %v487_v32 = vadd.f32 %v6735_v9, %v6443_v59  ;;  %v2755_v12 = vadd.f32 %v2499_v43, %v2243_v14  ;;  %v742_v47 = vadd.f32 %v486_v34, %v6964_v8 }
 0x23c   :  { %v1492_v63 = vadd.f32 %v983_v42, %v6951_v50  ;;  %v1989_v23 = vmul.f32 0.367879, %v1237_v55  ;;  %3267 = vst [vmem:[%s7420_s2 + $0xda] sm:$0x1] %v3011_v58  ;;  %v2244_v56 = vadd.f32 %v1988_v51, %v1732_v17  ;;  %v1238_v59 = vadd.f32 %v983_v42, %v6998_v37  ;;  %v7035_v17 = vld [vmem:[%s7418_s1 + $0xf2] sm:$0x1] }
 0x23d   :  { %v743_v30 = vadd.f32 %v487_v32, %v6980_v4  ;;  %v1493_v26 = vadd.f32 %v6763_v39, %v6964_v8  ;;  %v3012_v20 = vadd.f32 %v6844_v53, %v2755_v12  ;;  %v1733_v57 = vmul.f32 0.618034, %v742_v47 }
 0x23e   :  { %v2501_v52 = vmul.f32 0.318309, %v1492_v63  ;;  %v744_v11 = vadd.f32 %v6998_v37, %v6459_v33  ;;  %v2756_v40 = vadd.f32 %v2500_v25, %v2244_v56  ;;  %v1990_v44 = vmul.f32 0.367879, %v1238_v59 }
 0x23f   :  { %v1734_v43 = vmul.f32 0.618034, %v743_v30  ;;  %v2502_v21 = vmul.f32 0.318309, %v1493_v26  ;;  %3268 = vst [vmem:[%s7420_s2 + $0xdb] sm:$0x1] %v3012_v20  ;;  %v2245_v15 = vadd.f32 %v1989_v23, %v1733_v57  ;;  %v7023_v51 = vadd.f32 %v6980_v4, %v6735_v9 }
 0x240   :  { %v1735_v14 = vmul.f32 0.618034, %v744_v11  ;;  %v1991_v33 = vmul.f32 0.367879, %v6763_v39  ;;  %v3013_v34 = vadd.f32 %v6844_v53, %v2756_v40  ;;  %v7028_v55 = vadd.f32 %v251_v41, %v6755_v28  ;;  %v7053_v20 = vld [vmem:[%s7418_s1 + $0xf3] sm:$0x1] }
 0x241   :  { %v2246_v42 = vadd.f32 %v1990_v44, %v1734_v43  ;;  %v1240_v58 = vadd.f32 %v7016_v6, %v6490_v2  ;;  %v2757_v25 = vadd.f32 %v2501_v52, %v2245_v15  ;;  %v2503_v32 = vmul.f32 0.318309, %v7023_v51 }
 0x242   :  { %v2247_v9 = vadd.f32 %v1991_v33, %v1735_v14  ;;  %v2504_v39 = vmul.f32 0.318309, %v6768_v45  ;;  %3269 = vst [vmem:[%s7420_s2 + $0xdc] sm:$0x1] %v3013_v34  ;;  %v1736_v47 = vmul.f32 0.618034, %v7028_v55  ;;  %v490_v23 = vadd.f32 %v6784_v18, %v6490_v2 }
 0x243   :  { %v2758_v12 = vadd.f32 %v2502_v21, %v2246_v42  ;;  %v1992_v63 = vmul.f32 0.367879, %v1240_v58  ;;  %v3014_v56 = vadd.f32 %v6844_v53, %v2757_v25  ;;  %v987_v59 = vadd.f32 %v6755_v28, %v6526_v27  ;;  %v7073_v33 = vld [vmem:[%s7418_s1 + $0xf4] sm:$0x1] }
 0x244   :  { %v2759_v30 = vadd.f32 %v2503_v32, %v2247_v9  ;;  %v1241_v26 = vadd.f32 %v6768_v45, %v7035_v17  ;;  %v746_v11 = vadd.f32 %v490_v23, %v7016_v6  ;;  %v491_v2 = vadd.f32 %v6804_v13, %v6506_v29 }
 0x245   :  { %v3015_v57 = vadd.f32 %v6844_v53, %v2758_v12  ;;  %v2248_v52 = vadd.f32 %v1992_v63, %v1736_v47  ;;  %3270 = vst [vmem:[%s7420_s2 + $0xdd] sm:$0x1] %v3014_v56  ;;  %v1496_v45 = vadd.f32 %v987_v59, %v251_v41  ;;  %v988_v44 = vadd.f32 %v6784_v18, %v6546_v3  ;;  %v7087_v12 = vld [vmem:[%s7418_s1 + $0xf5] sm:$0x1] }
 0x246   :  { %v3016_v40 = vadd.f32 %v6844_v53, %v2759_v30  ;;  %v1993_v43 = vmul.f32 0.367879, %v1241_v26  ;;  %v1737_v15 = vmul.f32 0.618034, %v746_v11  ;;  %v747_v14 = vadd.f32 %v491_v2, %v7035_v17 }
 0x247   :  { %3271 = vst [vmem:[%s7420_s2 + $0xde] sm:$0x1] %v3015_v57  ;;  %v2760_v21 = vadd.f32 %v2504_v39, %v2248_v52  ;;  %v1242_v29 = vadd.f32 %v987_v59, %v7053_v20  ;;  %v2505_v41 = vmul.f32 0.318309, %v1496_v45  ;;  %v1497_v34 = vadd.f32 %v988_v44, %v7016_v6  ;;  %v7102_v57 = vld [vmem:[%s7418_s1 + $0xf6] sm:$0x1] }
 0x248   :  { %3272 = vst [vmem:[%s7420_s2 + $0xdf] sm:$0x1] %v3016_v40  ;;  %v492_v42 = vadd.f32 %v6818_v24, %v6526_v27  ;;  %v989_v58 = vadd.f32 %v6804_v13, %v6560_v54  ;;  %v2249_v9 = vadd.f32 %v1993_v43, %v1737_v15  ;;  %v1738_v32 = vmul.f32 0.618034, %v747_v14 }
 0x249   :  { %v3017_v25 = vadd.f32 %v6844_v53, %v2760_v21  ;;  %v1994_v39 = vmul.f32 0.367879, %v1242_v29  ;;  %v2506_v47 = vmul.f32 0.318309, %v1497_v34  ;;  %v1243_v23 = vadd.f32 %v988_v44, %v7073_v33 }
 0x24a   :  { %v748_v63 = vadd.f32 %v492_v42, %v7053_v20  ;;  %v1498_v27 = vadd.f32 %v989_v58, %v7035_v17  ;;  %v2761_v56 = vadd.f32 %v2505_v41, %v2249_v9  ;;  %v493_v59 = vadd.f32 %v6831_v46, %v6546_v3  ;;  %v7115_v41 = vld [vmem:[%s7418_s1 + $0xf7] sm:$0x1] }
 0x24b   :  { %3273 = vst [vmem:[%s7420_s2 + $0xe0] sm:$0x1] %v3017_v25  ;;  %v2250_v30 = vadd.f32 %v1994_v39, %v1738_v32  ;;  %v990_v26 = vadd.f32 %v6818_v24, %v6573_v16  ;;  %v1995_v11 = vmul.f32 0.367879, %v1243_v23  ;;  %v1244_v40 = vadd.f32 %v989_v58, %v7087_v12 }
 0x24c   :  { %v1739_v52 = vmul.f32 0.618034, %v748_v63  ;;  %v2507_v2 = vmul.f32 0.318309, %v1498_v27  ;;  %v3018_v45 = vadd.f32 %v6844_v53, %v2761_v56  ;;  %v749_v44 = vadd.f32 %v493_v59, %v7073_v33  ;;  %v7135_v56 = vld [vmem:[%s7418_s1 + $0xf8] sm:$0x1] }
 0x24d   :  { %v2762_v43 = vadd.f32 %v2506_v47, %v2250_v30  ;;  %v1499_v3 = vadd.f32 %v990_v26, %v7053_v20  ;;  %v1996_v15 = vmul.f32 0.367879, %v1244_v40  ;;  %v494_v14 = vadd.f32 %v6852_v19, %v6560_v54 }
 0x24e   :  { %v2251_v21 = vadd.f32 %v1995_v11, %v1739_v52  ;;  %v991_v29 = vadd.f32 %v6831_v46, %v6589_v10  ;;  %3274 = vst [vmem:[%s7420_s2 + $0xe1] sm:$0x1] %v3018_v45  ;;  %v1740_v42 = vmul.f32 0.618034, %v749_v44  ;;  %v1245_v25 = vadd.f32 %v990_v26, %v7102_v57 }
 0x24f   :  { %v3019_v34 = vadd.f32 %v6844_v53, %v2762_v43  ;;  %v2508_v58 = vmul.f32 0.318309, %v1499_v3  ;;  %v750_v54 = vadd.f32 %v494_v14, %v7087_v12  ;;  %v495_v39 = vadd.f32 %v6870_v1, %v6573_v16 }
 0x250   :  { %v2763_v9 = vadd.f32 %v2507_v2, %v2251_v21  ;;  %v1500_v32 = vadd.f32 %v991_v29, %v7073_v33  ;;  %v2252_v47 = vadd.f32 %v1996_v15, %v1740_v42  ;;  %v1997_v63 = vmul.f32 0.367879, %v1245_v25  ;;  %v7151_v21 = vld [vmem:[%s7418_s1 + $0xf9] sm:$0x1] }
 0x251   :  { %3275 = vst [vmem:[%s7420_s2 + $0xe2] sm:$0x1] %v3019_v34  ;;  %v992_v23 = vadd.f32 %v6852_v19, %v6607_v35  ;;  %v1246_v27 = vadd.f32 %v991_v29, %v7115_v41  ;;  %v1741_v59 = vmul.f32 0.618034, %v750_v54  ;;  %v751_v26 = vadd.f32 %v495_v39, %v7102_v57 }
 0x252   :  { %v3020_v30 = vadd.f32 %v6844_v53, %v2763_v9  ;;  %v2509_v16 = vmul.f32 0.318309, %v1500_v32  ;;  %v2764_v52 = vadd.f32 %v2508_v58, %v2252_v47  ;;  %v496_v40 = vadd.f32 %v6886_v48, %v6589_v10 }
 0x253   :  { %v1501_v11 = vadd.f32 %v992_v23, %v7087_v12  ;;  %v1998_v2 = vmul.f32 0.367879, %v1246_v27  ;;  %v2253_v45 = vadd.f32 %v1997_v63, %v1741_v59  ;;  %v1742_v43 = vmul.f32 0.618034, %v751_v26 }
 0x254   :  { %3276 = vst [vmem:[%s7420_s2 + $0xe3] sm:$0x1] %v3020_v30  ;;  %v993_v44 = vadd.f32 %v6870_v1, %v6623_v7  ;;  %v1247_v3 = vadd.f32 %v992_v23, %v7135_v56  ;;  %v3021_v15 = vadd.f32 %v6844_v53, %v2764_v52  ;;  %v752_v10 = vadd.f32 %v496_v40, %v7115_v41 }
 0x255   :  { %v2510_v14 = vmul.f32 0.318309, %v1501_v11  ;;  %v497_v29 = vadd.f32 %v6902_v0, %v6607_v35  ;;  %v2765_v34 = vadd.f32 %v2509_v16, %v2253_v45  ;;  %v2254_v42 = vadd.f32 %v1998_v2, %v1742_v43  ;;  %v7168_v35 = vld [vmem:[%s7418_s1 + $0xfa] sm:$0x1] }
 0x256   :  { %v1502_v58 = vadd.f32 %v993_v44, %v7102_v57  ;;  %v1999_v25 = vmul.f32 0.367879, %v1247_v3  ;;  %3277 = vst [vmem:[%s7420_s2 + $0xe4] sm:$0x1] %v3021_v15  ;;  %v1743_v9 = vmul.f32 0.618034, %v752_v10  ;;  %v994_v32 = vadd.f32 %v6886_v48, %v6636_v60 }
 0x257   :  { %v753_v54 = vadd.f32 %v497_v29, %v7135_v56  ;;  %v1248_v39 = vadd.f32 %v993_v44, %v7151_v21  ;;  %v3022_v47 = vadd.f32 %v6844_v53, %v2765_v34  ;;  %v2766_v63 = vadd.f32 %v2510_v14, %v2254_v42 }
 0x258   :  { %v2511_v23 = vmul.f32 0.318309, %v1502_v58  ;;  %v498_v27 = vadd.f32 %v6919_v31, %v6623_v7  ;;  %v2255_v30 = vadd.f32 %v1999_v25, %v1743_v9  ;;  %v1503_v59 = vadd.f32 %v994_v32, %v7115_v41  ;;  %v7185_v7 = vld [vmem:[%s7418_s1 + $0xfb] sm:$0x1] }
 0x259   :  { %v1744_v16 = vmul.f32 0.618034, %v753_v54  ;;  %v2000_v26 = vmul.f32 0.367879, %v1248_v39  ;;  %3278 = vst [vmem:[%s7420_s2 + $0xe5] sm:$0x1] %v3022_v47  ;;  %v3023_v52 = vadd.f32 %v6844_v53, %v2766_v63  ;;  %v995_v2 = vadd.f32 %v6902_v0, %v6653_v49 }
 0x25a   :  { %v754_v11 = vadd.f32 %v498_v27, %v7151_v21  ;;  %v1249_v40 = vadd.f32 %v994_v32, %v7168_v35  ;;  %v2767_v45 = vadd.f32 %v2511_v23, %v2255_v30  ;;  %v2512_v44 = vmul.f32 0.318309, %v1503_v59  ;;  %v7209_v47 = vld [vmem:[%s7418_s1 + $0xfd] sm:$0x1] }
 0x25b   :  { %v2256_v43 = vadd.f32 %v2000_v26, %v1744_v16  ;;  %v499_v3 = vadd.f32 %v6940_v61, %v6636_v60  ;;  %3279 = vst [vmem:[%s7420_s2 + $0xe6] sm:$0x1] %v3023_v52  ;;  %v1504_v15 = vadd.f32 %v995_v2, %v7135_v56  ;;  %v996_v29 = vadd.f32 %v6919_v31, %v6672_v36  ;;  %v7201_v60 = vld [vmem:[%s7418_s1 + $0xfc] sm:$0x1] }
 0x25c   :  { %v1745_v14 = vmul.f32 0.618034, %v754_v11  ;;  %v2001_v10 = vmul.f32 0.367879, %v1249_v40  ;;  %v3024_v34 = vadd.f32 %v6844_v53, %v2767_v45  ;;  %v1250_v25 = vadd.f32 %v995_v2, %v7185_v7 }
 0x25d   :  { %v2768_v42 = vadd.f32 %v2512_v44, %v2256_v43  ;;  %v755_v58 = vadd.f32 %v499_v3, %v7168_v35  ;;  %v2513_v54 = vmul.f32 0.318309, %v1504_v15  ;;  %v1505_v32 = vadd.f32 %v996_v29, %v7151_v21  ;;  %v7232_v15 = vld [vmem:[%s7418_s1 + $0xfe] sm:$0x1] }
 0x25e   :  { %v2257_v9 = vadd.f32 %v2001_v10, %v1745_v14  ;;  %v500_v39 = vadd.f32 %v6951_v50, %v6653_v49  ;;  %3280 = vst [vmem:[%s7420_s2 + $0xe7] sm:$0x1] %v3024_v34  ;;  %v2002_v27 = vmul.f32 0.367879, %v1250_v25  ;;  %v997_v30 = vadd.f32 %v6940_v61, %v6688_v5 }
 0x25f   :  { %v3025_v63 = vadd.f32 %v6844_v53, %v2768_v42  ;;  %v1746_v23 = vmul.f32 0.618034, %v755_v58  ;;  %v2514_v16 = vmul.f32 0.318309, %v1505_v32  ;;  %v1251_v26 = vadd.f32 %v996_v29, %v7201_v60 }
 0x260   :  { %v2769_v59 = vadd.f32 %v2513_v54, %v2257_v9  ;;  %v756_v49 = vadd.f32 %v500_v39, %v7185_v7  ;;  %v1506_v11 = vadd.f32 %v997_v30, %v7168_v35  ;;  %v501_v2 = vadd.f32 %v6964_v8, %v6672_v36  ;;  %v7246_v9 = vld [vmem:[%s7418_s1 + $0xff] sm:$0x1] }
 0x261   :  { %3281 = vst [vmem:[%s7420_s2 + $0xe8] sm:$0x1] %v3025_v63  ;;  %v2258_v52 = vadd.f32 %v2002_v27, %v1746_v23  ;;  %v998_v40 = vadd.f32 %v6951_v50, %v6701_v22  ;;  %v2003_v44 = vmul.f32 0.367879, %v1251_v26  ;;  %v1252_v3 = vadd.f32 %v997_v30, %v7209_v47 }
 0x262   :  { %v3026_v45 = vadd.f32 %v6844_v53, %v2769_v59  ;;  %v1747_v43 = vmul.f32 0.618034, %v756_v49  ;;  %v2515_v10 = vmul.f32 0.318309, %v1506_v11  ;;  %v757_v29 = vadd.f32 %v501_v2, %v7201_v60 }
 0x263   :  { %v2770_v14 = vadd.f32 %v2514_v16, %v2258_v52  ;;  %v1507_v36 = vadd.f32 %v998_v40, %v7185_v7  ;;  %v2004_v42 = vmul.f32 0.367879, %v1252_v3  ;;  %v502_v58 = vadd.f32 %v6980_v4, %v6688_v5 }
 0x264   :  { %3282 = vst [vmem:[%s7420_s2 + $0xe9] sm:$0x1] %v3026_v45  ;;  %v2259_v34 = vadd.f32 %v2003_v44, %v1747_v43  ;;  %v999_v25 = vadd.f32 %v6964_v8, %v6717_v62  ;;  %v1748_v32 = vmul.f32 0.618034, %v757_v29  ;;  %v1253_v63 = vadd.f32 %v998_v40, %v7232_v15 }
 0x265   :  { %v3027_v54 = vadd.f32 %v6844_v53, %v2770_v14  ;;  %v2516_v39 = vmul.f32 0.318309, %v1507_v36  ;;  %v758_v27 = vadd.f32 %v502_v58, %v7209_v47  ;;  %v503_v5 = vadd.f32 %v6998_v37, %v6701_v22 }
 0x266   :  { %v2771_v23 = vadd.f32 %v2515_v10, %v2259_v34  ;;  %v1508_v30 = vadd.f32 %v999_v25, %v7201_v60  ;;  %v2260_v59 = vadd.f32 %v2004_v42, %v1748_v32  ;;  %v2005_v16 = vmul.f32 0.367879, %v1253_v63 }
 0x267   :  { %3283 = vst [vmem:[%s7420_s2 + $0xea] sm:$0x1] %v3027_v54  ;;  %v1254_v49 = vadd.f32 %v999_v25, %v7246_v9  ;;  %v1509_v26 = vadd.f32 %v7023_v51, %v7209_v47  ;;  %v1749_v11 = vmul.f32 0.618034, %v758_v27  ;;  %v759_v40 = vadd.f32 %v503_v5, %v7232_v15 }
 0x268   :  { %v3028_v52 = vadd.f32 %v6844_v53, %v2771_v23  ;;  %v2517_v2 = vmul.f32 0.318309, %v1508_v30  ;;  %v2772_v45 = vadd.f32 %v2516_v39, %v2260_v59  ;;  %v760_v44 = vadd.f32 %v7246_v9, %v6717_v62 }
 0x269   :  { %v2006_v43 = vmul.f32 0.367879, %v1254_v49  ;;  %v2518_v22 = vmul.f32 0.318309, %v1509_v26  ;;  %v2261_v3 = vadd.f32 %v2005_v16, %v1749_v11  ;;  %v1750_v14 = vmul.f32 0.618034, %v759_v40 }
 0x26a   :  { %3284 = vst [vmem:[%s7420_s2 + $0xeb] sm:$0x1] %v3028_v52  ;;  %v7269_v10 = vadd.f32 %v7232_v15, %v6998_v37  ;;  %v2007_v29 = vmul.f32 0.367879, %v7023_v51  ;;  %v3029_v36 = vadd.f32 %v6844_v53, %v2772_v45  ;;  %v1751_v34 = vmul.f32 0.618034, %v760_v44 }
 0x26b   :  { %v1752_v42 = vmul.f32 0.618034, %v7016_v6  ;;  %v2008_v58 = vmul.f32 0.367879, %v6750_v38  ;;  %v2773_v62 = vadd.f32 %v2517_v2, %v2261_v3  ;;  %v2262_v25 = vadd.f32 %v2006_v43, %v1750_v14 }
 0x26c   :  { %v7276_v54 = vmul.f32 0.318309, %v7269_v10  ;;  %v2520_v32 = vmul.f32 0.318309, %v7028_v55  ;;  %3285 = vst [vmem:[%s7420_s2 + $0xec] sm:$0x1] %v3029_v36  ;;  %v2263_v37 = vadd.f32 %v2007_v29, %v1751_v34  ;;  %v506_v39 = vadd.f32 %v7035_v17, %v6750_v38 }
 0x26d   :  { %v2264_v51 = vadd.f32 %v2008_v58, %v1752_v42  ;;  %v1003_v63 = vadd.f32 %v7016_v6, %v6784_v18  ;;  %v3030_v23 = vadd.f32 %v6844_v53, %v2773_v62  ;;  %v2774_v27 = vadd.f32 %v2518_v22, %v2262_v25 }
 0x26e   :  { %v2009_v30 = vmul.f32 0.367879, %v7028_v55  ;;  %v507_v5 = vadd.f32 %v7053_v20, %v6755_v28  ;;  %v2775_v59 = vadd.f32 %v7276_v54, %v2263_v37  ;;  %v1753_v49 = vmul.f32 0.618034, %v506_v39 }
 0x26f   :  { %v2776_v16 = vadd.f32 %v2520_v32, %v2264_v51  ;;  %v2521_v26 = vmul.f32 0.318309, %v1003_v63  ;;  %3286 = vst [vmem:[%s7420_s2 + $0xed] sm:$0x1] %v3030_v23  ;;  %v3031_v38 = vadd.f32 %v6844_v53, %v2774_v27  ;;  %v1004_v6 = vadd.f32 %v7035_v17, %v6804_v13 }
 0x270   :  { %v1754_v52 = vmul.f32 0.618034, %v507_v5  ;;  %v2010_v11 = vmul.f32 0.367879, %v1003_v63  ;;  %v3032_v55 = vadd.f32 %v6844_v53, %v2775_v59  ;;  %v2265_v2 = vadd.f32 %v2009_v30, %v1753_v49 }
 0x271   :  { %v3033_v28 = vadd.f32 %v6844_v53, %v2776_v16  ;;  %v508_v40 = vadd.f32 %v7073_v33, %v6784_v18  ;;  %3287 = vst [vmem:[%s7420_s2 + $0xee] sm:$0x1] %v3031_v38  ;;  %v2522_v43 = vmul.f32 0.318309, %v1004_v6  ;;  %v1005_v22 = vadd.f32 %v7053_v20, %v6818_v24 }
 0x272   :  { %v2266_v45 = vadd.f32 %v2010_v11, %v1754_v52  ;;  %v2011_v17 = vmul.f32 0.367879, %v1004_v6  ;;  %3288 = vst [vmem:[%s7420_s2 + $0xef] sm:$0x1] %v3032_v55  ;;  %v2777_v44 = vadd.f32 %v2521_v26, %v2265_v2  ;;  %v509_v14 = vadd.f32 %v7087_v12, %v6804_v13 }
 0x273   :  { %v1755_v3 = vmul.f32 0.618034, %v508_v40  ;;  %v1006_v18 = vadd.f32 %v7073_v33, %v6831_v46  ;;  %3289 = vst [vmem:[%s7420_s2 + $0xf0] sm:$0x1] %v3033_v28  ;;  %v2523_v36 = vmul.f32 0.318309, %v1005_v22  ;;  %v510_v34 = vadd.f32 %v7102_v57, %v6818_v24 }
 0x274   :  { %v2778_v29 = vadd.f32 %v2522_v43, %v2266_v45  ;;  %v2012_v20 = vmul.f32 0.367879, %v1005_v22  ;;  %v3034_v42 = vadd.f32 %v6844_v53, %v2777_v44  ;;  %v1756_v62 = vmul.f32 0.618034, %v509_v14 }
 0x275   :  { %v2267_v58 = vadd.f32 %v2011_v17, %v1755_v3  ;;  %v2524_v25 = vmul.f32 0.318309, %v1006_v18  ;;  %v1007_v33 = vadd.f32 %v7087_v12, %v6852_v19  ;;  %v1757_v32 = vmul.f32 0.618034, %v510_v34 }
 0x276   :  { %v3035_v13 = vadd.f32 %v6844_v53, %v2778_v29  ;;  %v2013_v37 = vmul.f32 0.367879, %v1006_v18  ;;  %3290 = vst [vmem:[%s7420_s2 + $0xf1] sm:$0x1] %v3034_v42  ;;  %v2268_v39 = vadd.f32 %v2012_v20, %v1756_v62  ;;  %v511_v24 = vadd.f32 %v7115_v41, %v6831_v46 }
 0x277   :  { %v2779_v51 = vadd.f32 %v2523_v36, %v2267_v58  ;;  %v1008_v63 = vadd.f32 %v7102_v57, %v6870_v1  ;;  %v2525_v12 = vmul.f32 0.318309, %v1007_v33  ;;  %v2014_v27 = vmul.f32 0.367879, %v1007_v33 }
 0x278   :  { %3291 = vst [vmem:[%s7420_s2 + $0xf2] sm:$0x1] %v3035_v13  ;;  %v2269_v23 = vadd.f32 %v2013_v37, %v1757_v32  ;;  %v512_v30 = vadd.f32 %v7135_v56, %v6852_v19  ;;  %v2780_v59 = vadd.f32 %v2524_v25, %v2268_v39  ;;  %v1758_v16 = vmul.f32 0.618034, %v511_v24 }
 0x279   :  { %v3036_v5 = vadd.f32 %v6844_v53, %v2779_v51  ;;  %v2526_v49 = vmul.f32 0.318309, %v1008_v63  ;;  %v1009_v46 = vadd.f32 %v7115_v41, %v6886_v48  ;;  %v2015_v38 = vmul.f32 0.367879, %v1008_v63 }
 0x27a   :  { %v2781_v26 = vadd.f32 %v2525_v12, %v2269_v23  ;;  %v1759_v57 = vmul.f32 0.618034, %v512_v30  ;;  %v3037_v6 = vadd.f32 %v6844_v53, %v2780_v59  ;;  %v2270_v52 = vadd.f32 %v2014_v27, %v1758_v16 }
 0x27b   :  { %3292 = vst [vmem:[%s7420_s2 + $0xf3] sm:$0x1] %v3036_v5  ;;  %v513_v19 = vadd.f32 %v7151_v21, %v6870_v1  ;;  %v1010_v11 = vadd.f32 %v7135_v56, %v6902_v0  ;;  %v2527_v2 = vmul.f32 0.318309, %v1009_v46  ;;  %v2016_v41 = vmul.f32 0.367879, %v1009_v46 }
 0x27c   :  { %v3038_v55 = vadd.f32 %v6844_v53, %v2781_v26  ;;  %v2271_v28 = vadd.f32 %v2015_v38, %v1759_v57  ;;  %3293 = vst [vmem:[%s7420_s2 + $0xf4] sm:$0x1] %v3037_v6  ;;  %v2782_v40 = vadd.f32 %v2526_v49, %v2270_v52  ;;  %v514_v22 = vadd.f32 %v7168_v35, %v6886_v48 }
 0x27d   :  { %v1760_v45 = vmul.f32 0.618034, %v513_v19  ;;  %v2528_v43 = vmul.f32 0.318309, %v1010_v11  ;;  %v1011_v56 = vadd.f32 %v7151_v21, %v6919_v31  ;;  %v2017_v17 = vmul.f32 0.367879, %v1010_v11 }
 0x27e   :  { %3294 = vst [vmem:[%s7420_s2 + $0xf5] sm:$0x1] %v3038_v55  ;;  %v2783_v1 = vadd.f32 %v2527_v2, %v2271_v28  ;;  %v515_v44 = vadd.f32 %v7185_v7, %v6902_v0  ;;  %v3039_v3 = vadd.f32 %v6844_v53, %v2782_v40  ;;  %v1761_v18 = vmul.f32 0.618034, %v514_v22 }
 0x27f   :  { %v2272_v14 = vadd.f32 %v2016_v41, %v1760_v45  ;;  %v1012_v29 = vadd.f32 %v7168_v35, %v6940_v61  ;;  %v2529_v36 = vmul.f32 0.318309, %v1011_v56  ;;  %v2018_v34 = vmul.f32 0.367879, %v1011_v56 }
 0x280   :  { %v3040_v48 = vadd.f32 %v6844_v53, %v2783_v1  ;;  %v1762_v20 = vmul.f32 0.618034, %v515_v44  ;;  %3295 = vst [vmem:[%s7420_s2 + $0xf6] sm:$0x1] %v3039_v3  ;;  %v2273_v42 = vadd.f32 %v2017_v17, %v1761_v18  ;;  %v516_v0 = vadd.f32 %v7201_v60, %v6919_v31 }
 0x281   :  { %v2784_v21 = vadd.f32 %v2528_v43, %v2272_v14  ;;  %v2530_v58 = vmul.f32 0.318309, %v1012_v29  ;;  %v1013_v62 = vadd.f32 %v7185_v7, %v6951_v50  ;;  %v2019_v25 = vmul.f32 0.367879, %v1012_v29 }
 0x282   :  { %3296 = vst [vmem:[%s7420_s2 + $0xf7] sm:$0x1] %v3040_v48  ;;  %v2274_v35 = vadd.f32 %v2018_v34, %v1762_v20  ;;  %v517_v13 = vadd.f32 %v7209_v47, %v6940_v61  ;;  %v2785_v32 = vadd.f32 %v2529_v36, %v2273_v42  ;;  %v1763_v37 = vmul.f32 0.618034, %v516_v0 }
 0x283   :  { %v3041_v33 = vadd.f32 %v6844_v53, %v2784_v21  ;;  %v1014_v51 = vadd.f32 %v7201_v60, %v6964_v8  ;;  %v2531_v39 = vmul.f32 0.318309, %v1013_v62  ;;  %v2020_v63 = vmul.f32 0.367879, %v1013_v62 }
 0x284   :  { %v2786_v31 = vadd.f32 %v2530_v58, %v2274_v35  ;;  %v1764_v24 = vmul.f32 0.618034, %v517_v13  ;;  %v3042_v7 = vadd.f32 %v6844_v53, %v2785_v32  ;;  %v2275_v23 = vadd.f32 %v2019_v25, %v1763_v37 }
 0x285   :  { %3297 = vst [vmem:[%s7420_s2 + $0xf8] sm:$0x1] %v3041_v33  ;;  %v2532_v12 = vmul.f32 0.318309, %v1014_v51  ;;  %v518_v61 = vadd.f32 %v7232_v15, %v6951_v50  ;;  %v1015_v60 = vadd.f32 %v7209_v47, %v6980_v4  ;;  %v2021_v5 = vmul.f32 0.367879, %v1014_v51 }
 0x286   :  { %v3043_v27 = vadd.f32 %v6844_v53, %v2786_v31  ;;  %v2276_v30 = vadd.f32 %v2020_v63, %v1764_v24  ;;  %3298 = vst [vmem:[%s7420_s2 + $0xf9] sm:$0x1] %v3042_v7  ;;  %v2787_v59 = vadd.f32 %v2531_v39, %v2275_v23  ;;  %v519_v49 = vadd.f32 %v7246_v9, %v6964_v8 }
 0x287   :  { %v1765_v16 = vmul.f32 0.618034, %v518_v61  ;;  %v1767_v26 = vmul.f32 0.618034, %v6980_v4  ;;  %v2533_v15 = vmul.f32 0.318309, %v1015_v60 }
 0x288   :  { %3299 = vst [vmem:[%s7420_s2 + $0xfa] sm:$0x1] %v3043_v27  ;;  %v2788_v50 = vadd.f32 %v2532_v12, %v2276_v30  ;;  %v2022_v46 = vmul.f32 0.367879, %v1015_v60  ;;  %v3044_v47 = vadd.f32 %v6844_v53, %v2787_v59  ;;  %v1766_v38 = vmul.f32 0.618034, %v519_v49 }
 0x289   :  { %v2277_v57 = vadd.f32 %v2021_v5, %v1765_v16  ;;  %v2023_v6 = vmul.f32 0.367879, %v7269_v10  ;;  %v2535_v19 = vmul.f32 0.318309, %v7246_v9 }
 0x28a   :  { %v3045_v52 = vadd.f32 %v6844_v53, %v2788_v50  ;;  %3300 = vst [vmem:[%s7420_s2 + $0xfb] sm:$0x1] %v3044_v47  ;;  %v2278_v4 = vadd.f32 %v2022_v46, %v1766_v38 }
 0x28b   :  { %v2789_v8 = vadd.f32 %v2533_v15, %v2277_v57  ;;  %v2279_v11 = vadd.f32 %v2023_v6, %v1767_v26 }
 0x28c   :  { %3301 = vst [vmem:[%s7420_s2 + $0xfc] sm:$0x1] %v3045_v52  ;;  %v2790_v28 = vadd.f32 %v7276_v54, %v2278_v4 }
 0x28d   :  { %v3046_v55 = vadd.f32 %v6844_v53, %v2789_v8  ;;  %v2791_v10 = vadd.f32 %v2535_v19, %v2279_v11 }
 0x28e   :  { %v3047_v9 = vadd.f32 %v6844_v53, %v2790_v28 }
 0x28f   :  { %3302 = vst [vmem:[%s7420_s2 + $0xfd] sm:$0x1] %v3046_v55  ;;  %v3048_v2 = vadd.f32 %v6844_v53, %v2791_v10 }
 0x290   :  { %3303 = vst [vmem:[%s7420_s2 + $0xfe] sm:$0x1] %v3047_v9 }
 0x291   :  { %3304 = vst [vmem:[%s7420_s2 + $0xff] sm:$0x1] %v3048_v2 }

</bundles_post_ra>
